<compile_context>
chip_gen: v7x
topology: tpu7x:2x2x1
jax: 0.10.0
libtpu: 0.0.40
codegen_flags: <defaults>
</compile_context>

<pallas_src>
import functools
import math

import jax
import jax.numpy as jnp
from jax.experimental import pallas as pl
from jax.experimental.pallas import tpu as pltpu


def _ru(x, m):
    return ((x + m - 1) // m) * m


def _pick_tile(total, cap, align=128):
    """Largest multiple of `align` <= cap that divides `total` (total % align == 0)."""
    d = min(cap, total)
    d -= d % align
    while d >= align:
        if total % d == 0:
            return d
        d -= align
    return align


# ----------------------------------------------------------------------------
# Pallas kernels
# ----------------------------------------------------------------------------
def _mm_stats_kernel(a_ref, b_ref, o_ref, sum_ref, sq_ref, acc_ref, *,
                     m_total, tm, need_row_mask):
    """o = a @ b (bf16 x bf16, f32 accumulation in VMEM scratch, bf16 store);
    per-(M-tile) column sum / sum-of-squares of the valid rows as extra outputs."""
    # All grid queries at kernel top level (never inside a pl.when body).
    i = pl.program_id(0)
    k = pl.program_id(2)
    nk = pl.num_programs(2)

    @pl.when(k == 0)
    def _():
        acc_ref[...] = jnp.zeros_like(acc_ref)

    acc_ref[...] += jnp.dot(a_ref[...], b_ref[...],
                            preferred_element_type=jnp.float32)

    @pl.when(k == nk - 1)
    def _():
        y = acc_ref[...]
        if need_row_mask:
            rows = i * tm + jax.lax.broadcasted_iota(jnp.int32, y.shape, 0)
            ys = jnp.where(rows < m_total, y, 0.0)   # select (no NaN propagation)
        else:
            ys = y
        sum_ref[...] = jnp.sum(ys, axis=0, keepdims=True)[None]       # (1,1,tn)
        sq_ref[...] = jnp.sum(ys * ys, axis=0, keepdims=True)[None]   # (1,1,tn)
        o_ref[...] = y.astype(o_ref.dtype)


def _pallas_matmul_stats(a, b, *, tm=512, tn_cap=512, tk_cap=2048,
                         out_dtype=jnp.bfloat16):
    """a:[M,K] bf16 @ b:[K,N] bf16 -> (out[M,N] bf16, colsum[nmi,1,N] f32,
    colsumsq[nmi,1,N] f32).  Requires K % 128 == 0: the caller bakes K padding
    into the im2col / weight construction (no full-array pad pass over A)."""
    M, K = a.shape
    Kb, N = b.shape
    assert K == Kb and K % 128 == 0, (K, Kb)
    tm_e = min(tm, _ru(M, 16))
    tn_e = _pick_tile(N, tn_cap) if N % 128 == 0 else N
    tk_e = _pick_tile(K, tk_cap)
    nmi = pl.cdiv(M, tm_e)
    grid = (nmi, N // tn_e, K // tk_e)
    kern = functools.partial(_mm_stats_kernel, m_total=M, tm=tm_e,
                             need_row_mask=(M % tm_e != 0))
    out, s, sq = pl.pallas_call(
        kern,
        out_shape=(jax.ShapeDtypeStruct((M, N), out_dtype),
                   jax.ShapeDtypeStruct((nmi, 1, N), jnp.float32),
                   jax.ShapeDtypeStruct((nmi, 1, N), jnp.float32)),
        grid=grid,
        in_specs=[pl.BlockSpec((tm_e, tk_e), lambda i, j, k: (i, k)),
                  pl.BlockSpec((tk_e, tn_e), lambda i, j, k: (k, j))],
        out_specs=(pl.BlockSpec((tm_e, tn_e), lambda i, j, k: (i, j)),
                   pl.BlockSpec((1, 1, tn_e), lambda i, j, k: (i, 0, j)),
                   pl.BlockSpec((1, 1, tn_e), lambda i, j, k: (i, 0, j))),
        scratch_shapes=[pltpu.VMEM((tm_e, tn_e), jnp.float32)],
        compiler_params=pltpu.CompilerParams(
            dimension_semantics=("parallel", "parallel", "arbitrary"),
            vmem_limit_bytes=48 * 1024 * 1024),
    )(a, b)
    return out, s, sq


def _affine_kernel(x_ref, s_ref, b_ref, o_ref, *, relu):
    y = x_ref[...].astype(jnp.float32) * s_ref[...] + b_ref[...]
    if relu:
        y = jnp.maximum(y, 0.0)
    o_ref[...] = y.astype(o_ref.dtype)


def _affine_res_kernel(x_ref, s_ref, b_ref, r_ref, o_ref, *, relu):
    y = (x_ref[...].astype(jnp.float32) * s_ref[...] + b_ref[...]
         + r_ref[...].astype(jnp.float32))
    if relu:
        y = jnp.maximum(y, 0.0)
    o_ref[...] = y.astype(o_ref.dtype)


def _pallas_affine(x, scale, shift, residual=None, relu=False, tm=1024):
    """y = x*scale + shift (+ residual) (+ ReLU); x:[M,C] bf16, scale/shift:[C] f32;
    bf16 output (keeps inter-layer activations in bf16)."""
    M, C = x.shape
    tm_e = min(tm, _ru(M, 16))
    args = [x, scale.reshape(1, C), shift.reshape(1, C)]
    in_specs = [pl.BlockSpec((tm_e, C), lambda i: (i, 0)),
                pl.BlockSpec((1, C), lambda i: (0, 0)),
                pl.BlockSpec((1, C), lambda i: (0, 0))]
    if residual is None:
        kern = functools.partial(_affine_kernel, relu=relu)
    else:
        args.append(residual)
        in_specs.append(pl.BlockSpec((tm_e, C), lambda i: (i, 0)))
        kern = functools.partial(_affine_res_kernel, relu=relu)
    return pl.pallas_call(
        kern,
        out_shape=jax.ShapeDtypeStruct((M, C), jnp.bfloat16),
        grid=(pl.cdiv(M, tm_e),),
        in_specs=in_specs,
        out_specs=pl.BlockSpec((tm_e, C), lambda i: (i, 0)),
        compiler_params=pltpu.CompilerParams(
            dimension_semantics=("parallel",)),
    )(*args)


def _window_max_kernel(p_ref, o_ref):
    m = p_ref[0]
    for t in range(1, p_ref.shape[0]):
        m = jnp.maximum(m, p_ref[t])
    o_ref[...] = m


def _pallas_window_max(p, tm=1024):
    """p:[KK, M, C] -> [M, C] elementwise max over the window axis (bf16)."""
    KK, M, C = p.shape
    tm_e = min(tm, _ru(M, 16))
    return pl.pallas_call(
        _window_max_kernel,
        out_shape=jax.ShapeDtypeStruct((M, C), p.dtype),
        grid=(pl.cdiv(M, tm_e),),
        in_specs=[pl.BlockSpec((KK, tm_e, C), lambda i: (0, i, 0))],
        out_specs=pl.BlockSpec((tm_e, C), lambda i: (i, 0)),
        compiler_params=pltpu.CompilerParams(
            dimension_semantics=("parallel",)),
    )(p)


def _gap_kernel(x_ref, o_ref, *, hw, tm, need_mask):
    j = pl.program_id(1)          # hoisted: never bind program_id inside pl.when

    @pl.when(j == 0)
    def _():
        o_ref[...] = jnp.zeros_like(o_ref)

    x = x_ref[0].astype(jnp.float32)                    # (tm, C)
    if need_mask:
        rows = j * tm + jax.lax.broadcasted_iota(jnp.int32, x.shape, 0)
        x = jnp.where(rows < hw, x, 0.0)
    o_ref[...] += jnp.sum(x, axis=0, keepdims=True)[None]


def _pallas_gap(x3d, tm=1024):
    """x:[N, HW, C] bf16 -> per-sample channel mean [N, C] f32 (single batched kernel)."""
    N, HW, C = x3d.shape
    tm_e = min(tm, _ru(HW, 16))
    out = pl.pallas_call(
        functools.partial(_gap_kernel, hw=HW, tm=tm_e,
                          need_mask=(HW % tm_e != 0)),
        out_shape=jax.ShapeDtypeStruct((N, 1, C), jnp.float32),
        grid=(N, pl.cdiv(HW, tm_e)),
        in_specs=[pl.BlockSpec((1, tm_e, C), lambda n, j: (n, j, 0))],
        out_specs=pl.BlockSpec((1, 1, C), lambda n, j: (n, 0, 0)),
        compiler_params=pltpu.CompilerParams(
            dimension_semantics=("parallel", "arbitrary")),
    )(x3d)
    return out[:, 0, :] / HW


def _linear_kernel(a_ref, b_ref, bias_ref, o_ref):
    o_ref[...] = (jnp.dot(a_ref[...], b_ref[...],
                          preferred_element_type=jnp.float32)
                  + bias_ref[...])


@jax.jit
def linear(x, w, bias):
    """FC layer: single matmul+bias kernel (no stats epilogue, full-array blocks)."""
    M, K = x.shape
    _, N = w.shape
    return pl.pallas_call(
        _linear_kernel,
        out_shape=jax.ShapeDtypeStruct((M, N), jnp.float32),
        grid=(1,),
        in_specs=[pl.BlockSpec((M, K), lambda i: (0, 0)),
                  pl.BlockSpec((K, N), lambda i: (0, 0)),
                  pl.BlockSpec((1, N), lambda i: (0, 0))],
        out_specs=pl.BlockSpec((M, N), lambda i: (0, 0)),
        compiler_params=pltpu.CompilerParams(
            dimension_semantics=("arbitrary",)),
    )(x.astype(jnp.bfloat16), w.astype(jnp.bfloat16), bias.reshape(1, N))


# ----------------------------------------------------------------------------
# NN layers (thin jitted wrappers around the Pallas kernels)
# ----------------------------------------------------------------------------
def _window_slices(x, kh, kw, stride, pad, pad_value):
    N, H, W, C = x.shape
    xp = jnp.pad(x, ((0, 0), (pad, pad), (pad, pad), (0, 0)),
                 constant_values=pad_value)
    OH = (H + 2 * pad - kh) // stride + 1
    OW = (W + 2 * pad - kw) // stride + 1
    cols = []
    for di in range(kh):
        for dj in range(kw):
            cols.append(xp[:, di:di + stride * (OH - 1) + 1:stride,
                           dj:dj + stride * (OW - 1) + 1:stride, :])
    return cols, OH, OW


@functools.partial(jax.jit, static_argnames=("stride", "pad", "relu"))
def conv_bn(x, w, gamma, beta, residual=None, *, stride, pad, relu):
    """Conv2d(bias=False) + training-mode BatchNorm2d (+residual) (+ReLU).

    bf16 operands, f32 MXU accumulation, BN statistics fused into the matmul
    epilogue, bf16 activations out.  K padding to a multiple of 128 is baked
    into the im2col concat (no separate full-array pad pass).
    """
    # TODO(synk): the im2col matrix (KH*KW x activation volume) is still
    # materialized in HBM; folding the taps into the matmul reduction via
    # manual DMA of shifted windows would remove that traffic entirely.
    N, H, W, Cin = x.shape
    KH, KW, _, Cout = w.shape
    xb = x.astype(jnp.bfloat16)
    K = KH * KW * Cin
    Kp = _ru(K, 128)

    if KH == 1 and KW == 1 and pad == 0:
        xs = xb[:, ::stride, ::stride, :] if stride > 1 else xb
        OH, OW = xs.shape[1], xs.shape[2]
        parts = [xs]
    else:
        parts, OH, OW = _window_slices(xb, KH, KW, stride, pad, 0.0)
    if Kp != K:
        parts = parts + [jnp.zeros((N, OH, OW, Kp - K), jnp.bfloat16)]
    m = N * OH * OW
    if len(parts) > 1:
        a = jnp.concatenate(parts, axis=-1).reshape(m, Kp)
    else:
        a = parts[0].reshape(m, Kp)

    b = w.reshape(K, Cout).astype(jnp.bfloat16)
    if Kp != K:
        b = jnp.pad(b, ((0, Kp - K), (0, 0)))           # tiny (weight only)

    y, s, sq = _pallas_matmul_stats(a, b)
    mean = jnp.sum(s, axis=(0, 1)) / m
    # TODO(synk): E[x^2]-E[x]^2 in f32 can cancel for large-mean conv outputs;
    # switch to a shifted/Welford accumulation if accuracy drifts.
    var = jnp.maximum(jnp.sum(sq, axis=(0, 1)) / m - mean * mean, 0.0)
    scale = gamma * jax.lax.rsqrt(var + 1e-5)
    shift = beta - mean * scale
    r2d = None if residual is None else (
        residual.astype(jnp.bfloat16).reshape(m, Cout))
    out = _pallas_affine(y, scale, shift, residual=r2d, relu=relu)
    return out.reshape(N, OH, OW, Cout)


@jax.jit
def maxpool_3x3_s2_p1(x):
    N, H, W, C = x.shape
    xb = x.astype(jnp.bfloat16)
    cols, OH, OW = _window_slices(xb, 3, 3, 2, 1, -jnp.inf)
    M = N * OH * OW
    if C < 128 and 128 % C == 0 and (M * C) % 128 == 0:
        # Lane-dense view for sub-128-channel feature maps (e.g. C=64 stem):
        # full 128-lane loads/stores instead of masked partial stores.
        rows = (M * C) // 128
        p = jnp.stack([c.reshape(rows, 128) for c in cols], axis=0)
    else:
        p = jnp.stack([c.reshape(M, C) for c in cols], axis=0)
    y = _pallas_window_max(p)
    return y.reshape(N, OH, OW, C)


@jax.jit
def global_avg_pool(x):
    # NHWC -> [N, C] mean over (H, W)   (AdaptiveAvgPool2d((1,1)) + flatten)
    N, H, W, C = x.shape
    return _pallas_gap(x.reshape(N, H * W, C))


# ----------------------------------------------------------------------------
# Model forward (orchestration of the Pallas-backed layers, NHWC internally)
# ----------------------------------------------------------------------------
def basic_block_fwd(p, x):
    if "ds_conv" in p:
        identity = conv_bn(x, p["ds_conv"], p["ds_bn"]["gamma"],
                           p["ds_bn"]["beta"], stride=p["stride"], pad=0,
                           relu=False)
    else:
        identity = x
    out = conv_bn(x, p["conv1"], p["bn1"]["gamma"], p["bn1"]["beta"],
                  stride=p["stride"], pad=1, relu=True)
    out = conv_bn(out, p["conv2"], p["bn2"]["gamma"], p["bn2"]["beta"],
                  identity, stride=1, pad=1, relu=True)
    return out


def resnet_fwd(p, x):
    x = conv_bn(x, p["conv1"], p["bn1"]["gamma"], p["bn1"]["beta"],
                stride=2, pad=3, relu=True)
    x = maxpool_3x3_s2_p1(x)
    for layer in p["layers"][:3]:
        for blk in layer:
            x = basic_block_fwd(blk, x)
    # Reference ResNet.forward: x_last2 = layer4[0:1](x); x_last = layer4[2](x_last2)
    # (block 1 of layer4 is constructed but skipped).
    x_last2 = basic_block_fwd(p["layers"][3][0], x)
    x_last = basic_block_fwd(p["layers"][3][2], x_last2)
    feat = global_avg_pool(x_last)
    logits = linear(feat, p["fc_w"], p["fc_b"])
    return x_last2, x_last, logits


@functools.partial(jax.jit, static_argnames=("local_size", "fm_stride"))
def aolm_local_images(x, x_last, x_last2, *, local_size, fm_stride):
    """Device-side AOLM bounding box + crop + bilinear (align_corners) resize.

    TODO(synk): the reference calls an external AOLM() (skimage connected-
    component analysis, not defined in the provided source); this deterministic
    on-device stand-in uses the bounding box of the intersected activation masks.
    """
    B, H, W, _ = x.shape
    A = jnp.sum(x_last.astype(jnp.float32), axis=-1)
    M0 = A > jnp.mean(A, axis=(1, 2), keepdims=True)
    A1 = jnp.sum(x_last2.astype(jnp.float32), axis=-1)
    M1 = A1 > jnp.mean(A1, axis=(1, 2), keepdims=True)
    inter = jnp.logical_and(M0, M1)

    def bbox(m):
        fh, fw = m.shape
        anyr = jnp.any(m, axis=1)
        anyc = jnp.any(m, axis=0)
        nonempty = jnp.any(m)
        r0 = jnp.where(nonempty, jnp.argmax(anyr), 0)
        r1 = jnp.where(nonempty, fh - 1 - jnp.argmax(anyr[::-1]), fh - 1)
        c0 = jnp.where(nonempty, jnp.argmax(anyc), 0)
        c1 = jnp.where(nonempty, fw - 1 - jnp.argmax(anyc[::-1]), fw - 1)
        return r0, r1, c0, c1

    r0, r1, c0, c1 = jax.vmap(bbox)(inter)
    x0 = jnp.maximum(r0 * fm_stride - 1, 0)
    x1 = jnp.minimum((r1 + 1) * fm_stride - 1, H - 1)
    y0 = jnp.maximum(c0 * fm_stride - 1, 0)
    y1 = jnp.minimum((c1 + 1) * fm_stride - 1, W - 1)

    tt = jnp.arange(local_size, dtype=jnp.float32)

    def resize_one(img, a0, a1, b0, b1):
        def coords(lo, hi, n):
            span = (hi - lo).astype(jnp.float32)
            pos = lo.astype(jnp.float32) + tt * span / jnp.float32(local_size - 1)
            i0 = jnp.clip(jnp.floor(pos).astype(jnp.int32), 0, n - 1)
            i1 = jnp.minimum(i0 + 1, hi)
            w = pos - i0.astype(jnp.float32)
            return i0, i1, w

        r0i, r1i, wr = coords(a0, a1, H)
        c0i, c1i, wc = coords(b0, b1, W)
        rows = (img[r0i, :, :] * (1.0 - wr)[:, None, None]
                + img[r1i, :, :] * wr[:, None, None])
        out = (rows[:, c0i, :] * (1.0 - wc)[None, :, None]
               + rows[:, c1i, :] * wc[None, :, None])
        return out

    return jax.vmap(resize_one)(x, x0, x1, y0, y1)


LOCAL_IMG_SIZE = 480  # hard-coded in the reference ResNet50_AOLM.forward


def resnet50_aolm_fwd(p, x, local_size=LOCAL_IMG_SIZE):
    # x: NHWC
    x_last2, x_last, x_linear1 = resnet_fwd(p["res1"], x)
    fm_stride = x.shape[1] // x_last.shape[1]
    local_imgs = aolm_local_images(x, x_last, x_last2,
                                   local_size=local_size, fm_stride=fm_stride)
    _, x_last_b, x_linear2 = resnet_fwd(p["res2"], local_imgs)
    return x_linear1, x_linear2, x_last_b


def alom_resnet_three_part_alone_fwd(params, x1, x2, x3,
                                     local_size=LOCAL_IMG_SIZE):
    lins, feats = [], []
    for name, xin in (("res1", x1), ("res2", x2), ("res3", x3)):
        x_nhwc = jnp.transpose(xin, (0, 2, 3, 1))        # NCHW -> NHWC
        lin, _, xlast = resnet50_aolm_fwd(params[name], x_nhwc, local_size)
        lins.append(lin)
        feats.append(global_avg_pool(xlast))
    feat = jnp.concatenate(feats, axis=1)                # [B, 3*512]
    logits = linear(feat, params["fc_w"], params["fc_b"])
    return lins[0], lins[1], lins[2], logits


# ----------------------------------------------------------------------------
# Deterministic parameter initialization (matches module shapes / init scheme)
# ----------------------------------------------------------------------------
class _KeyGen:
    def __init__(self, seed):
        self._key = jax.random.PRNGKey(seed)

    def __call__(self):
        self._key, sub = jax.random.split(self._key)
        return sub


def init_conv(kg, kh, kw, cin, cout):
    std = math.sqrt(2.0 / (kh * kw * cout))              # kaiming normal, fan_out, relu
    return std * jax.random.normal(kg(), (kh, kw, cin, cout), jnp.float32)


def init_bn(c):
    return {"gamma": jnp.ones((c,), jnp.float32),
            "beta": jnp.zeros((c,), jnp.float32)}


def init_linear(kg, cin, cout):
    bound = 1.0 / math.sqrt(cin)
    w = jax.random.uniform(kg(), (cin, cout), jnp.float32, -bound, bound)
    b = jax.random.uniform(kg(), (cout,), jnp.float32, -bound, bound)
    return w, b


def init_basic_block(kg, cin, cout, stride, downsample):
    p = {"stride": stride,
         "conv1": init_conv(kg, 3, 3, cin, cout), "bn1": init_bn(cout),
         "conv2": init_conv(kg, 3, 3, cout, cout), "bn2": init_bn(cout)}
    if downsample:
        p["ds_conv"] = init_conv(kg, 1, 1, cin, cout)
        p["ds_bn"] = init_bn(cout)
    return p


def init_resnet(kg, blocks_num, num_classes):
    p = {"conv1": init_conv(kg, 7, 7, 3, 64), "bn1": init_bn(64)}
    in_ch = 64
    layers = []
    for li, (ch, n) in enumerate(zip((64, 128, 256, 512), blocks_num)):
        stride = 1 if li == 0 else 2
        ds = (stride != 1) or (in_ch != ch)
        blocks = [init_basic_block(kg, in_ch, ch, stride, ds)]
        in_ch = ch
        for _ in range(1, n):
            blocks.append(init_basic_block(kg, in_ch, ch, 1, False))
        layers.append(blocks)
    p["layers"] = layers
    p["fc_w"], p["fc_b"] = init_linear(kg, 512, num_classes)
    return p


def init_alom_three(kg, blocks_num, num_classes):
    params = {}
    for name in ("res1", "res2", "res3"):
        params[name] = {"res1": init_resnet(kg, blocks_num, num_classes),
                        "res2": init_resnet(kg, blocks_num, num_classes)}
    params["fc_w"], params["fc_b"] = init_linear(kg, 512 * 3, num_classes)
    return params


# ----------------------------------------------------------------------------
if __name__ == "__main__":
    num_classes = 10
    # layer4 must have >= 3 blocks because ResNet.forward indexes layer4[2];
    # other stages kept small for a quick synthetic run.
    blocks_num = (1, 1, 1, 3)

    kg = _KeyGen(0)
    params = init_alom_three(kg, blocks_num, num_classes)

    B, H, W = 2, 64, 64
    k1, k2, k3 = jax.random.split(jax.random.PRNGKey(0), 3)
    x1 = jax.random.normal(k1, (B, 3, H, W), jnp.float32)
    x2 = jax.random.normal(k2, (B, 3, H, W), jnp.float32)
    x3 = jax.random.normal(k3, (B, 3, H, W), jnp.float32)

    # The reference hard-codes 480x480 local crops (LOCAL_IMG_SIZE default kept);
    # the smoke test uses local_size=64 so the second backbone pass reuses the
    # first pass's compiled kernels and the whole run stays fast.
    l1, l2, l3, out = alom_resnet_three_part_alone_fwd(
        params, x1, x2, x3, local_size=64)
    jax.block_until_ready((l1, l2, l3, out))

    assert l1.shape == (B, num_classes)
    assert l2.shape == (B, num_classes)
    assert l3.shape == (B, num_classes)
    assert out.shape == (B, num_classes)
    assert all(bool(jnp.all(jnp.isfinite(t))) for t in (l1, l2, l3, out))
    print("KERNEL_OK")
</pallas_src>

<mosaic_0001>
module attributes {stable_mosaic.version = 11 : i64} {
  func.func @_mm_stats_kernel(%arg0: i32, %arg1: i32, %arg2: i32, %arg3: memref<512x256xbf16, #tpu.memory_space<vmem>>, %arg4: memref<256x64xbf16, #tpu.memory_space<vmem>>, %arg5: memref<512x64xbf16, #tpu.memory_space<vmem>>, %arg6: memref<1x1x64xf32, #tpu.memory_space<vmem>>, %arg7: memref<1x1x64xf32, #tpu.memory_space<vmem>>, %arg8: memref<512x64xf32, #tpu.memory_space<vmem>>) attributes {dimension_semantics = [#tpu.dimension_semantics<parallel>, #tpu.dimension_semantics<parallel>, #tpu.dimension_semantics<arbitrary>], iteration_bounds = array<i64: 4, 1, 1>, scalar_prefetch = 0 : i64, scratch_operands = 1 : i64, tpu.core_type = #tpu.core_type<tc>, window_params = [{transform_indices = @transform_0, window_bounds = array<i64: 512, 256>}, {transform_indices = @transform_1, window_bounds = array<i64: 256, 64>}, {transform_indices = @transform_2, window_bounds = array<i64: 512, 64>}, {transform_indices = @transform_3, window_bounds = array<i64: 1, 1, 64>}, {transform_indices = @transform_4, window_bounds = array<i64: 1, 1, 64>}]} {
    %c0_i32 = arith.constant 0 : i32
    %0 = arith.cmpi eq, %arg2, %c0_i32 : i32
    %1 = arith.extui %0 : i1 to i32
    %c0_i32_0 = arith.constant 0 : i32
    %2 = arith.cmpi ne, %1, %c0_i32_0 : i32
    scf.if %2 {
      %cst_10 = arith.constant 0.000000e+00 : f32
      %12 = vector.broadcast %cst_10 : f32 to vector<512x64xf32>
      %c0_11 = arith.constant 0 : index
      %c0_12 = arith.constant 0 : index
      %13 = vector.load %arg8[%c0_11, %c0_12] : memref<512x64xf32, #tpu.memory_space<vmem>>, vector<512x64xf32>
      tpu.vector_store %arg8[%c0_11, %c0_12], %12 {strides = array<i32>} : memref<512x64xf32, #tpu.memory_space<vmem>>, vector<512x64xf32>,
    } else {
    }
    %c0 = arith.constant 0 : index
    %c0_1 = arith.constant 0 : index
    %3 = vector.load %arg8[%c0, %c0_1] : memref<512x64xf32, #tpu.memory_space<vmem>>, vector<512x64xf32>
    %c0_2 = arith.constant 0 : index
    %c0_3 = arith.constant 0 : index
    %4 = vector.load %arg3[%c0_2, %c0_3] : memref<512x256xbf16, #tpu.memory_space<vmem>>, vector<512x256xbf16>
    %c0_4 = arith.constant 0 : index
    %c0_5 = arith.constant 0 : index
    %5 = vector.load %arg4[%c0_4, %c0_5] : memref<256x64xbf16, #tpu.memory_space<vmem>>, vector<256x64xbf16>
    %cst = arith.constant dense<0.000000e+00> : vector<512x64xf32>
    %6 = tpu.matmul %4, %5, %cst {dimension_numbers = #tpu.dot_dimension_numbers<[1], [0], [0], [1], [0, 0, 1, 1], [], []>} : vector<512x256xbf16>, vector<256x64xbf16>, vector<512x64xf32> -> vector<512x64xf32>
    %7 = arith.addf %3, %6 : vector<512x64xf32>
    %c0_6 = arith.constant 0 : index
    %c0_7 = arith.constant 0 : index
    %8 = vector.load %arg8[%c0_6, %c0_7] : memref<512x64xf32, #tpu.memory_space<vmem>>, vector<512x64xf32>
    tpu.vector_store %arg8[%c0_6, %c0_7], %7 {strides = array<i32>} : memref<512x64xf32, #tpu.memory_space<vmem>>, vector<512x64xf32>,
    %c0_i32_8 = arith.constant 0 : i32
    %9 = arith.cmpi eq, %arg2, %c0_i32_8 : i32
    %10 = arith.extui %9 : i1 to i32
    %c0_i32_9 = arith.constant 0 : i32
    %11 = arith.cmpi ne, %10, %c0_i32_9 : i32
    scf.if %11 {
      %c0_10 = arith.constant 0 : index
      %c0_11 = arith.constant 0 : index
      %12 = vector.load %arg8[%c0_10, %c0_11] : memref<512x64xf32, #tpu.memory_space<vmem>>, vector<512x64xf32>
      %cst_12 = arith.constant dense<0.000000e+00> : vector<64xf32>
      %13 = vector.multi_reduction <add>, %12, %cst_12 [0] : vector<512x64xf32> to vector<64xf32>
      %14 = vector.shape_cast %13 : vector<64xf32> to vector<1x64xf32>
      %15 = vector.shape_cast %14 : vector<1x64xf32> to vector<1x1x64xf32>
      %c0_13 = arith.constant 0 : index
      %c0_14 = arith.constant 0 : index
      %c0_15 = arith.constant 0 : index
      %16 = vector.load %arg6[%c0_13, %c0_14, %c0_15] : memref<1x1x64xf32, #tpu.memory_space<vmem>>, vector<1x1x64xf32>
      tpu.vector_store %arg6[%c0_13, %c0_14, %c0_15], %15 {strides = array<i32>} : memref<1x1x64xf32, #tpu.memory_space<vmem>>, vector<1x1x64xf32>,
      %17 = arith.mulf %12, %12 : vector<512x64xf32>
      %cst_16 = arith.constant dense<0.000000e+00> : vector<64xf32>
      %18 = vector.multi_reduction <add>, %17, %cst_16 [0] : vector<512x64xf32> to vector<64xf32>
      %19 = vector.shape_cast %18 : vector<64xf32> to vector<1x64xf32>
      %20 = vector.shape_cast %19 : vector<1x64xf32> to vector<1x1x64xf32>
      %c0_17 = arith.constant 0 : index
      %c0_18 = arith.constant 0 : index
      %c0_19 = arith.constant 0 : index
      %21 = vector.load %arg7[%c0_17, %c0_18, %c0_19] : memref<1x1x64xf32, #tpu.memory_space<vmem>>, vector<1x1x64xf32>
      tpu.vector_store %arg7[%c0_17, %c0_18, %c0_19], %20 {strides = array<i32>} : memref<1x1x64xf32, #tpu.memory_space<vmem>>, vector<1x1x64xf32>,
      %22 = arith.truncf %12 : vector<512x64xf32> to vector<512x64xbf16>
      %c0_20 = arith.constant 0 : index
      %c0_21 = arith.constant 0 : index
      %23 = vector.load %arg5[%c0_20, %c0_21] : memref<512x64xbf16, #tpu.memory_space<vmem>>, vector<512x64xbf16>
      tpu.vector_store %arg5[%c0_20, %c0_21], %22 {strides = array<i32>} : memref<512x64xbf16, #tpu.memory_space<vmem>>, vector<512x64xbf16>,
    } else {
    }
    return
  }
  func.func @transform_0(%arg0: i32, %arg1: i32, %arg2: i32) -> (i32, i32) {
    %c0_i32 = arith.constant 0 : i32
    return %arg0, %arg2 : i32, i32
  }
  func.func @transform_1(%arg0: i32, %arg1: i32, %arg2: i32) -> (i32, i32) {
    %c0_i32 = arith.constant 0 : i32
    return %arg2, %arg1 : i32, i32
  }
  func.func @transform_2(%arg0: i32, %arg1: i32, %arg2: i32) -> (i32, i32) {
    %c0_i32 = arith.constant 0 : i32
    return %arg0, %arg1 : i32, i32
  }
  func.func @transform_3(%arg0: i32, %arg1: i32, %arg2: i32) -> (i32, i32, i32) {
    %c0_i32 = arith.constant 0 : i32
    %c0_i32_0 = arith.constant 0 : i32
    return %arg0, %c0_i32, %arg1 : i32, i32, i32
  }
  func.func @transform_4(%arg0: i32, %arg1: i32, %arg2: i32) -> (i32, i32, i32) {
    %c0_i32 = arith.constant 0 : i32
    %c0_i32_0 = arith.constant 0 : i32
    return %arg0, %c0_i32, %arg1 : i32, i32, i32
  }
}

module attributes {stable_mosaic.version = 11 : i64} {
  func.func @_affine_kernel(%arg0: i32, %arg1: memref<1024x64xbf16, #tpu.memory_space<vmem>>, %arg2: memref<1x64xf32, #tpu.memory_space<vmem>>, %arg3: memref<1x64xf32, #tpu.memory_space<vmem>>, %arg4: memref<1024x64xbf16, #tpu.memory_space<vmem>>) attributes {dimension_semantics = [#tpu.dimension_semantics<parallel>], iteration_bounds = array<i64: 2>, scalar_prefetch = 0 : i64, scratch_operands = 0 : i64, tpu.core_type = #tpu.core_type<tc>, window_params = [{transform_indices = @transform_0, window_bounds = array<i64: 1024, 64>}, {pipeline_mode = #tpu.pipeline_mode<synchronous>, transform_indices = @transform_1, window_bounds = array<i64: 1, 64>}, {pipeline_mode = #tpu.pipeline_mode<synchronous>, transform_indices = @transform_2, window_bounds = array<i64: 1, 64>}, {transform_indices = @transform_3, window_bounds = array<i64: 1024, 64>}]} {
    %c0 = arith.constant 0 : index
    %c0_0 = arith.constant 0 : index
    %0 = vector.load %arg1[%c0, %c0_0] : memref<1024x64xbf16, #tpu.memory_space<vmem>>, vector<1024x64xbf16>
    %1 = arith.extf %0 : vector<1024x64xbf16> to vector<1024x64xf32>
    %c0_1 = arith.constant 0 : index
    %c0_2 = arith.constant 0 : index
    %2 = vector.load %arg2[%c0_1, %c0_2] : memref<1x64xf32, #tpu.memory_space<vmem>>, vector<1x64xf32>
    %3 = vector.broadcast %2 : vector<1x64xf32> to vector<1024x64xf32>
    %4 = arith.mulf %1, %3 : vector<1024x64xf32>
    %c0_3 = arith.constant 0 : index
    %c0_4 = arith.constant 0 : index
    %5 = vector.load %arg3[%c0_3, %c0_4] : memref<1x64xf32, #tpu.memory_space<vmem>>, vector<1x64xf32>
    %6 = vector.broadcast %5 : vector<1x64xf32> to vector<1024x64xf32>
    %7 = arith.addf %4, %6 : vector<1024x64xf32>
    %cst = arith.constant 0.000000e+00 : f32
    %8 = vector.broadcast %cst : f32 to vector<1024x64xf32>
    %9 = arith.maximumf %7, %8 : vector<1024x64xf32>
    %10 = arith.truncf %9 : vector<1024x64xf32> to vector<1024x64xbf16>
    %c0_5 = arith.constant 0 : index
    %c0_6 = arith.constant 0 : index
    %11 = vector.load %arg4[%c0_5, %c0_6] : memref<1024x64xbf16, #tpu.memory_space<vmem>>, vector<1024x64xbf16>
    tpu.vector_store %arg4[%c0_5, %c0_6], %10 {strides = array<i32>} : memref<1024x64xbf16, #tpu.memory_space<vmem>>, vector<1024x64xbf16>,
    return
  }
  func.func @transform_0(%arg0: i32) -> (i32, i32) {
    %c0_i32 = arith.constant 0 : i32
    %c0_i32_0 = arith.constant 0 : i32
    return %arg0, %c0_i32 : i32, i32
  }
  func.func @transform_1(%arg0: i32) -> (i32, i32) {
    %c0_i32 = arith.constant 0 : i32
    %c0_i32_0 = arith.constant 0 : i32
    %c0_i32_1 = arith.constant 0 : i32
    return %c0_i32, %c0_i32_0 : i32, i32
  }
  func.func @transform_2(%arg0: i32) -> (i32, i32) {
    %c0_i32 = arith.constant 0 : i32
    %c0_i32_0 = arith.constant 0 : i32
    %c0_i32_1 = arith.constant 0 : i32
    return %c0_i32, %c0_i32_0 : i32, i32
  }
  func.func @transform_3(%arg0: i32) -> (i32, i32) {
    %c0_i32 = arith.constant 0 : i32
    %c0_i32_0 = arith.constant 0 : i32
    return %arg0, %c0_i32 : i32, i32
  }
}

</mosaic_0001>

<bundles_post_ra>
// kernel: conv_bn.3
= control target key start
LH: loop header
LB: loop body
LE: loop exit
PB: predicated region body
PF: predicated region fallthrough
CT: control target
= control target key end

     0   :  { %8 = vsyncpa [#allocation3], 0  ;;  %s2973_s0 = inlined_call_operand.vmem [shape: bf16[2048,64], index: 0, kind: input, shape index: {}]   ;;  %s2974_s1 = inlined_call_operand.vmem [shape: f32[1,64], index: 1, kind: input, shape index: {}]   ;;  %s2975_s2 = inlined_call_operand.vmem [shape: f32[1,64], index: 2, kind: input, shape index: {}]   ;;  %s2976_s3 = inlined_call_operand.hbm [shape: bf16[2048,64], index: 3, kind: output, shape index: {}]  }
   0x1   :  { %10 = vsyncpa [#allocation3 + $0x1], 0  ;;  %s2263_s12 = smov 0   ;;  %s2265_s13 = smov 0  }
   0x2   :  { %s2267_s14 = smov 0   ;;  %s2269_s15 = smov 0  }
   0x3 LB: > { %s2284_s16 = sadd.s32 4294967295, %s2238_s15   ;;  %s1543_s17 = sadd.s32 4294967294, %s2238_s15   ;;  %s2238_s15 = sphi %s2269_s15, %s2982_s15   ;;  %s2234_s14 = sphi %s2267_s14, %s2981_s14   ;;  %s2230_s13 = sphi %s2265_s13, %s2980_s13   ;;  %s2226_s12 = sphi %s2263_s12, %s2979_s12  }
   0x4   : > { %s2288_s18 = sadd.s32 1, %s2238_s15   ;;  %s91_s19 = sadd.s32 1, %s2234_s14 }
   0x5   : > { %s88_s20 = ssub.s32 %s2238_s15, %s2288_s18  ;;  %p101_p0 = scmp.ne.s32.totalorder %s2234_s14, %s2230_s13 }
   0x6   : > { %p89_p1 = scmp.eq.s32.totalorder %s88_s20, 0  ;;  %p102_p2 = scmp.eq.s32.totalorder %s2284_s16, 1 }
   0x7   : > { %p107_p3 = scmp.ne.s32.totalorder %s2230_s13, %s2226_s12  ;;  %p108_p4 = scmp.eq.s32.totalorder %s1543_s17, 1 }
   0x8   : > { %s2299_s21 = scalar_select %p89_p1, %s2234_s14, %s91_s19  }
   0x9   : > { %p2301_p5 = por %p102_p2, %p101_p0  ;;  %p2305_p6 = por %p108_p4, %p107_p3 }
   0xa   : > { %p1546_p7 = scmp.ge.s32.totalorder %s2238_s15, 1  ;;  %p141_p8 = scmp.lt.s32.totalorder %s2238_s15, 3 }
   0xc   : > { %p142_p9 = pnand %p1546_p7, %p141_p8 }
   0xd   : > { %s1548_s24 = sshll.u32 (!%p142_p9), %s2284_s16, 7  ;;  %v2320_v0 = vld [vmem:[%s2974_s1] ss:$0 sm:$0xff] (!%p142_p9)  ;;  %vm1338_vm0 = vcmask (!%p142_p9), 519168   ;;  %s162_s4 = sand.u32 (!%p142_p9), 1, %s2230_s13  }
   0xe   : > { %145 = sbr.rel (%p142_p9) target bundleno = 203 (0xcb), region = 32  ;;  %p166_p10 = scmp.lt.s32.totalorder (!%p142_p9), %s1548_s24, 255  ;;  %v2330_v9 = vld [vmem:[%s2975_s2] ss:$0 sm:$0xff] (!%p142_p9) }
   0xf   : > { %s2338_s7 = sshll.u32 (!%p142_p9), %s162_s4, 9  ;;  %s1813_s19 = sshll.u32 (!%p142_p9), %s2284_s16, 13 }
  0x10   : > { %s2357_s8 = scalar_lea.vmem (!%p142_p9), [#allocation2], %s2338_s7  ;;  %s2932_s26 = scalar_lea.sflag (!%p142_p9), [#allocation3], %s162_s4 }
  0x11   : > { %s1481_s20 = sshll.u32 (!%p142_p9), %s2357_s8, 4  ;;  %s2912_s20 = int_to_ptr.vmem [resolvable:$true] %s1481_s20 }
  0x12   : > { %s2176_s27 = scalar_lea.vmem (!%p142_p9), %s2912_s20, 8192 }
  0x13   : > { %p2177_p11 = scmp.ne.s32.totalorder (!%p142_p9), %s2912_s20, %s2176_s27 }
  0x15   : > { %s2984_s24 = smov (!%p166_p10, %s1548_s24), 255  ;;  %p2178_p12 = pnand %p2177_p11, %p2301_p5 }
  0x16   : > { %s1549_s25 = sshll.u32 %s2984_s24, 2 }
  0x17   : > { %s2315_s28 = scalar_lea.vmem %s2973_s0, %s1549_s25  ;;  %s2910_s25 = scalar_lea.hbm %s2976_s3, %s1813_s19 }
  0x18   : > { %v1815_v1 = vld [vmem:[%s2315_s28] sm:$0xff]   ;;  %v2070_v2 = vld [vmem:[%s2315_s28 + $0x8] sm:$0xff]   ;;  %v2071_v3 = vld [vmem:[%s2315_s28 + $0x10] sm:$0xff]   ;;  %p2179_p13 = pneg %p2178_p12 }
  0x19   : > { %v1816_v4 = vunpack.c.l.bf16 %v1815_v1  ;;  %v1817_v5 = vunpack.c.h.bf16 %v1815_v1  ;;  %v1820_v6 = vunpack.c.l.bf16 %v2070_v2  ;;  %v1821_v7 = vunpack.c.h.bf16 %v2070_v2  ;;  %v2072_v8 = vld [vmem:[%s2315_s28 + $0x18] sm:$0xff]   ;;  %v2073_v38 = vld [vmem:[%s2315_s28 + $0x20] sm:$0xff]   ;;  %v2074_v39 = vld [vmem:[%s2315_s28 + $0x28] sm:$0xff]  }
  0x1a   : > { %v1824_v10 = vunpack.c.l.bf16 %v2071_v3  ;;  %v1825_v11 = vunpack.c.h.bf16 %v2071_v3  ;;  %v1828_v12 = vunpack.c.l.bf16 %v2072_v8  ;;  %v1829_v13 = vunpack.c.h.bf16 %v2072_v8  ;;  %v2075_v44 = vld [vmem:[%s2315_s28 + $0x30] sm:$0xff]   ;;  %v2076_v45 = vld [vmem:[%s2315_s28 + $0x38] sm:$0xff]  }
  0x1b   : > { %v435_v14 = vmul.f32 %v1816_v4, %v2320_v0  ;;  %v436_v15 = vmul.f32 %v1817_v5, %v2320_v0  ;;  %v437_v16 = vmul.f32 %v1820_v6, %v2320_v0  ;;  %v438_v17 = vmul.f32 %v1821_v7, %v2320_v0 }
  0x1c   : > { %v439_v18 = vmul.f32 %v1824_v10, %v2320_v0  ;;  %v440_v19 = vmul.f32 %v1825_v11, %v2320_v0  ;;  %v441_v20 = vmul.f32 %v1828_v12, %v2320_v0  ;;  %v442_v21 = vmul.f32 %v1829_v13, %v2320_v0 }
  0x1d   : > { %v570_v22 = vadd.f32 %v2330_v9, %v435_v14  ;;  %v571_v23 = vadd.f32 %v2330_v9, %v436_v15  ;;  %v572_v24 = vadd.f32 %v2330_v9, %v437_v16  ;;  %v573_v25 = vadd.f32 %v2330_v9, %v438_v17 }
  0x1e   : > { %v574_v26 = vadd.f32 %v2330_v9, %v439_v18  ;;  %v575_v27 = vadd.f32 %v2330_v9, %v440_v19  ;;  %v576_v28 = vadd.f32 %v2330_v9, %v441_v20  ;;  %v577_v29 = vadd.f32 %v2330_v9, %v442_v21  ;;  %v2077_v20 = vld [vmem:[%s2315_s28 + $0x40] sm:$0xff]   ;;  %v2078_v21 = vld [vmem:[%s2315_s28 + $0x48] sm:$0xff]  }
  0x1f   : > { %v698_v30 = vmax.f32 %v570_v22, 0.0  ;;  %v699_v31 = vmax.f32 %v571_v23, 0.0  ;;  %v700_v32 = vmax.f32 %v572_v24, 0.0  ;;  %v701_v33 = vmax.f32 %v573_v25, 0.0 }
  0x20   : > { %v702_v34 = vmax.f32 %v574_v26, 0.0  ;;  %v703_v35 = vmax.f32 %v575_v27, 0.0  ;;  %v704_v36 = vmax.f32 %v576_v28, 0.0  ;;  %v705_v37 = vmax.f32 %v577_v29, 0.0  ;;  %v2079_v26 = vld [vmem:[%s2315_s28 + $0x50] sm:$0xff]   ;;  %v2080_v27 = vld [vmem:[%s2315_s28 + $0x58] sm:$0xff]  }
  0x21   : > { %v1685_v40 = vpack.c.bf16 %v698_v30, %v698_v30  ;;  %v1686_v41 = vpack.c.bf16 %v699_v31, %v699_v31  ;;  %v1687_v42 = vpack.c.bf16 %v700_v32, %v700_v32  ;;  %v1688_v43 = vpack.c.bf16 %v701_v33, %v701_v33 }
  0x22   : > { %v1689_v46 = vpack.c.bf16 %v702_v34, %v702_v34  ;;  %v1690_v47 = vpack.c.bf16 %v703_v35, %v703_v35  ;;  %v1691_v48 = vpack.c.bf16 %v704_v36, %v704_v36  ;;  %v1692_v49 = vpack.c.bf16 %v705_v37, %v705_v37 }
  0x23   : > { %1339 = vst.msk [vmem:[%s2357_s8] sm:$0xf] %vm1338_vm0, %v1685_v40  ;;  %1340 = vst.msk [vmem:[%s2357_s8 + $0x4] sm:$0xf] %vm1338_vm0, %v1686_v41  ;;  %v1832_v50 = vunpack.c.l.bf16 %v2073_v38  ;;  %v1833_v51 = vunpack.c.h.bf16 %v2073_v38  ;;  %v1836_v52 = vunpack.c.l.bf16 %v2074_v39  ;;  %v1837_v53 = vunpack.c.h.bf16 %v2074_v39 }
  0x24   : > { %1341 = vst.msk [vmem:[%s2357_s8 + $0x8] sm:$0xf] %vm1338_vm0, %v1687_v42  ;;  %1342 = vst.msk [vmem:[%s2357_s8 + $0xc] sm:$0xf] %vm1338_vm0, %v1688_v43  ;;  %v1840_v54 = vunpack.c.l.bf16 %v2075_v44  ;;  %v1841_v55 = vunpack.c.h.bf16 %v2075_v44  ;;  %v1844_v56 = vunpack.c.l.bf16 %v2076_v45  ;;  %v1845_v57 = vunpack.c.h.bf16 %v2076_v45 }
  0x25   : > { %1343 = vst.msk [vmem:[%s2357_s8 + $0x10] sm:$0xf] %vm1338_vm0, %v1689_v46  ;;  %1344 = vst.msk [vmem:[%s2357_s8 + $0x14] sm:$0xf] %vm1338_vm0, %v1690_v47  ;;  %v443_v58 = vmul.f32 %v1832_v50, %v2320_v0  ;;  %v444_v59 = vmul.f32 %v1833_v51, %v2320_v0  ;;  %v445_v60 = vmul.f32 %v1836_v52, %v2320_v0  ;;  %v1848_v32 = vunpack.c.l.bf16 %v2077_v20 }
  0x26   : > { %1345 = vst.msk [vmem:[%s2357_s8 + $0x18] sm:$0xf] %vm1338_vm0, %v1691_v48  ;;  %1346 = vst.msk [vmem:[%s2357_s8 + $0x1c] sm:$0xf] %vm1338_vm0, %v1692_v49  ;;  %v446_v61 = vmul.f32 %v1837_v53, %v2320_v0  ;;  %v447_v62 = vmul.f32 %v1840_v54, %v2320_v0  ;;  %v448_v63 = vmul.f32 %v1841_v55, %v2320_v0  ;;  %v1849_v33 = vunpack.c.h.bf16 %v2077_v20 }
  0x27   : > { %v449_v1 = vmul.f32 %v1844_v56, %v2320_v0  ;;  %v450_v2 = vmul.f32 %v1845_v57, %v2320_v0  ;;  %v578_v3 = vadd.f32 %v2330_v9, %v443_v58  ;;  %v579_v4 = vadd.f32 %v2330_v9, %v444_v59 }
  0x28   : > { %v580_v5 = vadd.f32 %v2330_v9, %v445_v60  ;;  %v581_v6 = vadd.f32 %v2330_v9, %v446_v61  ;;  %v582_v7 = vadd.f32 %v2330_v9, %v447_v62  ;;  %v583_v8 = vadd.f32 %v2330_v9, %v448_v63 }
  0x29   : > { %v584_v10 = vadd.f32 %v2330_v9, %v449_v1  ;;  %v585_v11 = vadd.f32 %v2330_v9, %v450_v2  ;;  %v706_v12 = vmax.f32 %v578_v3, 0.0  ;;  %v707_v13 = vmax.f32 %v579_v4, 0.0  ;;  %v2081_v1 = vld [vmem:[%s2315_s28 + $0x60] sm:$0xff]   ;;  %v2082_v2 = vld [vmem:[%s2315_s28 + $0x68] sm:$0xff]  }
  0x2a   : > { %v708_v14 = vmax.f32 %v580_v5, 0.0  ;;  %v709_v15 = vmax.f32 %v581_v6, 0.0  ;;  %v710_v16 = vmax.f32 %v582_v7, 0.0  ;;  %v711_v17 = vmax.f32 %v583_v8, 0.0  ;;  %v2083_v7 = vld [vmem:[%s2315_s28 + $0x70] sm:$0xff]   ;;  %v2084_v8 = vld [vmem:[%s2315_s28 + $0x78] sm:$0xff]  }
  0x2b   : > { %v712_v18 = vmax.f32 %v584_v10, 0.0  ;;  %v713_v19 = vmax.f32 %v585_v11, 0.0  ;;  %v1693_v22 = vpack.c.bf16 %v706_v12, %v706_v12  ;;  %v1694_v23 = vpack.c.bf16 %v707_v13, %v707_v13 }
  0x2c   : > { %v1695_v24 = vpack.c.bf16 %v708_v14, %v708_v14  ;;  %v1696_v25 = vpack.c.bf16 %v709_v15, %v709_v15  ;;  %v1697_v28 = vpack.c.bf16 %v710_v16, %v710_v16  ;;  %v1698_v29 = vpack.c.bf16 %v711_v17, %v711_v17 }
  0x2d   : > { %v1699_v30 = vpack.c.bf16 %v712_v18, %v712_v18  ;;  %v1700_v31 = vpack.c.bf16 %v713_v19, %v713_v19  ;;  %1347 = vst.msk [vmem:[%s2357_s8 + $0x20] sm:$0xf] %vm1338_vm0, %v1693_v22  ;;  %1348 = vst.msk [vmem:[%s2357_s8 + $0x24] sm:$0xf] %vm1338_vm0, %v1694_v23  ;;  %v1852_v34 = vunpack.c.l.bf16 %v2078_v21  ;;  %v1853_v35 = vunpack.c.h.bf16 %v2078_v21 }
  0x2e   : > { %1349 = vst.msk [vmem:[%s2357_s8 + $0x28] sm:$0xf] %vm1338_vm0, %v1695_v24  ;;  %1350 = vst.msk [vmem:[%s2357_s8 + $0x2c] sm:$0xf] %vm1338_vm0, %v1696_v25  ;;  %v1856_v36 = vunpack.c.l.bf16 %v2079_v26  ;;  %v1857_v37 = vunpack.c.h.bf16 %v2079_v26  ;;  %v1860_v38 = vunpack.c.l.bf16 %v2080_v27  ;;  %v1861_v39 = vunpack.c.h.bf16 %v2080_v27 }
  0x2f   : > { %1351 = vst.msk [vmem:[%s2357_s8 + $0x30] sm:$0xf] %vm1338_vm0, %v1697_v28  ;;  %1352 = vst.msk [vmem:[%s2357_s8 + $0x34] sm:$0xf] %vm1338_vm0, %v1698_v29  ;;  %v451_v40 = vmul.f32 %v1848_v32, %v2320_v0  ;;  %v452_v41 = vmul.f32 %v1849_v33, %v2320_v0  ;;  %v453_v42 = vmul.f32 %v1852_v34, %v2320_v0  ;;  %v1864_v14 = vunpack.c.l.bf16 %v2081_v1 }
  0x30   : > { %1353 = vst.msk [vmem:[%s2357_s8 + $0x38] sm:$0xf] %vm1338_vm0, %v1699_v30  ;;  %1354 = vst.msk [vmem:[%s2357_s8 + $0x3c] sm:$0xf] %vm1338_vm0, %v1700_v31  ;;  %v454_v43 = vmul.f32 %v1853_v35, %v2320_v0  ;;  %v455_v44 = vmul.f32 %v1856_v36, %v2320_v0  ;;  %v456_v45 = vmul.f32 %v1857_v37, %v2320_v0  ;;  %v1865_v15 = vunpack.c.h.bf16 %v2081_v1 }
  0x31   : > { %v457_v46 = vmul.f32 %v1860_v38, %v2320_v0  ;;  %v458_v47 = vmul.f32 %v1861_v39, %v2320_v0  ;;  %v586_v48 = vadd.f32 %v2330_v9, %v451_v40  ;;  %v587_v49 = vadd.f32 %v2330_v9, %v452_v41 }
  0x32   : > { %v588_v50 = vadd.f32 %v2330_v9, %v453_v42  ;;  %v589_v51 = vadd.f32 %v2330_v9, %v454_v43  ;;  %v590_v52 = vadd.f32 %v2330_v9, %v455_v44  ;;  %v591_v53 = vadd.f32 %v2330_v9, %v456_v45 }
  0x33   : > { %v592_v54 = vadd.f32 %v2330_v9, %v457_v46  ;;  %v593_v55 = vadd.f32 %v2330_v9, %v458_v47  ;;  %v714_v56 = vmax.f32 %v586_v48, 0.0  ;;  %v715_v57 = vmax.f32 %v587_v49, 0.0  ;;  %v2085_v46 = vld [vmem:[%s2315_s28 + $0x80] sm:$0xff]   ;;  %v2086_v47 = vld [vmem:[%s2315_s28 + $0x88] sm:$0xff]  }
  0x34   : > { %v716_v58 = vmax.f32 %v588_v50, 0.0  ;;  %v717_v59 = vmax.f32 %v589_v51, 0.0  ;;  %v718_v60 = vmax.f32 %v590_v52, 0.0  ;;  %v719_v61 = vmax.f32 %v591_v53, 0.0  ;;  %v2087_v52 = vld [vmem:[%s2315_s28 + $0x90] sm:$0xff]   ;;  %v2088_v53 = vld [vmem:[%s2315_s28 + $0x98] sm:$0xff]  }
  0x35   : > { %v720_v62 = vmax.f32 %v592_v54, 0.0  ;;  %v721_v63 = vmax.f32 %v593_v55, 0.0  ;;  %v1701_v3 = vpack.c.bf16 %v714_v56, %v714_v56  ;;  %v1702_v4 = vpack.c.bf16 %v715_v57, %v715_v57 }
  0x36   : > { %v1703_v5 = vpack.c.bf16 %v716_v58, %v716_v58  ;;  %v1704_v6 = vpack.c.bf16 %v717_v59, %v717_v59  ;;  %v1705_v10 = vpack.c.bf16 %v718_v60, %v718_v60  ;;  %v1706_v11 = vpack.c.bf16 %v719_v61, %v719_v61 }
  0x37   : > { %v1707_v12 = vpack.c.bf16 %v720_v62, %v720_v62  ;;  %v1708_v13 = vpack.c.bf16 %v721_v63, %v721_v63  ;;  %1355 = vst.msk [vmem:[%s2357_s8 + $0x40] sm:$0xf] %vm1338_vm0, %v1701_v3  ;;  %1356 = vst.msk [vmem:[%s2357_s8 + $0x44] sm:$0xf] %vm1338_vm0, %v1702_v4  ;;  %v1868_v16 = vunpack.c.l.bf16 %v2082_v2  ;;  %v1869_v17 = vunpack.c.h.bf16 %v2082_v2 }
  0x38   : > { %1357 = vst.msk [vmem:[%s2357_s8 + $0x48] sm:$0xf] %vm1338_vm0, %v1703_v5  ;;  %1358 = vst.msk [vmem:[%s2357_s8 + $0x4c] sm:$0xf] %vm1338_vm0, %v1704_v6  ;;  %v1872_v18 = vunpack.c.l.bf16 %v2083_v7  ;;  %v1873_v19 = vunpack.c.h.bf16 %v2083_v7  ;;  %v1876_v20 = vunpack.c.l.bf16 %v2084_v8  ;;  %v1877_v21 = vunpack.c.h.bf16 %v2084_v8 }
  0x39   : > { %1359 = vst.msk [vmem:[%s2357_s8 + $0x50] sm:$0xf] %vm1338_vm0, %v1705_v10  ;;  %1360 = vst.msk [vmem:[%s2357_s8 + $0x54] sm:$0xf] %vm1338_vm0, %v1706_v11  ;;  %v459_v22 = vmul.f32 %v1864_v14, %v2320_v0  ;;  %v460_v23 = vmul.f32 %v1865_v15, %v2320_v0  ;;  %v461_v24 = vmul.f32 %v1868_v16, %v2320_v0  ;;  %v1880_v58 = vunpack.c.l.bf16 %v2085_v46 }
  0x3a   : > { %1361 = vst.msk [vmem:[%s2357_s8 + $0x58] sm:$0xf] %vm1338_vm0, %v1707_v12  ;;  %1362 = vst.msk [vmem:[%s2357_s8 + $0x5c] sm:$0xf] %vm1338_vm0, %v1708_v13  ;;  %v462_v25 = vmul.f32 %v1869_v17, %v2320_v0  ;;  %v463_v26 = vmul.f32 %v1872_v18, %v2320_v0  ;;  %v464_v27 = vmul.f32 %v1873_v19, %v2320_v0  ;;  %v1881_v59 = vunpack.c.h.bf16 %v2085_v46 }
  0x3b   : > { %v465_v28 = vmul.f32 %v1876_v20, %v2320_v0  ;;  %v466_v29 = vmul.f32 %v1877_v21, %v2320_v0  ;;  %v594_v30 = vadd.f32 %v2330_v9, %v459_v22  ;;  %v595_v31 = vadd.f32 %v2330_v9, %v460_v23 }
  0x3c   : > { %v596_v32 = vadd.f32 %v2330_v9, %v461_v24  ;;  %v597_v33 = vadd.f32 %v2330_v9, %v462_v25  ;;  %v598_v34 = vadd.f32 %v2330_v9, %v463_v26  ;;  %v599_v35 = vadd.f32 %v2330_v9, %v464_v27 }
  0x3d   : > { %v600_v36 = vadd.f32 %v2330_v9, %v465_v28  ;;  %v601_v37 = vadd.f32 %v2330_v9, %v466_v29  ;;  %v722_v38 = vmax.f32 %v594_v30, 0.0  ;;  %v723_v39 = vmax.f32 %v595_v31, 0.0  ;;  %v2089_v28 = vld [vmem:[%s2315_s28 + $0xa0] sm:$0xff]   ;;  %v2090_v29 = vld [vmem:[%s2315_s28 + $0xa8] sm:$0xff]  }
  0x3e   : > { %v724_v40 = vmax.f32 %v596_v32, 0.0  ;;  %v725_v41 = vmax.f32 %v597_v33, 0.0  ;;  %v726_v42 = vmax.f32 %v598_v34, 0.0  ;;  %v727_v43 = vmax.f32 %v599_v35, 0.0  ;;  %v2091_v34 = vld [vmem:[%s2315_s28 + $0xb0] sm:$0xff]   ;;  %v2092_v35 = vld [vmem:[%s2315_s28 + $0xb8] sm:$0xff]  }
  0x3f   : > { %v728_v44 = vmax.f32 %v600_v36, 0.0  ;;  %v729_v45 = vmax.f32 %v601_v37, 0.0  ;;  %v1709_v48 = vpack.c.bf16 %v722_v38, %v722_v38  ;;  %v1710_v49 = vpack.c.bf16 %v723_v39, %v723_v39 }
  0x40   : > { %v1711_v50 = vpack.c.bf16 %v724_v40, %v724_v40  ;;  %v1712_v51 = vpack.c.bf16 %v725_v41, %v725_v41  ;;  %v1713_v54 = vpack.c.bf16 %v726_v42, %v726_v42  ;;  %v1714_v55 = vpack.c.bf16 %v727_v43, %v727_v43 }
  0x41   : > { %v1715_v56 = vpack.c.bf16 %v728_v44, %v728_v44  ;;  %v1716_v57 = vpack.c.bf16 %v729_v45, %v729_v45  ;;  %1363 = vst.msk [vmem:[%s2357_s8 + $0x60] sm:$0xf] %vm1338_vm0, %v1709_v48  ;;  %1364 = vst.msk [vmem:[%s2357_s8 + $0x64] sm:$0xf] %vm1338_vm0, %v1710_v49  ;;  %v1884_v60 = vunpack.c.l.bf16 %v2086_v47  ;;  %v1885_v61 = vunpack.c.h.bf16 %v2086_v47 }
  0x42   : > { %1365 = vst.msk [vmem:[%s2357_s8 + $0x68] sm:$0xf] %vm1338_vm0, %v1711_v50  ;;  %1366 = vst.msk [vmem:[%s2357_s8 + $0x6c] sm:$0xf] %vm1338_vm0, %v1712_v51  ;;  %v1888_v62 = vunpack.c.l.bf16 %v2087_v52  ;;  %v1889_v63 = vunpack.c.h.bf16 %v2087_v52  ;;  %v1892_v1 = vunpack.c.l.bf16 %v2088_v53  ;;  %v1893_v2 = vunpack.c.h.bf16 %v2088_v53 }
  0x43   : > { %1367 = vst.msk [vmem:[%s2357_s8 + $0x70] sm:$0xf] %vm1338_vm0, %v1713_v54  ;;  %1368 = vst.msk [vmem:[%s2357_s8 + $0x74] sm:$0xf] %vm1338_vm0, %v1714_v55  ;;  %v467_v3 = vmul.f32 %v1880_v58, %v2320_v0  ;;  %v468_v4 = vmul.f32 %v1881_v59, %v2320_v0  ;;  %v469_v5 = vmul.f32 %v1884_v60, %v2320_v0  ;;  %v1896_v40 = vunpack.c.l.bf16 %v2089_v28 }
  0x44   : > { %1369 = vst.msk [vmem:[%s2357_s8 + $0x78] sm:$0xf] %vm1338_vm0, %v1715_v56  ;;  %1370 = vst.msk [vmem:[%s2357_s8 + $0x7c] sm:$0xf] %vm1338_vm0, %v1716_v57  ;;  %v470_v6 = vmul.f32 %v1885_v61, %v2320_v0  ;;  %v471_v7 = vmul.f32 %v1888_v62, %v2320_v0  ;;  %v472_v8 = vmul.f32 %v1889_v63, %v2320_v0  ;;  %v1897_v41 = vunpack.c.h.bf16 %v2089_v28 }
  0x45   : > { %v473_v10 = vmul.f32 %v1892_v1, %v2320_v0  ;;  %v474_v11 = vmul.f32 %v1893_v2, %v2320_v0  ;;  %v602_v12 = vadd.f32 %v2330_v9, %v467_v3  ;;  %v603_v13 = vadd.f32 %v2330_v9, %v468_v4 }
  0x46   : > { %v604_v14 = vadd.f32 %v2330_v9, %v469_v5  ;;  %v605_v15 = vadd.f32 %v2330_v9, %v470_v6  ;;  %v606_v16 = vadd.f32 %v2330_v9, %v471_v7  ;;  %v607_v17 = vadd.f32 %v2330_v9, %v472_v8 }
  0x47   : > { %v608_v18 = vadd.f32 %v2330_v9, %v473_v10  ;;  %v609_v19 = vadd.f32 %v2330_v9, %v474_v11  ;;  %v730_v20 = vmax.f32 %v602_v12, 0.0  ;;  %v731_v21 = vmax.f32 %v603_v13, 0.0  ;;  %v2093_v10 = vld [vmem:[%s2315_s28 + $0xc0] sm:$0xff]   ;;  %v2094_v11 = vld [vmem:[%s2315_s28 + $0xc8] sm:$0xff]  }
  0x48   : > { %v732_v22 = vmax.f32 %v604_v14, 0.0  ;;  %v733_v23 = vmax.f32 %v605_v15, 0.0  ;;  %v734_v24 = vmax.f32 %v606_v16, 0.0  ;;  %v735_v25 = vmax.f32 %v607_v17, 0.0  ;;  %v2095_v16 = vld [vmem:[%s2315_s28 + $0xd0] sm:$0xff]   ;;  %v2096_v17 = vld [vmem:[%s2315_s28 + $0xd8] sm:$0xff]  }
  0x49   : > { %v736_v26 = vmax.f32 %v608_v18, 0.0  ;;  %v737_v27 = vmax.f32 %v609_v19, 0.0  ;;  %v1717_v30 = vpack.c.bf16 %v730_v20, %v730_v20  ;;  %v1718_v31 = vpack.c.bf16 %v731_v21, %v731_v21 }
  0x4a   : > { %v1719_v32 = vpack.c.bf16 %v732_v22, %v732_v22  ;;  %v1720_v33 = vpack.c.bf16 %v733_v23, %v733_v23  ;;  %v1721_v36 = vpack.c.bf16 %v734_v24, %v734_v24  ;;  %v1722_v37 = vpack.c.bf16 %v735_v25, %v735_v25 }
  0x4b   : > { %v1723_v38 = vpack.c.bf16 %v736_v26, %v736_v26  ;;  %v1724_v39 = vpack.c.bf16 %v737_v27, %v737_v27  ;;  %1371 = vst.msk [vmem:[%s2357_s8 + $0x80] sm:$0xf] %vm1338_vm0, %v1717_v30  ;;  %1372 = vst.msk [vmem:[%s2357_s8 + $0x84] sm:$0xf] %vm1338_vm0, %v1718_v31  ;;  %v1900_v42 = vunpack.c.l.bf16 %v2090_v29  ;;  %v1901_v43 = vunpack.c.h.bf16 %v2090_v29 }
  0x4c   : > { %1373 = vst.msk [vmem:[%s2357_s8 + $0x88] sm:$0xf] %vm1338_vm0, %v1719_v32  ;;  %1374 = vst.msk [vmem:[%s2357_s8 + $0x8c] sm:$0xf] %vm1338_vm0, %v1720_v33  ;;  %v1904_v44 = vunpack.c.l.bf16 %v2091_v34  ;;  %v1905_v45 = vunpack.c.h.bf16 %v2091_v34  ;;  %v1908_v46 = vunpack.c.l.bf16 %v2092_v35  ;;  %v1909_v47 = vunpack.c.h.bf16 %v2092_v35 }
  0x4d   : > { %1375 = vst.msk [vmem:[%s2357_s8 + $0x90] sm:$0xf] %vm1338_vm0, %v1721_v36  ;;  %1376 = vst.msk [vmem:[%s2357_s8 + $0x94] sm:$0xf] %vm1338_vm0, %v1722_v37  ;;  %v475_v48 = vmul.f32 %v1896_v40, %v2320_v0  ;;  %v476_v49 = vmul.f32 %v1897_v41, %v2320_v0  ;;  %v477_v50 = vmul.f32 %v1900_v42, %v2320_v0  ;;  %v1912_v22 = vunpack.c.l.bf16 %v2093_v10 }
  0x4e   : > { %1377 = vst.msk [vmem:[%s2357_s8 + $0x98] sm:$0xf] %vm1338_vm0, %v1723_v38  ;;  %1378 = vst.msk [vmem:[%s2357_s8 + $0x9c] sm:$0xf] %vm1338_vm0, %v1724_v39  ;;  %v478_v51 = vmul.f32 %v1901_v43, %v2320_v0  ;;  %v479_v52 = vmul.f32 %v1904_v44, %v2320_v0  ;;  %v480_v53 = vmul.f32 %v1905_v45, %v2320_v0  ;;  %v1913_v23 = vunpack.c.h.bf16 %v2093_v10 }
  0x4f   : > { %v481_v54 = vmul.f32 %v1908_v46, %v2320_v0  ;;  %v482_v55 = vmul.f32 %v1909_v47, %v2320_v0  ;;  %v610_v56 = vadd.f32 %v2330_v9, %v475_v48  ;;  %v611_v57 = vadd.f32 %v2330_v9, %v476_v49 }
  0x50   : > { %v612_v58 = vadd.f32 %v2330_v9, %v477_v50  ;;  %v613_v59 = vadd.f32 %v2330_v9, %v478_v51  ;;  %v614_v60 = vadd.f32 %v2330_v9, %v479_v52  ;;  %v615_v61 = vadd.f32 %v2330_v9, %v480_v53 }
  0x51   : > { %v616_v62 = vadd.f32 %v2330_v9, %v481_v54  ;;  %v617_v63 = vadd.f32 %v2330_v9, %v482_v55  ;;  %v738_v1 = vmax.f32 %v610_v56, 0.0  ;;  %v739_v2 = vmax.f32 %v611_v57, 0.0  ;;  %v2097_v54 = vld [vmem:[%s2315_s28 + $0xe0] sm:$0xff]   ;;  %v2098_v55 = vld [vmem:[%s2315_s28 + $0xe8] sm:$0xff]  }
  0x52   : > { %v740_v3 = vmax.f32 %v612_v58, 0.0  ;;  %v741_v4 = vmax.f32 %v613_v59, 0.0  ;;  %v742_v5 = vmax.f32 %v614_v60, 0.0  ;;  %v743_v6 = vmax.f32 %v615_v61, 0.0  ;;  %v2099_v60 = vld [vmem:[%s2315_s28 + $0xf0] sm:$0xff]   ;;  %v2100_v61 = vld [vmem:[%s2315_s28 + $0xf8] sm:$0xff]  }
  0x53   : > { %v744_v7 = vmax.f32 %v616_v62, 0.0  ;;  %v745_v8 = vmax.f32 %v617_v63, 0.0  ;;  %v1725_v12 = vpack.c.bf16 %v738_v1, %v738_v1  ;;  %v1726_v13 = vpack.c.bf16 %v739_v2, %v739_v2 }
  0x54   : > { %v1727_v14 = vpack.c.bf16 %v740_v3, %v740_v3  ;;  %v1728_v15 = vpack.c.bf16 %v741_v4, %v741_v4  ;;  %v1729_v18 = vpack.c.bf16 %v742_v5, %v742_v5  ;;  %v1730_v19 = vpack.c.bf16 %v743_v6, %v743_v6 }
  0x55   : > { %v1731_v20 = vpack.c.bf16 %v744_v7, %v744_v7  ;;  %v1732_v21 = vpack.c.bf16 %v745_v8, %v745_v8  ;;  %1379 = vst.msk [vmem:[%s2357_s8 + $0xa0] sm:$0xf] %vm1338_vm0, %v1725_v12  ;;  %1380 = vst.msk [vmem:[%s2357_s8 + $0xa4] sm:$0xf] %vm1338_vm0, %v1726_v13  ;;  %v1916_v24 = vunpack.c.l.bf16 %v2094_v11  ;;  %v1917_v25 = vunpack.c.h.bf16 %v2094_v11 }
  0x56   : > { %1381 = vst.msk [vmem:[%s2357_s8 + $0xa8] sm:$0xf] %vm1338_vm0, %v1727_v14  ;;  %1382 = vst.msk [vmem:[%s2357_s8 + $0xac] sm:$0xf] %vm1338_vm0, %v1728_v15  ;;  %v1920_v26 = vunpack.c.l.bf16 %v2095_v16  ;;  %v1921_v27 = vunpack.c.h.bf16 %v2095_v16  ;;  %v1924_v28 = vunpack.c.l.bf16 %v2096_v17  ;;  %v1925_v29 = vunpack.c.h.bf16 %v2096_v17 }
  0x57   : > { %1383 = vst.msk [vmem:[%s2357_s8 + $0xb0] sm:$0xf] %vm1338_vm0, %v1729_v18  ;;  %1384 = vst.msk [vmem:[%s2357_s8 + $0xb4] sm:$0xf] %vm1338_vm0, %v1730_v19  ;;  %v483_v30 = vmul.f32 %v1912_v22, %v2320_v0  ;;  %v484_v31 = vmul.f32 %v1913_v23, %v2320_v0  ;;  %v485_v32 = vmul.f32 %v1916_v24, %v2320_v0  ;;  %v1928_v3 = vunpack.c.l.bf16 %v2097_v54 }
  0x58   : > { %1385 = vst.msk [vmem:[%s2357_s8 + $0xb8] sm:$0xf] %vm1338_vm0, %v1731_v20  ;;  %1386 = vst.msk [vmem:[%s2357_s8 + $0xbc] sm:$0xf] %vm1338_vm0, %v1732_v21  ;;  %v486_v33 = vmul.f32 %v1917_v25, %v2320_v0  ;;  %v487_v34 = vmul.f32 %v1920_v26, %v2320_v0  ;;  %v488_v35 = vmul.f32 %v1921_v27, %v2320_v0  ;;  %v1929_v4 = vunpack.c.h.bf16 %v2097_v54 }
  0x59   : > { %v489_v36 = vmul.f32 %v1924_v28, %v2320_v0  ;;  %v490_v37 = vmul.f32 %v1925_v29, %v2320_v0  ;;  %v618_v38 = vadd.f32 %v2330_v9, %v483_v30  ;;  %v619_v39 = vadd.f32 %v2330_v9, %v484_v31 }
  0x5a   : > { %v620_v40 = vadd.f32 %v2330_v9, %v485_v32  ;;  %v621_v41 = vadd.f32 %v2330_v9, %v486_v33  ;;  %v622_v42 = vadd.f32 %v2330_v9, %v487_v34  ;;  %v623_v43 = vadd.f32 %v2330_v9, %v488_v35 }
  0x5b   : > { %v624_v44 = vadd.f32 %v2330_v9, %v489_v36  ;;  %v625_v45 = vadd.f32 %v2330_v9, %v490_v37  ;;  %v746_v46 = vmax.f32 %v618_v38, 0.0  ;;  %v747_v47 = vmax.f32 %v619_v39, 0.0  ;;  %v2101_v36 = vld [vmem:[%s2315_s28 + $0x100] sm:$0xff]   ;;  %v2102_v37 = vld [vmem:[%s2315_s28 + $0x108] sm:$0xff]  }
  0x5c   : > { %v748_v48 = vmax.f32 %v620_v40, 0.0  ;;  %v749_v49 = vmax.f32 %v621_v41, 0.0  ;;  %v750_v50 = vmax.f32 %v622_v42, 0.0  ;;  %v751_v51 = vmax.f32 %v623_v43, 0.0  ;;  %v2103_v42 = vld [vmem:[%s2315_s28 + $0x110] sm:$0xff]   ;;  %v2104_v43 = vld [vmem:[%s2315_s28 + $0x118] sm:$0xff]  }
  0x5d   : > { %v752_v52 = vmax.f32 %v624_v44, 0.0  ;;  %v753_v53 = vmax.f32 %v625_v45, 0.0  ;;  %v1733_v56 = vpack.c.bf16 %v746_v46, %v746_v46  ;;  %v1734_v57 = vpack.c.bf16 %v747_v47, %v747_v47 }
  0x5e   : > { %v1735_v58 = vpack.c.bf16 %v748_v48, %v748_v48  ;;  %v1736_v59 = vpack.c.bf16 %v749_v49, %v749_v49  ;;  %v1737_v62 = vpack.c.bf16 %v750_v50, %v750_v50  ;;  %v1738_v63 = vpack.c.bf16 %v751_v51, %v751_v51 }
  0x5f   : > { %v1739_v1 = vpack.c.bf16 %v752_v52, %v752_v52  ;;  %v1740_v2 = vpack.c.bf16 %v753_v53, %v753_v53  ;;  %1387 = vst.msk [vmem:[%s2357_s8 + $0xc0] sm:$0xf] %vm1338_vm0, %v1733_v56  ;;  %1388 = vst.msk [vmem:[%s2357_s8 + $0xc4] sm:$0xf] %vm1338_vm0, %v1734_v57  ;;  %v1932_v5 = vunpack.c.l.bf16 %v2098_v55  ;;  %v1933_v6 = vunpack.c.h.bf16 %v2098_v55 }
  0x60   : > { %1389 = vst.msk [vmem:[%s2357_s8 + $0xc8] sm:$0xf] %vm1338_vm0, %v1735_v58  ;;  %1390 = vst.msk [vmem:[%s2357_s8 + $0xcc] sm:$0xf] %vm1338_vm0, %v1736_v59  ;;  %v1936_v7 = vunpack.c.l.bf16 %v2099_v60  ;;  %v1937_v8 = vunpack.c.h.bf16 %v2099_v60  ;;  %v1940_v10 = vunpack.c.l.bf16 %v2100_v61  ;;  %v1941_v11 = vunpack.c.h.bf16 %v2100_v61 }
  0x61   : > { %1391 = vst.msk [vmem:[%s2357_s8 + $0xd0] sm:$0xf] %vm1338_vm0, %v1737_v62  ;;  %1392 = vst.msk [vmem:[%s2357_s8 + $0xd4] sm:$0xf] %vm1338_vm0, %v1738_v63  ;;  %v491_v12 = vmul.f32 %v1928_v3, %v2320_v0  ;;  %v492_v13 = vmul.f32 %v1929_v4, %v2320_v0  ;;  %v493_v14 = vmul.f32 %v1932_v5, %v2320_v0  ;;  %v1944_v48 = vunpack.c.l.bf16 %v2101_v36 }
  0x62   : > { %1393 = vst.msk [vmem:[%s2357_s8 + $0xd8] sm:$0xf] %vm1338_vm0, %v1739_v1  ;;  %1394 = vst.msk [vmem:[%s2357_s8 + $0xdc] sm:$0xf] %vm1338_vm0, %v1740_v2  ;;  %v494_v15 = vmul.f32 %v1933_v6, %v2320_v0  ;;  %v495_v16 = vmul.f32 %v1936_v7, %v2320_v0  ;;  %v496_v17 = vmul.f32 %v1937_v8, %v2320_v0  ;;  %v1945_v49 = vunpack.c.h.bf16 %v2101_v36 }
  0x63   : > { %v497_v18 = vmul.f32 %v1940_v10, %v2320_v0  ;;  %v498_v19 = vmul.f32 %v1941_v11, %v2320_v0  ;;  %v626_v20 = vadd.f32 %v2330_v9, %v491_v12  ;;  %v627_v21 = vadd.f32 %v2330_v9, %v492_v13 }
  0x64   : > { %v628_v22 = vadd.f32 %v2330_v9, %v493_v14  ;;  %v629_v23 = vadd.f32 %v2330_v9, %v494_v15  ;;  %v630_v24 = vadd.f32 %v2330_v9, %v495_v16  ;;  %v631_v25 = vadd.f32 %v2330_v9, %v496_v17 }
  0x65   : > { %v632_v26 = vadd.f32 %v2330_v9, %v497_v18  ;;  %v633_v27 = vadd.f32 %v2330_v9, %v498_v19  ;;  %v754_v28 = vmax.f32 %v626_v20, 0.0  ;;  %v755_v29 = vmax.f32 %v627_v21, 0.0  ;;  %v2105_v18 = vld [vmem:[%s2315_s28 + $0x120] sm:$0xff]   ;;  %v2106_v19 = vld [vmem:[%s2315_s28 + $0x128] sm:$0xff]  }
  0x66   : > { %v756_v30 = vmax.f32 %v628_v22, 0.0  ;;  %v757_v31 = vmax.f32 %v629_v23, 0.0  ;;  %v758_v32 = vmax.f32 %v630_v24, 0.0  ;;  %v759_v33 = vmax.f32 %v631_v25, 0.0  ;;  %v2107_v24 = vld [vmem:[%s2315_s28 + $0x130] sm:$0xff]   ;;  %v2108_v25 = vld [vmem:[%s2315_s28 + $0x138] sm:$0xff]  }
  0x67   : > { %v760_v34 = vmax.f32 %v632_v26, 0.0  ;;  %v761_v35 = vmax.f32 %v633_v27, 0.0  ;;  %v1741_v38 = vpack.c.bf16 %v754_v28, %v754_v28  ;;  %v1742_v39 = vpack.c.bf16 %v755_v29, %v755_v29 }
  0x68   : > { %v1743_v40 = vpack.c.bf16 %v756_v30, %v756_v30  ;;  %v1744_v41 = vpack.c.bf16 %v757_v31, %v757_v31  ;;  %v1745_v44 = vpack.c.bf16 %v758_v32, %v758_v32  ;;  %v1746_v45 = vpack.c.bf16 %v759_v33, %v759_v33 }
  0x69   : > { %v1747_v46 = vpack.c.bf16 %v760_v34, %v760_v34  ;;  %v1748_v47 = vpack.c.bf16 %v761_v35, %v761_v35  ;;  %1395 = vst.msk [vmem:[%s2357_s8 + $0xe0] sm:$0xf] %vm1338_vm0, %v1741_v38  ;;  %1396 = vst.msk [vmem:[%s2357_s8 + $0xe4] sm:$0xf] %vm1338_vm0, %v1742_v39  ;;  %v1948_v50 = vunpack.c.l.bf16 %v2102_v37  ;;  %v1949_v51 = vunpack.c.h.bf16 %v2102_v37 }
  0x6a   : > { %1397 = vst.msk [vmem:[%s2357_s8 + $0xe8] sm:$0xf] %vm1338_vm0, %v1743_v40  ;;  %1398 = vst.msk [vmem:[%s2357_s8 + $0xec] sm:$0xf] %vm1338_vm0, %v1744_v41  ;;  %v1952_v52 = vunpack.c.l.bf16 %v2103_v42  ;;  %v1953_v53 = vunpack.c.h.bf16 %v2103_v42  ;;  %v1956_v54 = vunpack.c.l.bf16 %v2104_v43  ;;  %v1957_v55 = vunpack.c.h.bf16 %v2104_v43 }
  0x6b   : > { %1399 = vst.msk [vmem:[%s2357_s8 + $0xf0] sm:$0xf] %vm1338_vm0, %v1745_v44  ;;  %1400 = vst.msk [vmem:[%s2357_s8 + $0xf4] sm:$0xf] %vm1338_vm0, %v1746_v45  ;;  %v499_v56 = vmul.f32 %v1944_v48, %v2320_v0  ;;  %v500_v57 = vmul.f32 %v1945_v49, %v2320_v0  ;;  %v501_v58 = vmul.f32 %v1948_v50, %v2320_v0  ;;  %v1960_v30 = vunpack.c.l.bf16 %v2105_v18 }
  0x6c   : > { %1401 = vst.msk [vmem:[%s2357_s8 + $0xf8] sm:$0xf] %vm1338_vm0, %v1747_v46  ;;  %1402 = vst.msk [vmem:[%s2357_s8 + $0xfc] sm:$0xf] %vm1338_vm0, %v1748_v47  ;;  %v502_v59 = vmul.f32 %v1949_v51, %v2320_v0  ;;  %v503_v60 = vmul.f32 %v1952_v52, %v2320_v0  ;;  %v504_v61 = vmul.f32 %v1953_v53, %v2320_v0  ;;  %v1961_v31 = vunpack.c.h.bf16 %v2105_v18  ;;  %v2702_v18 = vld [vmem:[%s2974_s1] ss:$0 sm:$0xff] }
  0x6d   : > { %v505_v62 = vmul.f32 %v1956_v54, %v2320_v0  ;;  %v506_v63 = vmul.f32 %v1957_v55, %v2320_v0  ;;  %v634_v1 = vadd.f32 %v2330_v9, %v499_v56  ;;  %v635_v2 = vadd.f32 %v2330_v9, %v500_v57 }
  0x6e   : > { %v636_v3 = vadd.f32 %v2330_v9, %v501_v58  ;;  %v637_v4 = vadd.f32 %v2330_v9, %v502_v59  ;;  %v638_v5 = vadd.f32 %v2330_v9, %v503_v60  ;;  %v639_v6 = vadd.f32 %v2330_v9, %v504_v61  ;;  %v2109_v61 = vld [vmem:[%s2315_s28 + $0x140] sm:$0xff]  }
  0x6f   : > { %v640_v7 = vadd.f32 %v2330_v9, %v505_v62  ;;  %v641_v8 = vadd.f32 %v2330_v9, %v506_v63  ;;  %v762_v10 = vmax.f32 %v634_v1, 0.0  ;;  %v763_v11 = vmax.f32 %v635_v2, 0.0  ;;  %v2110_v62 = vld [vmem:[%s2315_s28 + $0x148] sm:$0xff]  }
  0x70   : > { %v764_v12 = vmax.f32 %v636_v3, 0.0  ;;  %v765_v13 = vmax.f32 %v637_v4, 0.0  ;;  %v766_v14 = vmax.f32 %v638_v5, 0.0  ;;  %v767_v15 = vmax.f32 %v639_v6, 0.0  ;;  %v2111_v3 = vld [vmem:[%s2315_s28 + $0x150] sm:$0xff]   ;;  %v2112_v4 = vld [vmem:[%s2315_s28 + $0x158] sm:$0xff]  }
  0x71   : > { %v768_v16 = vmax.f32 %v640_v7, 0.0  ;;  %v769_v17 = vmax.f32 %v641_v8, 0.0  ;;  %v1749_v20 = vpack.c.bf16 %v762_v10, %v762_v10  ;;  %v1750_v21 = vpack.c.bf16 %v763_v11, %v763_v11 }
  0x72   : > { %v1751_v22 = vpack.c.bf16 %v764_v12, %v764_v12  ;;  %v1752_v23 = vpack.c.bf16 %v765_v13, %v765_v13  ;;  %v1753_v26 = vpack.c.bf16 %v766_v14, %v766_v14  ;;  %v1754_v27 = vpack.c.bf16 %v767_v15, %v767_v15 }
  0x73   : > { %v1755_v28 = vpack.c.bf16 %v768_v16, %v768_v16  ;;  %v1756_v29 = vpack.c.bf16 %v769_v17, %v769_v17  ;;  %1403 = vst.msk [vmem:[%s2357_s8 + $0x100] sm:$0xf] %vm1338_vm0, %v1749_v20  ;;  %1404 = vst.msk [vmem:[%s2357_s8 + $0x104] sm:$0xf] %vm1338_vm0, %v1750_v21  ;;  %v1964_v32 = vunpack.c.l.bf16 %v2106_v19  ;;  %v1965_v33 = vunpack.c.h.bf16 %v2106_v19 }
  0x74   : > { %1405 = vst.msk [vmem:[%s2357_s8 + $0x108] sm:$0xf] %vm1338_vm0, %v1751_v22  ;;  %1406 = vst.msk [vmem:[%s2357_s8 + $0x10c] sm:$0xf] %vm1338_vm0, %v1752_v23  ;;  %v1968_v34 = vunpack.c.l.bf16 %v2107_v24  ;;  %v1969_v35 = vunpack.c.h.bf16 %v2107_v24  ;;  %v1972_v36 = vunpack.c.l.bf16 %v2108_v25  ;;  %v1973_v37 = vunpack.c.h.bf16 %v2108_v25 }
  0x75   : > { %1407 = vst.msk [vmem:[%s2357_s8 + $0x110] sm:$0xf] %vm1338_vm0, %v1753_v26  ;;  %1408 = vst.msk [vmem:[%s2357_s8 + $0x114] sm:$0xf] %vm1338_vm0, %v1754_v27  ;;  %v507_v38 = vmul.f32 %v1960_v30, %v2320_v0  ;;  %v508_v39 = vmul.f32 %v1961_v31, %v2320_v0  ;;  %v509_v40 = vmul.f32 %v1964_v32, %v2320_v0  ;;  %v1976_v10 = vunpack.c.l.bf16 %v2109_v61  ;;  %v2715_v27 = vld [vmem:[%s2975_s2] ss:$0 sm:$0xff] }
  0x76   : > { %1409 = vst.msk [vmem:[%s2357_s8 + $0x118] sm:$0xf] %vm1338_vm0, %v1755_v28  ;;  %1410 = vst.msk [vmem:[%s2357_s8 + $0x11c] sm:$0xf] %vm1338_vm0, %v1756_v29  ;;  %v510_v41 = vmul.f32 %v1965_v33, %v2320_v0  ;;  %v511_v42 = vmul.f32 %v1968_v34, %v2320_v0  ;;  %v512_v43 = vmul.f32 %v1969_v35, %v2320_v0  ;;  %v1977_v11 = vunpack.c.h.bf16 %v2109_v61 }
  0x77   : > { %v513_v44 = vmul.f32 %v1972_v36, %v2320_v0  ;;  %v514_v45 = vmul.f32 %v1973_v37, %v2320_v0  ;;  %v642_v46 = vadd.f32 %v2330_v9, %v507_v38  ;;  %v643_v47 = vadd.f32 %v2330_v9, %v508_v39 }
  0x78   : > { %v644_v48 = vadd.f32 %v2330_v9, %v509_v40  ;;  %v645_v49 = vadd.f32 %v2330_v9, %v510_v41  ;;  %v646_v50 = vadd.f32 %v2330_v9, %v511_v42  ;;  %v647_v51 = vadd.f32 %v2330_v9, %v512_v43 }
  0x79   : > { %v648_v52 = vadd.f32 %v2330_v9, %v513_v44  ;;  %v649_v53 = vadd.f32 %v2330_v9, %v514_v45  ;;  %v770_v0 = vmax.f32 %v642_v46, 0.0  ;;  %v771_v54 = vmax.f32 %v643_v47, 0.0  ;;  %v2113_v44 = vld [vmem:[%s2315_s28 + $0x160] sm:$0xff]   ;;  %v2114_v45 = vld [vmem:[%s2315_s28 + $0x168] sm:$0xff]  }
  0x7a   : > { %v772_v55 = vmax.f32 %v644_v48, 0.0  ;;  %v773_v56 = vmax.f32 %v645_v49, 0.0  ;;  %v774_v57 = vmax.f32 %v646_v50, 0.0  ;;  %v775_v58 = vmax.f32 %v647_v51, 0.0  ;;  %v2115_v50 = vld [vmem:[%s2315_s28 + $0x170] sm:$0xff]   ;;  %v2116_v51 = vld [vmem:[%s2315_s28 + $0x178] sm:$0xff]  }
  0x7b   : > { %v776_v59 = vmax.f32 %v648_v52, 0.0  ;;  %v777_v60 = vmax.f32 %v649_v53, 0.0  ;;  %v1757_v63 = vpack.c.bf16 %v770_v0, %v770_v0  ;;  %v1758_v1 = vpack.c.bf16 %v771_v54, %v771_v54 }
  0x7c   : > { %v1759_v2 = vpack.c.bf16 %v772_v55, %v772_v55  ;;  %v1760_v9 = vpack.c.bf16 %v773_v56, %v773_v56  ;;  %v1761_v5 = vpack.c.bf16 %v774_v57, %v774_v57  ;;  %v1762_v6 = vpack.c.bf16 %v775_v58, %v775_v58 }
  0x7d   : > { %v1763_v7 = vpack.c.bf16 %v776_v59, %v776_v59  ;;  %v1764_v8 = vpack.c.bf16 %v777_v60, %v777_v60  ;;  %1411 = vst.msk [vmem:[%s2357_s8 + $0x120] sm:$0xf] %vm1338_vm0, %v1757_v63  ;;  %1412 = vst.msk [vmem:[%s2357_s8 + $0x124] sm:$0xf] %vm1338_vm0, %v1758_v1  ;;  %v1980_v12 = vunpack.c.l.bf16 %v2110_v62  ;;  %v1981_v13 = vunpack.c.h.bf16 %v2110_v62 }
  0x7e   : > { %1413 = vst.msk [vmem:[%s2357_s8 + $0x128] sm:$0xf] %vm1338_vm0, %v1759_v2  ;;  %1414 = vst.msk [vmem:[%s2357_s8 + $0x12c] sm:$0xf] %vm1338_vm0, %v1760_v9  ;;  %v1984_v14 = vunpack.c.l.bf16 %v2111_v3  ;;  %v1985_v15 = vunpack.c.h.bf16 %v2111_v3  ;;  %v1988_v16 = vunpack.c.l.bf16 %v2112_v4  ;;  %v1989_v17 = vunpack.c.h.bf16 %v2112_v4 }
  0x7f   : > { %1415 = vst.msk [vmem:[%s2357_s8 + $0x130] sm:$0xf] %vm1338_vm0, %v1761_v5  ;;  %1416 = vst.msk [vmem:[%s2357_s8 + $0x134] sm:$0xf] %vm1338_vm0, %v1762_v6  ;;  %v515_v19 = vmul.f32 %v2702_v18, %v1976_v10  ;;  %v516_v20 = vmul.f32 %v2702_v18, %v1977_v11  ;;  %v517_v21 = vmul.f32 %v2702_v18, %v1980_v12  ;;  %v1992_v55 = vunpack.c.l.bf16 %v2113_v44 }
  0x80   : > { %1417 = vst.msk [vmem:[%s2357_s8 + $0x138] sm:$0xf] %vm1338_vm0, %v1763_v7  ;;  %1418 = vst.msk [vmem:[%s2357_s8 + $0x13c] sm:$0xf] %vm1338_vm0, %v1764_v8  ;;  %v518_v22 = vmul.f32 %v2702_v18, %v1981_v13  ;;  %v519_v23 = vmul.f32 %v2702_v18, %v1984_v14  ;;  %v520_v24 = vmul.f32 %v2702_v18, %v1985_v15  ;;  %v1993_v56 = vunpack.c.h.bf16 %v2113_v44 }
  0x81   : > { %v521_v25 = vmul.f32 %v2702_v18, %v1988_v16  ;;  %v522_v26 = vmul.f32 %v2702_v18, %v1989_v17  ;;  %v650_v28 = vadd.f32 %v2715_v27, %v515_v19  ;;  %v651_v29 = vadd.f32 %v2715_v27, %v516_v20 }
  0x82   : > { %v652_v30 = vadd.f32 %v2715_v27, %v517_v21  ;;  %v653_v31 = vadd.f32 %v2715_v27, %v518_v22  ;;  %v654_v32 = vadd.f32 %v2715_v27, %v519_v23  ;;  %v655_v33 = vadd.f32 %v2715_v27, %v520_v24 }
  0x83   : > { %v656_v34 = vadd.f32 %v2715_v27, %v521_v25  ;;  %v657_v35 = vadd.f32 %v2715_v27, %v522_v26  ;;  %v778_v36 = vmax.f32 %v650_v28, 0.0  ;;  %v779_v37 = vmax.f32 %v651_v29, 0.0  ;;  %v2117_v25 = vld [vmem:[%s2315_s28 + $0x180] sm:$0xff]   ;;  %v2118_v26 = vld [vmem:[%s2315_s28 + $0x188] sm:$0xff]  }
  0x84   : > { %v780_v38 = vmax.f32 %v652_v30, 0.0  ;;  %v781_v39 = vmax.f32 %v653_v31, 0.0  ;;  %v782_v40 = vmax.f32 %v654_v32, 0.0  ;;  %v783_v41 = vmax.f32 %v655_v33, 0.0  ;;  %v2119_v32 = vld [vmem:[%s2315_s28 + $0x190] sm:$0xff]   ;;  %v2120_v33 = vld [vmem:[%s2315_s28 + $0x198] sm:$0xff]  }
  0x85   : > { %v784_v42 = vmax.f32 %v656_v34, 0.0  ;;  %v785_v43 = vmax.f32 %v657_v35, 0.0  ;;  %v1765_v46 = vpack.c.bf16 %v778_v36, %v778_v36  ;;  %v1766_v47 = vpack.c.bf16 %v779_v37, %v779_v37 }
  0x86   : > { %v1767_v48 = vpack.c.bf16 %v780_v38, %v780_v38  ;;  %v1768_v49 = vpack.c.bf16 %v781_v39, %v781_v39  ;;  %v1769_v52 = vpack.c.bf16 %v782_v40, %v782_v40  ;;  %v1770_v53 = vpack.c.bf16 %v783_v41, %v783_v41 }
  0x87   : > { %v1771_v0 = vpack.c.bf16 %v784_v42, %v784_v42  ;;  %v1772_v54 = vpack.c.bf16 %v785_v43, %v785_v43  ;;  %1419 = vst.msk [vmem:[%s2357_s8 + $0x140] sm:$0xf] %vm1338_vm0, %v1765_v46  ;;  %1420 = vst.msk [vmem:[%s2357_s8 + $0x144] sm:$0xf] %vm1338_vm0, %v1766_v47  ;;  %v1996_v57 = vunpack.c.l.bf16 %v2114_v45  ;;  %v1997_v58 = vunpack.c.h.bf16 %v2114_v45 }
  0x88   : > { %1421 = vst.msk [vmem:[%s2357_s8 + $0x148] sm:$0xf] %vm1338_vm0, %v1767_v48  ;;  %1422 = vst.msk [vmem:[%s2357_s8 + $0x14c] sm:$0xf] %vm1338_vm0, %v1768_v49  ;;  %v2000_v59 = vunpack.c.l.bf16 %v2115_v50  ;;  %v2001_v60 = vunpack.c.h.bf16 %v2115_v50  ;;  %v2004_v61 = vunpack.c.l.bf16 %v2116_v51  ;;  %v2005_v62 = vunpack.c.h.bf16 %v2116_v51 }
  0x89   : > { %1423 = vst.msk [vmem:[%s2357_s8 + $0x150] sm:$0xf] %vm1338_vm0, %v1769_v52  ;;  %1424 = vst.msk [vmem:[%s2357_s8 + $0x154] sm:$0xf] %vm1338_vm0, %v1770_v53  ;;  %v523_v63 = vmul.f32 %v2702_v18, %v1992_v55  ;;  %v524_v1 = vmul.f32 %v2702_v18, %v1993_v56  ;;  %v525_v2 = vmul.f32 %v2702_v18, %v1996_v57  ;;  %v2008_v38 = vunpack.c.l.bf16 %v2117_v25 }
  0x8a   : > { %1425 = vst.msk [vmem:[%s2357_s8 + $0x158] sm:$0xf] %vm1338_vm0, %v1771_v0  ;;  %1426 = vst.msk [vmem:[%s2357_s8 + $0x15c] sm:$0xf] %vm1338_vm0, %v1772_v54  ;;  %v526_v9 = vmul.f32 %v2702_v18, %v1997_v58  ;;  %v527_v3 = vmul.f32 %v2702_v18, %v2000_v59  ;;  %v528_v4 = vmul.f32 %v2702_v18, %v2001_v60  ;;  %v2009_v39 = vunpack.c.h.bf16 %v2117_v25 }
  0x8b   : > { %v529_v5 = vmul.f32 %v2702_v18, %v2004_v61  ;;  %v530_v6 = vmul.f32 %v2702_v18, %v2005_v62  ;;  %v658_v7 = vadd.f32 %v2715_v27, %v523_v63  ;;  %v659_v8 = vadd.f32 %v2715_v27, %v524_v1 }
  0x8c   : > { %v660_v10 = vadd.f32 %v2715_v27, %v525_v2  ;;  %v661_v11 = vadd.f32 %v2715_v27, %v526_v9  ;;  %v662_v12 = vadd.f32 %v2715_v27, %v527_v3  ;;  %v663_v13 = vadd.f32 %v2715_v27, %v528_v4 }
  0x8d   : > { %v664_v14 = vadd.f32 %v2715_v27, %v529_v5  ;;  %v665_v15 = vadd.f32 %v2715_v27, %v530_v6  ;;  %v786_v16 = vmax.f32 %v658_v7, 0.0  ;;  %v787_v17 = vmax.f32 %v659_v8, 0.0  ;;  %v2121_v5 = vld [vmem:[%s2315_s28 + $0x1a0] sm:$0xff]   ;;  %v2122_v6 = vld [vmem:[%s2315_s28 + $0x1a8] sm:$0xff]  }
  0x8e   : > { %v788_v19 = vmax.f32 %v660_v10, 0.0  ;;  %v789_v20 = vmax.f32 %v661_v11, 0.0  ;;  %v790_v21 = vmax.f32 %v662_v12, 0.0  ;;  %v791_v22 = vmax.f32 %v663_v13, 0.0  ;;  %v2123_v12 = vld [vmem:[%s2315_s28 + $0x1b0] sm:$0xff]   ;;  %v2124_v13 = vld [vmem:[%s2315_s28 + $0x1b8] sm:$0xff]  }
  0x8f   : > { %v792_v23 = vmax.f32 %v664_v14, 0.0  ;;  %v793_v24 = vmax.f32 %v665_v15, 0.0  ;;  %v1773_v28 = vpack.c.bf16 %v786_v16, %v786_v16  ;;  %v1774_v29 = vpack.c.bf16 %v787_v17, %v787_v17 }
  0x90   : > { %v1775_v30 = vpack.c.bf16 %v788_v19, %v788_v19  ;;  %v1776_v31 = vpack.c.bf16 %v789_v20, %v789_v20  ;;  %v1777_v34 = vpack.c.bf16 %v790_v21, %v790_v21  ;;  %v1778_v35 = vpack.c.bf16 %v791_v22, %v791_v22 }
  0x91   : > { %v1779_v36 = vpack.c.bf16 %v792_v23, %v792_v23  ;;  %v1780_v37 = vpack.c.bf16 %v793_v24, %v793_v24  ;;  %1427 = vst.msk [vmem:[%s2357_s8 + $0x160] sm:$0xf] %vm1338_vm0, %v1773_v28  ;;  %1428 = vst.msk [vmem:[%s2357_s8 + $0x164] sm:$0xf] %vm1338_vm0, %v1774_v29  ;;  %v2012_v40 = vunpack.c.l.bf16 %v2118_v26  ;;  %v2013_v41 = vunpack.c.h.bf16 %v2118_v26 }
  0x92   : > { %1429 = vst.msk [vmem:[%s2357_s8 + $0x168] sm:$0xf] %vm1338_vm0, %v1775_v30  ;;  %1430 = vst.msk [vmem:[%s2357_s8 + $0x16c] sm:$0xf] %vm1338_vm0, %v1776_v31  ;;  %v2016_v42 = vunpack.c.l.bf16 %v2119_v32  ;;  %v2017_v43 = vunpack.c.h.bf16 %v2119_v32  ;;  %v2020_v44 = vunpack.c.l.bf16 %v2120_v33  ;;  %v2021_v45 = vunpack.c.h.bf16 %v2120_v33 }
  0x93   : > { %1431 = vst.msk [vmem:[%s2357_s8 + $0x170] sm:$0xf] %vm1338_vm0, %v1777_v34  ;;  %1432 = vst.msk [vmem:[%s2357_s8 + $0x174] sm:$0xf] %vm1338_vm0, %v1778_v35  ;;  %v531_v46 = vmul.f32 %v2702_v18, %v2008_v38  ;;  %v532_v47 = vmul.f32 %v2702_v18, %v2009_v39  ;;  %v533_v48 = vmul.f32 %v2702_v18, %v2012_v40  ;;  %v2024_v19 = vunpack.c.l.bf16 %v2121_v5 }
  0x94   : > { %1433 = vst.msk [vmem:[%s2357_s8 + $0x178] sm:$0xf] %vm1338_vm0, %v1779_v36  ;;  %1434 = vst.msk [vmem:[%s2357_s8 + $0x17c] sm:$0xf] %vm1338_vm0, %v1780_v37  ;;  %v534_v49 = vmul.f32 %v2702_v18, %v2013_v41  ;;  %v535_v50 = vmul.f32 %v2702_v18, %v2016_v42  ;;  %v536_v51 = vmul.f32 %v2702_v18, %v2017_v43  ;;  %v2025_v20 = vunpack.c.h.bf16 %v2121_v5 }
  0x95   : > { %v537_v52 = vmul.f32 %v2702_v18, %v2020_v44  ;;  %v538_v53 = vmul.f32 %v2702_v18, %v2021_v45  ;;  %v666_v0 = vadd.f32 %v2715_v27, %v531_v46  ;;  %v667_v54 = vadd.f32 %v2715_v27, %v532_v47 }
  0x96   : > { %v668_v55 = vadd.f32 %v2715_v27, %v533_v48  ;;  %v669_v56 = vadd.f32 %v2715_v27, %v534_v49  ;;  %v670_v57 = vadd.f32 %v2715_v27, %v535_v50  ;;  %v671_v58 = vadd.f32 %v2715_v27, %v536_v51 }
  0x97   : > { %v672_v59 = vadd.f32 %v2715_v27, %v537_v52  ;;  %v673_v60 = vadd.f32 %v2715_v27, %v538_v53  ;;  %v794_v61 = vmax.f32 %v666_v0, 0.0  ;;  %v795_v62 = vmax.f32 %v667_v54, 0.0  ;;  %v2125_v52 = vld [vmem:[%s2315_s28 + $0x1c0] sm:$0xff]   ;;  %v2126_v53 = vld [vmem:[%s2315_s28 + $0x1c8] sm:$0xff]  }
  0x98   : > { %v796_v63 = vmax.f32 %v668_v55, 0.0  ;;  %v797_v1 = vmax.f32 %v669_v56, 0.0  ;;  %v798_v2 = vmax.f32 %v670_v57, 0.0  ;;  %v799_v9 = vmax.f32 %v671_v58, 0.0  ;;  %v2127_v57 = vld [vmem:[%s2315_s28 + $0x1d0] sm:$0xff]   ;;  %v2128_v58 = vld [vmem:[%s2315_s28 + $0x1d8] sm:$0xff]  }
  0x99   : > { %v800_v3 = vmax.f32 %v672_v59, 0.0  ;;  %v801_v4 = vmax.f32 %v673_v60, 0.0  ;;  %v1781_v7 = vpack.c.bf16 %v794_v61, %v794_v61  ;;  %v1782_v8 = vpack.c.bf16 %v795_v62, %v795_v62 }
  0x9a   : > { %v1783_v10 = vpack.c.bf16 %v796_v63, %v796_v63  ;;  %v1784_v11 = vpack.c.bf16 %v797_v1, %v797_v1  ;;  %v1785_v14 = vpack.c.bf16 %v798_v2, %v798_v2  ;;  %v1786_v15 = vpack.c.bf16 %v799_v9, %v799_v9 }
  0x9b   : > { %v1787_v16 = vpack.c.bf16 %v800_v3, %v800_v3  ;;  %v1788_v17 = vpack.c.bf16 %v801_v4, %v801_v4  ;;  %1435 = vst.msk [vmem:[%s2357_s8 + $0x180] sm:$0xf] %vm1338_vm0, %v1781_v7  ;;  %1436 = vst.msk [vmem:[%s2357_s8 + $0x184] sm:$0xf] %vm1338_vm0, %v1782_v8  ;;  %v2028_v21 = vunpack.c.l.bf16 %v2122_v6  ;;  %v2029_v22 = vunpack.c.h.bf16 %v2122_v6 }
  0x9c   : > { %1437 = vst.msk [vmem:[%s2357_s8 + $0x188] sm:$0xf] %vm1338_vm0, %v1783_v10  ;;  %1438 = vst.msk [vmem:[%s2357_s8 + $0x18c] sm:$0xf] %vm1338_vm0, %v1784_v11  ;;  %v2032_v23 = vunpack.c.l.bf16 %v2123_v12  ;;  %v2033_v24 = vunpack.c.h.bf16 %v2123_v12  ;;  %v2036_v25 = vunpack.c.l.bf16 %v2124_v13  ;;  %v2037_v26 = vunpack.c.h.bf16 %v2124_v13 }
  0x9d   : > { %1439 = vst.msk [vmem:[%s2357_s8 + $0x190] sm:$0xf] %vm1338_vm0, %v1785_v14  ;;  %1440 = vst.msk [vmem:[%s2357_s8 + $0x194] sm:$0xf] %vm1338_vm0, %v1786_v15  ;;  %v539_v28 = vmul.f32 %v2702_v18, %v2024_v19  ;;  %v540_v29 = vmul.f32 %v2702_v18, %v2025_v20  ;;  %v541_v30 = vmul.f32 %v2702_v18, %v2028_v21  ;;  %v2040_v63 = vunpack.c.l.bf16 %v2125_v52 }
  0x9e   : > { %1441 = vst.msk [vmem:[%s2357_s8 + $0x198] sm:$0xf] %vm1338_vm0, %v1787_v16  ;;  %1442 = vst.msk [vmem:[%s2357_s8 + $0x19c] sm:$0xf] %vm1338_vm0, %v1788_v17  ;;  %v542_v31 = vmul.f32 %v2702_v18, %v2029_v22  ;;  %v543_v32 = vmul.f32 %v2702_v18, %v2032_v23  ;;  %v544_v33 = vmul.f32 %v2702_v18, %v2033_v24  ;;  %v2041_v1 = vunpack.c.h.bf16 %v2125_v52 }
  0x9f   : > { %v545_v34 = vmul.f32 %v2702_v18, %v2036_v25  ;;  %v546_v35 = vmul.f32 %v2702_v18, %v2037_v26  ;;  %v674_v36 = vadd.f32 %v2715_v27, %v539_v28  ;;  %v675_v37 = vadd.f32 %v2715_v27, %v540_v29 }
  0xa0   : > { %v676_v38 = vadd.f32 %v2715_v27, %v541_v30  ;;  %v677_v39 = vadd.f32 %v2715_v27, %v542_v31  ;;  %v678_v40 = vadd.f32 %v2715_v27, %v543_v32  ;;  %v679_v41 = vadd.f32 %v2715_v27, %v544_v33 }
  0xa1   : > { %v680_v42 = vadd.f32 %v2715_v27, %v545_v34  ;;  %v681_v43 = vadd.f32 %v2715_v27, %v546_v35  ;;  %v802_v44 = vmax.f32 %v674_v36, 0.0  ;;  %v803_v45 = vmax.f32 %v675_v37, 0.0  ;;  %v2129_v34 = vld [vmem:[%s2315_s28 + $0x1e0] sm:$0xff]   ;;  %v2130_v35 = vld [vmem:[%s2315_s28 + $0x1e8] sm:$0xff]  }
  0xa2   : > { %v804_v46 = vmax.f32 %v676_v38, 0.0  ;;  %v805_v47 = vmax.f32 %v677_v39, 0.0  ;;  %v806_v48 = vmax.f32 %v678_v40, 0.0  ;;  %v807_v49 = vmax.f32 %v679_v41, 0.0  ;;  %v2131_v40 = vld [vmem:[%s2315_s28 + $0x1f0] sm:$0xff]   ;;  %v2132_v41 = vld [vmem:[%s2315_s28 + $0x1f8] sm:$0xff]  }
  0xa3   : > { %v808_v50 = vmax.f32 %v680_v42, 0.0  ;;  %v809_v51 = vmax.f32 %v681_v43, 0.0  ;;  %v1789_v0 = vpack.c.bf16 %v802_v44, %v802_v44  ;;  %v1790_v54 = vpack.c.bf16 %v803_v45, %v803_v45  ;;  %s2240_s28 = smov [#allocation2]  }
  0xa4   : > { %v1791_v55 = vpack.c.bf16 %v804_v46, %v804_v46  ;;  %v1792_v56 = vpack.c.bf16 %v805_v47, %v805_v47  ;;  %v1793_v59 = vpack.c.bf16 %v806_v48, %v806_v48  ;;  %v1794_v60 = vpack.c.bf16 %v807_v49, %v807_v49  ;;  %s2180_s29 = sshll.u32 %s2240_s28, 4  ;;  %s2181_s29 = int_to_ptr.vmem [resolvable:$false] %s2180_s29 }
  0xa5   : > { %v1795_v61 = vpack.c.bf16 %v808_v50, %v808_v50  ;;  %v1796_v62 = vpack.c.bf16 %v809_v51, %v809_v51  ;;  %1443 = vst.msk [vmem:[%s2357_s8 + $0x1a0] sm:$0xf] %vm1338_vm0, %v1789_v0  ;;  %1444 = vst.msk [vmem:[%s2357_s8 + $0x1a4] sm:$0xf] %vm1338_vm0, %v1790_v54  ;;  %v2044_v2 = vunpack.c.l.bf16 %v2126_v53  ;;  %v2045_v9 = vunpack.c.h.bf16 %v2126_v53  ;;  %s2182_s30 = scalar_lea.vmem %s2181_s29, 16384  ;;  %p2183_p0 = scmp.lt.s32.totalorder %s2912_s20, %s2181_s29 }
  0xa6   : > { %1445 = vst.msk [vmem:[%s2357_s8 + $0x1a8] sm:$0xf] %vm1338_vm0, %v1791_v55  ;;  %1446 = vst.msk [vmem:[%s2357_s8 + $0x1ac] sm:$0xf] %vm1338_vm0, %v1792_v56  ;;  %v2048_v3 = vunpack.c.l.bf16 %v2127_v57  ;;  %v2049_v4 = vunpack.c.h.bf16 %v2127_v57  ;;  %v2052_v5 = vunpack.c.l.bf16 %v2128_v58  ;;  %v2053_v6 = vunpack.c.h.bf16 %v2128_v58  ;;  %p2184_p1 = scmp.lt.s32.totalorder %s2182_s30, %s2176_s27 }
  0xa7   : > { %1447 = vst.msk [vmem:[%s2357_s8 + $0x1b0] sm:$0xf] %vm1338_vm0, %v1793_v59  ;;  %1448 = vst.msk [vmem:[%s2357_s8 + $0x1b4] sm:$0xf] %vm1338_vm0, %v1794_v60  ;;  %v547_v7 = vmul.f32 %v2702_v18, %v2040_v63  ;;  %v548_v8 = vmul.f32 %v2702_v18, %v2041_v1  ;;  %v549_v10 = vmul.f32 %v2702_v18, %v2044_v2  ;;  %v2056_v46 = vunpack.c.l.bf16 %v2129_v34 }
  0xa8   : > { %1449 = vst.msk [vmem:[%s2357_s8 + $0x1b8] sm:$0xf] %vm1338_vm0, %v1795_v61  ;;  %1450 = vst.msk [vmem:[%s2357_s8 + $0x1bc] sm:$0xf] %vm1338_vm0, %v1796_v62  ;;  %v550_v11 = vmul.f32 %v2702_v18, %v2045_v9  ;;  %v551_v12 = vmul.f32 %v2702_v18, %v2048_v3  ;;  %v552_v13 = vmul.f32 %v2702_v18, %v2049_v4  ;;  %v2057_v47 = vunpack.c.h.bf16 %v2129_v34  ;;  %p2185_p2 = por %p2184_p1, %p2183_p0 }
  0xa9   : > { %v553_v14 = vmul.f32 %v2702_v18, %v2052_v5  ;;  %v554_v15 = vmul.f32 %v2702_v18, %v2053_v6  ;;  %v682_v16 = vadd.f32 %v2715_v27, %v547_v7  ;;  %v683_v17 = vadd.f32 %v2715_v27, %v548_v8 }
  0xaa   : > { %v684_v19 = vadd.f32 %v2715_v27, %v549_v10  ;;  %v685_v20 = vadd.f32 %v2715_v27, %v550_v11  ;;  %v686_v21 = vadd.f32 %v2715_v27, %v551_v12  ;;  %v687_v22 = vadd.f32 %v2715_v27, %v552_v13  ;;  %p2186_p3 = pnand %p2185_p2, %p2179_p13 }
  0xab   : > { %v688_v23 = vadd.f32 %v2715_v27, %v553_v14  ;;  %v689_v24 = vadd.f32 %v2715_v27, %v554_v15  ;;  %v810_v25 = vmax.f32 %v682_v16, 0.0  ;;  %v811_v26 = vmax.f32 %v683_v17, 0.0 }
  0xac   : > { %v812_v28 = vmax.f32 %v684_v19, 0.0  ;;  %v813_v29 = vmax.f32 %v685_v20, 0.0  ;;  %v814_v30 = vmax.f32 %v686_v21, 0.0  ;;  %v815_v31 = vmax.f32 %v687_v22, 0.0 }
  0xad   : > { %v816_v32 = vmax.f32 %v688_v23, 0.0  ;;  %v817_v33 = vmax.f32 %v689_v24, 0.0  ;;  %v1797_v36 = vpack.c.bf16 %v810_v25, %v810_v25  ;;  %v1798_v37 = vpack.c.bf16 %v811_v26, %v811_v26 }
  0xae   : > { %v1799_v38 = vpack.c.bf16 %v812_v28, %v812_v28  ;;  %v1800_v39 = vpack.c.bf16 %v813_v29, %v813_v29  ;;  %v1801_v42 = vpack.c.bf16 %v814_v30, %v814_v30  ;;  %v1802_v43 = vpack.c.bf16 %v815_v31, %v815_v31 }
  0xaf   : > { %v1803_v44 = vpack.c.bf16 %v816_v32, %v816_v32  ;;  %v1804_v45 = vpack.c.bf16 %v817_v33, %v817_v33  ;;  %1451 = vst.msk [vmem:[%s2357_s8 + $0x1c0] sm:$0xf] %vm1338_vm0, %v1797_v36  ;;  %1452 = vst.msk [vmem:[%s2357_s8 + $0x1c4] sm:$0xf] %vm1338_vm0, %v1798_v37  ;;  %v2060_v48 = vunpack.c.l.bf16 %v2130_v35  ;;  %v2061_v49 = vunpack.c.h.bf16 %v2130_v35 }
  0xb0   : > { %1453 = vst.msk [vmem:[%s2357_s8 + $0x1c8] sm:$0xf] %vm1338_vm0, %v1799_v38  ;;  %1454 = vst.msk [vmem:[%s2357_s8 + $0x1cc] sm:$0xf] %vm1338_vm0, %v1800_v39  ;;  %v2064_v50 = vunpack.c.l.bf16 %v2131_v40  ;;  %v2065_v51 = vunpack.c.h.bf16 %v2131_v40  ;;  %v2068_v52 = vunpack.c.l.bf16 %v2132_v41  ;;  %v2069_v53 = vunpack.c.h.bf16 %v2132_v41 }
  0xb1   : > { %1455 = vst.msk [vmem:[%s2357_s8 + $0x1d0] sm:$0xf] %vm1338_vm0, %v1801_v42  ;;  %1456 = vst.msk [vmem:[%s2357_s8 + $0x1d4] sm:$0xf] %vm1338_vm0, %v1802_v43  ;;  %v555_v0 = vmul.f32 %v2702_v18, %v2056_v46  ;;  %v556_v54 = vmul.f32 %v2702_v18, %v2057_v47  ;;  %v557_v55 = vmul.f32 %v2702_v18, %v2060_v48 }
  0xb2   : > { %1457 = vst.msk [vmem:[%s2357_s8 + $0x1d8] sm:$0xf] %vm1338_vm0, %v1803_v44  ;;  %1458 = vst.msk [vmem:[%s2357_s8 + $0x1dc] sm:$0xf] %vm1338_vm0, %v1804_v45  ;;  %v558_v56 = vmul.f32 %v2702_v18, %v2061_v49  ;;  %v559_v57 = vmul.f32 %v2702_v18, %v2064_v50  ;;  %v560_v58 = vmul.f32 %v2702_v18, %v2065_v51 }
  0xb3   : > { %v561_v59 = vmul.f32 %v2702_v18, %v2068_v52  ;;  %v562_v60 = vmul.f32 %v2702_v18, %v2069_v53  ;;  %v690_v61 = vadd.f32 %v2715_v27, %v555_v0  ;;  %v691_v62 = vadd.f32 %v2715_v27, %v556_v54 }
  0xb4   : > { %v692_v63 = vadd.f32 %v2715_v27, %v557_v55  ;;  %v693_v1 = vadd.f32 %v2715_v27, %v558_v56  ;;  %v694_v2 = vadd.f32 %v2715_v27, %v559_v57  ;;  %v695_v9 = vadd.f32 %v2715_v27, %v560_v58 }
  0xb5   : > { %v696_v3 = vadd.f32 %v2715_v27, %v561_v59  ;;  %v697_v4 = vadd.f32 %v2715_v27, %v562_v60  ;;  %v818_v5 = vmax.f32 %v690_v61, 0.0  ;;  %v819_v18 = vmax.f32 %v691_v62, 0.0 }
  0xb6   : > { %v820_v6 = vmax.f32 %v692_v63, 0.0  ;;  %v821_v7 = vmax.f32 %v693_v1, 0.0  ;;  %v822_v8 = vmax.f32 %v694_v2, 0.0  ;;  %v823_v10 = vmax.f32 %v695_v9, 0.0 }
  0xb7   : > { %v824_v11 = vmax.f32 %v696_v3, 0.0  ;;  %v825_v12 = vmax.f32 %v697_v4, 0.0  ;;  %v1805_v13 = vpack.c.bf16 %v818_v5, %v818_v5  ;;  %v1806_v14 = vpack.c.bf16 %v819_v18, %v819_v18 }
  0xb8   : > { %v1807_v27 = vpack.c.bf16 %v820_v6, %v820_v6  ;;  %v1808_v15 = vpack.c.bf16 %v821_v7, %v821_v7  ;;  %v1809_v16 = vpack.c.bf16 %v822_v8, %v822_v8  ;;  %v1810_v17 = vpack.c.bf16 %v823_v10, %v823_v10 }
  0xb9   : > { %v1811_v19 = vpack.c.bf16 %v824_v11, %v824_v11  ;;  %v1812_v20 = vpack.c.bf16 %v825_v12, %v825_v12  ;;  %1459 = vst.msk [vmem:[%s2357_s8 + $0x1e0] sm:$0xf] %vm1338_vm0, %v1805_v13  ;;  %1460 = vst.msk [vmem:[%s2357_s8 + $0x1e4] sm:$0xf] %vm1338_vm0, %v1806_v14 }
  0xba   : > { %1461 = vst.msk [vmem:[%s2357_s8 + $0x1e8] sm:$0xf] %vm1338_vm0, %v1807_v27  ;;  %1462 = vst.msk [vmem:[%s2357_s8 + $0x1ec] sm:$0xf] %vm1338_vm0, %v1808_v15 }
  0xbb   : > { %1463 = vst.msk [vmem:[%s2357_s8 + $0x1f0] sm:$0xf] %vm1338_vm0, %v1809_v16  ;;  %1464 = vst.msk [vmem:[%s2357_s8 + $0x1f4] sm:$0xf] %vm1338_vm0, %v1810_v17 }
  0xbc   : > { %1465 = vst.msk [vmem:[%s2357_s8 + $0x1f8] sm:$0xf] %vm1338_vm0, %v1811_v19  ;;  %1466 = vst.msk [vmem:[%s2357_s8 + $0x1fc] sm:$0xf] %vm1338_vm0, %v1812_v20 }
  0xbd   : > { %2189 = shalt.err (!%p2186_p3)
}
  0xbe   : > { %s2190_s4 = scalar_lea.hbm %s2910_s25, 8192  ;;  %s2194_s7 = scalar_lea.hbm %s2976_s3, 16384 }
  0xbf   : > { %p2191_p4 = scmp.ne.s32.totalorder %s2910_s25, %s2190_s4  ;;  %p2195_p9 = scmp.lt.u32.totalorder %s2910_s25, %s2976_s3 }
  0xc0   : > { %p2196_p10 = scmp.lt.u32.totalorder %s2194_s7, %s2190_s4  ;;  %p2198_p12 = scmp.lt.u32.totalorder %s2190_s4, %s2910_s25 }
  0xc1   : > { %p2192_p7 = pnand %p2191_p4, %p2301_p5 }
  0xc2   : > { %p2197_p11 = por %p2196_p10, %p2195_p9 }
  0xc3   : > { %p2193_p8 = pneg %p2192_p7 }
  0xc4   : > { %p2199_p13 = por %p2198_p12, %p2197_p11 }
  0xc6   : > { %p2200_p0 = pnand %p2199_p13, %p2193_p8 }
  0xc8   : > { %2203 = shalt.err (!%p2200_p0)
}
  0xc9   : > { %s2241_s10 = smov 64   ;;  %s2242_s11 = smov 4  }
  0xca   : > { %2133 = dma.vmem_to_hbm [thread:$0]  (%p2301_p5), %s2912_s20, 8192, %s2910_s25, %s2932_s26, %s2241_s10, %s2241_s10, %s2242_s11  }
  0xcb PF: > { %p2139_p1 = scmp.ge.s32.totalorder %s2238_s15, 2  ;;  %s1496_s17 = sand.u32 1, %s2226_s12  }
  0xcc   : > { %s1497_s19 = scalar_lea.sflag [#allocation3], %s1496_s17 }
  0xcd   : > { %p2136_p2 = pnand %p2139_p1, %p2305_p6 }
  0xcf   : > { %2221 = dma.done.wait (!%p2136_p2), %s1497_s19, 8192  }
  0xd0   : > { %2223 = vsyncadd (!%p2136_p2), %s1497_s19, 4294959104  ;;  %p13_p3 = scmp.ge.s32.totalorder %s2288_s18, 4   ;;  %s2979_s12 = smov %s2230_s13 }
  0xd1   : > { %s2980_s13 = smov %s2234_s14  ;;  %s2981_s14 = smov %s2299_s21 }
  0xd2   : > { %s2982_s15 = smov %s2288_s18  ;;  %15 = sbr.rel (!%p13_p3) target bundleno = 3 (0x3), region = 67 }
  0xd9   :  { %1502 = vsyncpa [#allocation3], 1 }
  0xda   :  { %1504 = vsyncpa [#allocation3 + $0x1], 1 }

// kernel: conv_bn.2
= control target key start
LH: loop header
LB: loop body
LE: loop exit
PB: predicated region body
PF: predicated region fallthrough
CT: control target
= control target key end

     0   :  { %s2723_s15 = smov 0   ;;  %s2725_s16 = smov 0   ;;  %s3673_s0 = inlined_call_operand.vmem [shape: bf16[2048,256], index: 0, kind: input, shape index: {}]   ;;  %s3674_s1 = inlined_call_operand.vmem [shape: bf16[256,64], index: 1, kind: input, shape index: {}]   ;;  %s3675_s2 = inlined_call_operand.vmem [shape: bf16[2048,64], index: 2, kind: output, shape index: {0}]   ;;  %s3676_s3 = inlined_call_operand.vmem [shape: f32[4,1,64], index: 3, kind: output, shape index: {1}]   ;;  %s3677_s4 = inlined_call_operand.vmem [shape: f32[4,1,64], index: 4, kind: output, shape index: {2}]  }
   0x1   :  { %s2727_s17 = smov 0  }
   0x2 LB: > { %s34_s18 = sadd.s32 1, %s2690_s16  ;;  %p2275_p0 = scmp.ge.s32.totalorder %s2694_s17, 1  ;;  %s2694_s17 = sphi %s2727_s17, %s15_s17   ;;  %s2690_s16 = sphi %s2725_s16, %s3679_s16   ;;  %s2686_s15 = sphi %s2723_s15, %s3678_s15  }
   0x3   : > { %p36_p1 = scmp.ge.s32.totalorder %s34_s18, 4  ;;  %p217_p2 = scmp.lt.s32.totalorder %s2694_s17, 5 }
   0x5   : > { %s3681_s18 = smov (%p36_p1, %s34_s18), 0  ;;  %p218_p3 = pnand %p2275_p0, %p217_p2 }
   0x6   : > { %v2550_v0 = vld [vmem:[%s3674_s1] sm:$0xff] (!%p218_p3)   ;;  %v2696_v1 = vmov (!%p218_p3), 0   ;;  %s2276_s21 = sshll.u32 (!%p218_p3), %s2686_s15, 6  ;;  %v2551_v2 = vld [vmem:[%s3674_s1 + $0x8] sm:$0xff] (!%p218_p3)   ;;  %v2552_v3 = vld [vmem:[%s3674_s1 + $0x10] sm:$0xff] (!%p218_p3)   ;;  %vm318_vm0 = vcmask (!%p218_p3), 523264  }
   0x7   : > { %221 = sbr.rel (%p218_p3) target bundleno = 498 (0x1f2), region = 28  ;;  %959 = vmatprep.subr.bf16.mxu0 (!%p218_p3), %v2696_v1  ;;  %2492 = vmatprep.subr.bf16.mxu1 (!%p218_p3), %v2696_v1  ;;  %p273_p4 = scmp.lt.s32.totalorder (!%p218_p3), %s2276_s21, 255  ;;  %v2553_v4 = vld [vmem:[%s3674_s1 + $0x18] sm:$0xff] (!%p218_p3)   ;;  %v2554_v5 = vld [vmem:[%s3674_s1 + $0x20] sm:$0xff] (!%p218_p3)   ;;  %v2555_v7 = vld [vmem:[%s3674_s1 + $0x28] sm:$0xff] (!%p218_p3)   ;;  %v2697_v23 = vmov (!%p218_p3), 0.0  }
   0x8   : > { %960 = vmatpush1.bf16.msra.mxu0 (!%p218_p3), %v2550_v0  ;;  %2508 = vmatpush1.bf16.msra.mxu1 (!%p218_p3), %v2550_v0  ;;  %v2556_v8 = vld [vmem:[%s3674_s1 + $0x30] sm:$0xff] (!%p218_p3)   ;;  %v2557_v9 = vld [vmem:[%s3674_s1 + $0x38] sm:$0xff] (!%p218_p3)   ;;  %v2558_v11 = vld [vmem:[%s3674_s1 + $0x40] sm:$0xff] (!%p218_p3)   ;;  %319 = vst.msk [vmem:[#allocation2] sm:$0xff] (!%p218_p3), %vm318_vm0, %v2697_v23  ;;  %vm2033_vm1 = vcmask (!%p218_p3), 519168   ;;  %p301_p5 = scmp.lt.s32.totalorder (!%p218_p3), %s2686_s15, 3 }
   0x9   : > { %961 = vmatprep.subr.bf16.mxu0 (!%p218_p3), %v2696_v1  ;;  %2493 = vmatprep.subr.bf16.mxu1 (!%p218_p3), %v2696_v1  ;;  %v2559_v12 = vld [vmem:[%s3674_s1 + $0x48] sm:$0xff] (!%p218_p3)   ;;  %v2560_v13 = vld [vmem:[%s3674_s1 + $0x50] sm:$0xff] (!%p218_p3)   ;;  %v2561_v14 = vld [vmem:[%s3674_s1 + $0x58] sm:$0xff] (!%p218_p3)   ;;  %320 = vst.msk [vmem:[#allocation2 + $0x8] sm:$0xff] (!%p218_p3), %vm318_vm0, %v2697_v23  ;;  %vm1577_vm2 = vcmask (!%p218_p3), 516096  }
   0xa   : > { %v2562_v15 = vld [vmem:[%s3674_s1 + $0x60] sm:$0xff] (!%p218_p3)   ;;  %v2563_v16 = vld [vmem:[%s3674_s1 + $0x68] sm:$0xff] (!%p218_p3)   ;;  %v2564_v17 = vld [vmem:[%s3674_s1 + $0x70] sm:$0xff] (!%p218_p3)   ;;  %321 = vst.msk [vmem:[#allocation2 + $0x10] sm:$0xff] (!%p218_p3), %vm318_vm0, %v2697_v23 }
   0xb   : > { %v2565_v18 = vld [vmem:[%s3674_s1 + $0x78] sm:$0xff] (!%p218_p3)   ;;  %322 = vst.msk [vmem:[#allocation2 + $0x18] sm:$0xff] (!%p218_p3), %vm318_vm0, %v2697_v23  ;;  %323 = vst.msk [vmem:[#allocation2 + $0x20] sm:$0xff] (!%p218_p3), %vm318_vm0, %v2697_v23 }
   0xc   : > { %962 = vmatpush1.bf16.msra.mxu0 (!%p218_p3), %v2551_v2  ;;  %2509 = vmatpush1.bf16.msra.mxu1 (!%p218_p3), %v2551_v2  ;;  %324 = vst.msk [vmem:[#allocation2 + $0x28] sm:$0xff] (!%p218_p3), %vm318_vm0, %v2697_v23  ;;  %325 = vst.msk [vmem:[#allocation2 + $0x30] sm:$0xff] (!%p218_p3), %vm318_vm0, %v2697_v23 }
   0xd   : > { %963 = vmatprep.subr.bf16.mxu0 (!%p218_p3), %v2696_v1  ;;  %2494 = vmatprep.subr.bf16.mxu1 (!%p218_p3), %v2696_v1  ;;  %326 = vst.msk [vmem:[#allocation2 + $0x38] sm:$0xff] (!%p218_p3), %vm318_vm0, %v2697_v23  ;;  %327 = vst.msk [vmem:[#allocation2 + $0x40] sm:$0xff] (!%p218_p3), %vm318_vm0, %v2697_v23 }
   0xe   : > { %s3683_s21 = smov (!%p273_p4, %s2276_s21), 255  ;;  %328 = vst.msk [vmem:[#allocation2 + $0x48] sm:$0xff] %vm318_vm0, %v2697_v23  ;;  %329 = vst.msk [vmem:[#allocation2 + $0x50] sm:$0xff] %vm318_vm0, %v2697_v23  ;;  %s3685_s15 = smov (!%p301_p5, %s2686_s15), 3 }
   0xf   : > { %s2427_s28 = sshll.u32 %s3683_s21, 3  ;;  %330 = vst.msk [vmem:[#allocation2 + $0x58] sm:$0xff] %vm318_vm0, %v2697_v23  ;;  %331 = vst.msk [vmem:[#allocation2 + $0x60] sm:$0xff] %vm318_vm0, %v2697_v23  ;;  %s306_s14 = scalar_lea.vmem %s3676_s3, %s3685_s15 }
  0x10   : > { %964 = vmatpush1.bf16.msra.mxu0 %v2552_v3  ;;  %2510 = vmatpush1.bf16.msra.mxu1 %v2552_v3  ;;  %s2773_s7 = scalar_lea.vmem %s3673_s0, %s2427_s28  ;;  %332 = vst.msk [vmem:[#allocation2 + $0x68] sm:$0xff] %vm318_vm0, %v2697_v23  ;;  %333 = vst.msk [vmem:[#allocation2 + $0x70] sm:$0xff] %vm318_vm0, %v2697_v23  ;;  %s312_s22 = scalar_lea.vmem %s3677_s4, %s3685_s15 }
  0x11   : > { %965 = vmatprep.subr.bf16.mxu0 %v2696_v1  ;;  %2495 = vmatprep.subr.bf16.mxu1 %v2696_v1  ;;  %v2568_v6 = vld [vmem:[%s2773_s7 + $0x4] ss:$8 sps:$4 sm:$0xff]   ;;  %v2835_v19 = vld [vmem:[%s2773_s7] ss:$8 sps:$4 sm:$0xff]   ;;  %v2841_v21 = vld [vmem:[%s2773_s7 + $0x14] ss:$8 sps:$4 sm:$0xff]  }
  0x12   : > { %991 = vmatprep.mubr.bf16.mxu0 %v2568_v6  ;;  %v2592_v10 = vld [vmem:[%s2773_s7 + $0x104] ss:$8 sps:$4 sm:$0xff]   ;;  %v2838_v20 = vld [vmem:[%s2773_s7 + $0x100] ss:$8 sps:$4 sm:$0xff]   ;;  %v2844_v22 = vld [vmem:[%s2773_s7 + $0x114] ss:$8 sps:$4 sm:$0xff]  }
  0x13   : > { %1119 = vmatprep.mubr.bf16.mxu1 %v2592_v10  ;;  %334 = vst.msk [vmem:[#allocation2 + $0x78] sm:$0xff] %vm318_vm0, %v2697_v23  ;;  %335 = vst.msk [vmem:[#allocation2 + $0x80] sm:$0xff] %vm318_vm0, %v2697_v23  ;;  %v2571_v24 = vld [vmem:[%s2773_s7 + $0x10] ss:$8 sps:$4 sm:$0xff]   ;;  %v2572_v26 = vld [vmem:[%s2773_s7 + $0x24] ss:$8 sps:$4 sm:$0xff]  }
  0x14   : > { %966 = vmatpush1.bf16.msra.mxu0 %v2553_v4  ;;  %2511 = vmatpush1.bf16.msra.mxu1 %v2553_v4  ;;  %336 = vst.msk [vmem:[#allocation2 + $0x88] sm:$0xff] %vm318_vm0, %v2697_v23  ;;  %337 = vst.msk [vmem:[#allocation2 + $0x90] sm:$0xff] %vm318_vm0, %v2697_v23  ;;  %v2598_v25 = vld [vmem:[%s2773_s7 + $0x110] ss:$8 sps:$4 sm:$0xff]   ;;  %v2602_v27 = vld [vmem:[%s2773_s7 + $0x124] ss:$8 sps:$4 sm:$0xff]  }
  0x15   : > { %967 = vmatprep.subr.bf16.mxu0 %v2696_v1  ;;  %2496 = vmatprep.subr.bf16.mxu1 %v2696_v1  ;;  %338 = vst.msk [vmem:[#allocation2 + $0x98] sm:$0xff] %vm318_vm0, %v2697_v23  ;;  %339 = vst.msk [vmem:[#allocation2 + $0xa0] sm:$0xff] %vm318_vm0, %v2697_v23  ;;  %v2574_v28 = vld [vmem:[%s2773_s7 + $0x20] ss:$8 sps:$4 sm:$0xff]   ;;  %v2575_v30 = vld [vmem:[%s2773_s7 + $0x34] ss:$8 sps:$4 sm:$0xff]  }
  0x16   : > { %340 = vst.msk [vmem:[#allocation2 + $0xa8] sm:$0xff] %vm318_vm0, %v2697_v23  ;;  %341 = vst.msk [vmem:[#allocation2 + $0xb0] sm:$0xff] %vm318_vm0, %v2697_v23  ;;  %v2604_v29 = vld [vmem:[%s2773_s7 + $0x120] ss:$8 sps:$4 sm:$0xff]   ;;  %v2608_v31 = vld [vmem:[%s2773_s7 + $0x134] ss:$8 sps:$4 sm:$0xff]  }
  0x17   : > { %342 = vst.msk [vmem:[#allocation2 + $0xb8] sm:$0xff] %vm318_vm0, %v2697_v23  ;;  %343 = vst.msk [vmem:[#allocation2 + $0xc0] sm:$0xff] %vm318_vm0, %v2697_v23  ;;  %v2577_v32 = vld [vmem:[%s2773_s7 + $0x30] ss:$8 sps:$4 sm:$0xff]   ;;  %v2578_v34 = vld [vmem:[%s2773_s7 + $0x44] ss:$8 sps:$4 sm:$0xff]  }
  0x18   : > { %968 = vmatpush1.bf16.msra.mxu0 %v2554_v5  ;;  %2512 = vmatpush1.bf16.msra.mxu1 %v2554_v5  ;;  %344 = vst.msk [vmem:[#allocation2 + $0xc8] sm:$0xff] %vm318_vm0, %v2697_v23  ;;  %345 = vst.msk [vmem:[#allocation2 + $0xd0] sm:$0xff] %vm318_vm0, %v2697_v23  ;;  %v2610_v33 = vld [vmem:[%s2773_s7 + $0x130] ss:$8 sps:$4 sm:$0xff]   ;;  %v2614_v35 = vld [vmem:[%s2773_s7 + $0x144] ss:$8 sps:$4 sm:$0xff]  }
  0x19   : > { %969 = vmatprep.subr.bf16.mxu0 %v2696_v1  ;;  %2497 = vmatprep.subr.bf16.mxu1 %v2696_v1  ;;  %346 = vst.msk [vmem:[#allocation2 + $0xd8] sm:$0xff] %vm318_vm0, %v2697_v23  ;;  %347 = vst.msk [vmem:[#allocation2 + $0xe0] sm:$0xff] %vm318_vm0, %v2697_v23  ;;  %v2580_v36 = vld [vmem:[%s2773_s7 + $0x40] ss:$8 sps:$4 sm:$0xff]   ;;  %v2581_v38 = vld [vmem:[%s2773_s7 + $0x54] ss:$8 sps:$4 sm:$0xff]  }
  0x1a   : > { %348 = vst.msk [vmem:[#allocation2 + $0xe8] sm:$0xff] %vm318_vm0, %v2697_v23  ;;  %349 = vst.msk [vmem:[#allocation2 + $0xf0] sm:$0xff] %vm318_vm0, %v2697_v23  ;;  %v2616_v37 = vld [vmem:[%s2773_s7 + $0x140] ss:$8 sps:$4 sm:$0xff]   ;;  %v2620_v39 = vld [vmem:[%s2773_s7 + $0x154] ss:$8 sps:$4 sm:$0xff]  }
  0x1b   : > { %350 = vst.msk [vmem:[#allocation2 + $0xf8] sm:$0xff] %vm318_vm0, %v2697_v23  ;;  %351 = vst.msk [vmem:[#allocation2 + $0x100] sm:$0xff] %vm318_vm0, %v2697_v23  ;;  %v2583_v40 = vld [vmem:[%s2773_s7 + $0x50] ss:$8 sps:$4 sm:$0xff]   ;;  %v2584_v42 = vld [vmem:[%s2773_s7 + $0x64] ss:$8 sps:$4 sm:$0xff]  }
  0x1c   : > { %970 = vmatpush1.bf16.msra.mxu0 %v2555_v7  ;;  %2513 = vmatpush1.bf16.msra.mxu1 %v2555_v7  ;;  %352 = vst.msk [vmem:[#allocation2 + $0x108] sm:$0xff] %vm318_vm0, %v2697_v23  ;;  %353 = vst.msk [vmem:[#allocation2 + $0x110] sm:$0xff] %vm318_vm0, %v2697_v23  ;;  %v2622_v41 = vld [vmem:[%s2773_s7 + $0x150] ss:$8 sps:$4 sm:$0xff]   ;;  %v2626_v43 = vld [vmem:[%s2773_s7 + $0x164] ss:$8 sps:$4 sm:$0xff]  }
  0x1d   : > { %971 = vmatprep.subr.bf16.mxu0 %v2696_v1  ;;  %2498 = vmatprep.subr.bf16.mxu1 %v2696_v1  ;;  %354 = vst.msk [vmem:[#allocation2 + $0x118] sm:$0xff] %vm318_vm0, %v2697_v23  ;;  %355 = vst.msk [vmem:[#allocation2 + $0x120] sm:$0xff] %vm318_vm0, %v2697_v23  ;;  %v2586_v44 = vld [vmem:[%s2773_s7 + $0x60] ss:$8 sps:$4 sm:$0xff]   ;;  %v2587_v46 = vld [vmem:[%s2773_s7 + $0x74] ss:$8 sps:$4 sm:$0xff]  }
  0x1e   : > { %356 = vst.msk [vmem:[#allocation2 + $0x128] sm:$0xff] %vm318_vm0, %v2697_v23  ;;  %357 = vst.msk [vmem:[#allocation2 + $0x130] sm:$0xff] %vm318_vm0, %v2697_v23  ;;  %v2628_v45 = vld [vmem:[%s2773_s7 + $0x160] ss:$8 sps:$4 sm:$0xff]   ;;  %v2632_v47 = vld [vmem:[%s2773_s7 + $0x174] ss:$8 sps:$4 sm:$0xff]  }
  0x1f   : > { %358 = vst.msk [vmem:[#allocation2 + $0x138] sm:$0xff] %vm318_vm0, %v2697_v23  ;;  %359 = vst.msk [vmem:[#allocation2 + $0x140] sm:$0xff] %vm318_vm0, %v2697_v23  ;;  %v2589_v48 = vld [vmem:[%s2773_s7 + $0x70] ss:$8 sps:$4 sm:$0xff]   ;;  %v2593_v50 = vld [vmem:[%s2773_s7 + $0x84] ss:$8 sps:$4 sm:$0xff]  }
  0x20   : > { %972 = vmatpush1.bf16.msra.mxu0 %v2556_v8  ;;  %2514 = vmatpush1.bf16.msra.mxu1 %v2556_v8  ;;  %360 = vst.msk [vmem:[#allocation2 + $0x148] sm:$0xff] %vm318_vm0, %v2697_v23  ;;  %361 = vst.msk [vmem:[#allocation2 + $0x150] sm:$0xff] %vm318_vm0, %v2697_v23  ;;  %v2634_v49 = vld [vmem:[%s2773_s7 + $0x170] ss:$8 sps:$4 sm:$0xff]   ;;  %v2638_v51 = vld [vmem:[%s2773_s7 + $0x184] ss:$8 sps:$4 sm:$0xff]  }
  0x21   : > { %973 = vmatprep.subr.bf16.mxu0 %v2696_v1  ;;  %2499 = vmatprep.subr.bf16.mxu1 %v2696_v1  ;;  %362 = vst.msk [vmem:[#allocation2 + $0x158] sm:$0xff] %vm318_vm0, %v2697_v23  ;;  %363 = vst.msk [vmem:[#allocation2 + $0x160] sm:$0xff] %vm318_vm0, %v2697_v23  ;;  %v2595_v52 = vld [vmem:[%s2773_s7 + $0x80] ss:$8 sps:$4 sm:$0xff]   ;;  %v2599_v54 = vld [vmem:[%s2773_s7 + $0x94] ss:$8 sps:$4 sm:$0xff]  }
  0x22   : > { %364 = vst.msk [vmem:[#allocation2 + $0x168] sm:$0xff] %vm318_vm0, %v2697_v23  ;;  %365 = vst.msk [vmem:[#allocation2 + $0x170] sm:$0xff] %vm318_vm0, %v2697_v23  ;;  %v2640_v53 = vld [vmem:[%s2773_s7 + $0x180] ss:$8 sps:$4 sm:$0xff]   ;;  %v2641_v55 = vld [vmem:[%s2773_s7 + $0x194] ss:$8 sps:$4 sm:$0xff]  }
  0x23   : > { %366 = vst.msk [vmem:[#allocation2 + $0x178] sm:$0xff] %vm318_vm0, %v2697_v23  ;;  %367 = vst.msk [vmem:[#allocation2 + $0x180] sm:$0xff] %vm318_vm0, %v2697_v23  ;;  %v2601_v56 = vld [vmem:[%s2773_s7 + $0x90] ss:$8 sps:$4 sm:$0xff]   ;;  %v2605_v58 = vld [vmem:[%s2773_s7 + $0xa4] ss:$8 sps:$4 sm:$0xff]  }
  0x24   : > { %974 = vmatpush1.bf16.msra.mxu0 %v2557_v9  ;;  %2515 = vmatpush1.bf16.msra.mxu1 %v2557_v9  ;;  %368 = vst.msk [vmem:[#allocation2 + $0x188] sm:$0xff] %vm318_vm0, %v2697_v23  ;;  %369 = vst.msk [vmem:[#allocation2 + $0x190] sm:$0xff] %vm318_vm0, %v2697_v23  ;;  %v2643_v57 = vld [vmem:[%s2773_s7 + $0x190] ss:$8 sps:$4 sm:$0xff]   ;;  %v2644_v59 = vld [vmem:[%s2773_s7 + $0x1a4] ss:$8 sps:$4 sm:$0xff]  }
  0x25   : > { %975 = vmatprep.subr.bf16.mxu0 %v2696_v1  ;;  %2500 = vmatprep.subr.bf16.mxu1 %v2696_v1  ;;  %370 = vst.msk [vmem:[#allocation2 + $0x198] sm:$0xff] %vm318_vm0, %v2697_v23  ;;  %371 = vst.msk [vmem:[#allocation2 + $0x1a0] sm:$0xff] %vm318_vm0, %v2697_v23  ;;  %v2607_v60 = vld [vmem:[%s2773_s7 + $0xa0] ss:$8 sps:$4 sm:$0xff]   ;;  %v2611_v62 = vld [vmem:[%s2773_s7 + $0xb4] ss:$8 sps:$4 sm:$0xff]  }
  0x26   : > { %372 = vst.msk [vmem:[#allocation2 + $0x1a8] sm:$0xff] %vm318_vm0, %v2697_v23  ;;  %373 = vst.msk [vmem:[#allocation2 + $0x1b0] sm:$0xff] %vm318_vm0, %v2697_v23  ;;  %v2646_v61 = vld [vmem:[%s2773_s7 + $0x1a0] ss:$8 sps:$4 sm:$0xff]   ;;  %v2647_v63 = vld [vmem:[%s2773_s7 + $0x1b4] ss:$8 sps:$4 sm:$0xff]  }
  0x27   : > { %374 = vst.msk [vmem:[#allocation2 + $0x1b8] sm:$0xff] %vm318_vm0, %v2697_v23  ;;  %375 = vst.msk [vmem:[#allocation2 + $0x1c0] sm:$0xff] %vm318_vm0, %v2697_v23  ;;  %v2613_v0 = vld [vmem:[%s2773_s7 + $0xb0] ss:$8 sps:$4 sm:$0xff]   ;;  %v2617_v2 = vld [vmem:[%s2773_s7 + $0xc4] ss:$8 sps:$4 sm:$0xff]  }
  0x28   : > { %976 = vmatpush1.bf16.msra.mxu0 %v2558_v11  ;;  %2516 = vmatpush1.bf16.msra.mxu1 %v2558_v11  ;;  %376 = vst.msk [vmem:[#allocation2 + $0x1c8] sm:$0xff] %vm318_vm0, %v2697_v23  ;;  %377 = vst.msk [vmem:[#allocation2 + $0x1d0] sm:$0xff] %vm318_vm0, %v2697_v23  ;;  %v2650_v3 = vld [vmem:[%s2773_s7 + $0x1c4] ss:$8 sps:$4 sm:$0xff]   ;;  %v2619_v4 = vld [vmem:[%s2773_s7 + $0xc0] ss:$8 sps:$4 sm:$0xff]  }
  0x29   : > { %977 = vmatprep.subr.bf16.mxu0 %v2696_v1  ;;  %2501 = vmatprep.subr.bf16.mxu1 %v2696_v1  ;;  %378 = vst.msk [vmem:[#allocation2 + $0x1d8] sm:$0xff] %vm318_vm0, %v2697_v23  ;;  %379 = vst.msk [vmem:[#allocation2 + $0x1e0] sm:$0xff] %vm318_vm0, %v2697_v23  ;;  %v2652_v5 = vld [vmem:[%s2773_s7 + $0x1c0] ss:$8 sps:$4 sm:$0xff]   ;;  %v2623_v6 = vld [vmem:[%s2773_s7 + $0xd4] ss:$8 sps:$4 sm:$0xff]  }
  0x2a   : > { %380 = vst.msk [vmem:[#allocation2 + $0x1e8] sm:$0xff] %vm318_vm0, %v2697_v23  ;;  %381 = vst.msk [vmem:[#allocation2 + $0x1f0] sm:$0xff] %vm318_vm0, %v2697_v23  ;;  %v2653_v7 = vld [vmem:[%s2773_s7 + $0x1d4] ss:$8 sps:$4 sm:$0xff]   ;;  %v2625_v8 = vld [vmem:[%s2773_s7 + $0xd0] ss:$8 sps:$4 sm:$0xff]  }
  0x2b   : > { %382 = vst.msk [vmem:[#allocation2 + $0x1f8] sm:$0xff] %vm318_vm0, %v2697_v23  ;;  %v2655_v9 = vld [vmem:[%s2773_s7 + $0x1d0] ss:$8 sps:$4 sm:$0xff]   ;;  %v2629_v10 = vld [vmem:[%s2773_s7 + $0xe4] ss:$8 sps:$4 sm:$0xff]  }
  0x2c   : > { %978 = vmatpush1.bf16.msra.mxu0 %v2559_v12  ;;  %2517 = vmatpush1.bf16.msra.mxu1 %v2559_v12  ;;  %v2656_v11 = vld [vmem:[%s2773_s7 + $0x1e4] ss:$8 sps:$4 sm:$0xff]   ;;  %v2631_v12 = vld [vmem:[%s2773_s7 + $0xe0] ss:$8 sps:$4 sm:$0xff]  }
  0x2d   : > { %979 = vmatprep.subr.bf16.mxu0 %v2696_v1  ;;  %2502 = vmatprep.subr.bf16.mxu1 %v2696_v1  ;;  %v416_v23 = vld [vmem:[#allocation2 + $0x108] sm:$0xff] }
  0x30   : > { %980 = vmatpush1.bf16.msra.mxu0 %v2560_v13  ;;  %2518 = vmatpush1.bf16.msra.mxu1 %v2560_v13  ;;  %v2658_v13 = vld [vmem:[%s2773_s7 + $0x1e0] ss:$8 sps:$4 sm:$0xff]  }
  0x31   : > { %981 = vmatprep.subr.bf16.mxu0 %v2696_v1  ;;  %2503 = vmatprep.subr.bf16.mxu1 %v2696_v1 }
  0x34   : > { %982 = vmatpush1.bf16.msra.mxu0 %v2561_v14  ;;  %2519 = vmatpush1.bf16.msra.mxu1 %v2561_v14  ;;  %v2635_v14 = vld [vmem:[%s2773_s7 + $0xf4] ss:$8 sps:$4 sm:$0xff]  }
  0x35   : > { %983 = vmatprep.subr.bf16.mxu0 %v2696_v1  ;;  %2504 = vmatprep.subr.bf16.mxu1 %v2696_v1 }
  0x38   : > { %984 = vmatpush1.bf16.msra.mxu0 %v2562_v15  ;;  %2520 = vmatpush1.bf16.msra.mxu1 %v2562_v15  ;;  %v2659_v15 = vld [vmem:[%s2773_s7 + $0x1f4] ss:$8 sps:$4 sm:$0xff]  }
  0x39   : > { %985 = vmatprep.subr.bf16.mxu0 %v2696_v1  ;;  %2505 = vmatprep.subr.bf16.mxu1 %v2696_v1 }
  0x3c   : > { %986 = vmatpush1.bf16.msra.mxu0 %v2563_v16  ;;  %2521 = vmatpush1.bf16.msra.mxu1 %v2563_v16  ;;  %v2637_v16 = vld [vmem:[%s2773_s7 + $0xf0] ss:$8 sps:$4 sm:$0xff]  }
  0x3d   : > { %987 = vmatprep.subr.bf16.mxu0 %v2696_v1  ;;  %2506 = vmatprep.subr.bf16.mxu1 %v2696_v1 }
  0x40   : > { %988 = vmatpush1.bf16.msra.mxu0 %v2564_v17  ;;  %2522 = vmatpush1.bf16.msra.mxu1 %v2564_v17  ;;  %v2661_v17 = vld [vmem:[%s2773_s7 + $0x1f0] ss:$8 sps:$4 sm:$0xff]  }
  0x41   : > { %989 = vmatprep.subr.bf16.mxu0 %v2696_v1  ;;  %2507 = vmatprep.subr.bf16.mxu1 %v2696_v1  ;;  %v2649_v1 = vld [vmem:[%s2773_s7 + $0x1b0] ss:$8 sps:$4 sm:$0xff]   ;;  %s2280_s7 = sshll.u32 %s3683_s21, 2 }
  0x42   : > { %s3044_s12 = scalar_lea.vmem %s3675_s2, %s2280_s7 }
  0x44   : > { %990 = vmatpush1.bf16.msra.mxu0 %v2565_v18  ;;  %2523 = vmatpush1.bf16.msra.mxu1 %v2565_v18  ;;  %v383_v18 = vld [vmem:[#allocation2] sm:$0xff] }
  0x47   : > { %992 = vmatmul.mubr.bf16.vlgmr.msra.gmra.mrb[0].mxu0 %v2835_v19  ;;  %1120 = vmatmul.mubr.bf16.vlgmr.msra.gmra.mrb[0].mxu1 %v2838_v20  ;;  %v415_v19 = vld [vmem:[#allocation2 + $0x100] sm:$0xff] }
  0x48   : > { %999 = vmatprep.mubr.bf16.mxu0 %v2841_v21  ;;  %1127 = vmatprep.mubr.bf16.mxu1 %v2844_v22  ;;  %v384_v21 = vld [vmem:[#allocation2 + $0x8] sm:$0xff] }
  0x4f   : > { %1000 = vmatmul.mubr.bf16.gmra.mrb[4].mxu0 %v2571_v24  ;;  %1128 = vmatmul.mubr.bf16.gmra.mrb[4].mxu1 %v2598_v25 }
  0x50   : > { %1007 = vmatprep.mubr.bf16.mxu0 %v2572_v26  ;;  %1135 = vmatprep.mubr.bf16.mxu1 %v2602_v27 }
  0x57   : > { %1008 = vmatmul.mubr.bf16.gmra.mrb[8].mxu0 %v2574_v28  ;;  %1136 = vmatmul.mubr.bf16.gmra.mrb[8].mxu1 %v2604_v29 }
  0x58   : > { %1015 = vmatprep.mubr.bf16.mxu0 %v2575_v30  ;;  %1143 = vmatprep.mubr.bf16.mxu1 %v2608_v31 }
  0x5f   : > { %1016 = vmatmul.mubr.bf16.gmra.mrb[12].mxu0 %v2577_v32  ;;  %1144 = vmatmul.mubr.bf16.gmra.mrb[12].mxu1 %v2610_v33 }
  0x60   : > { %1023 = vmatprep.mubr.bf16.mxu0 %v2578_v34  ;;  %1151 = vmatprep.mubr.bf16.mxu1 %v2614_v35  ;;  %v385_v34 = vld [vmem:[#allocation2 + $0x10] sm:$0xff] }
  0x61   : > { %v417_v35 = vld [vmem:[#allocation2 + $0x110] sm:$0xff] }
  0x67   : > { %1024 = vmatmul.mubr.bf16.gmra.mrb[16].mxu0 %v2580_v36  ;;  %1152 = vmatmul.mubr.bf16.gmra.mrb[16].mxu1 %v2616_v37  ;;  %v386_v37 = vld [vmem:[#allocation2 + $0x18] sm:$0xff] }
  0x68   : > { %1031 = vmatprep.mubr.bf16.mxu0 %v2581_v38  ;;  %1159 = vmatprep.mubr.bf16.mxu1 %v2620_v39 }
  0x6f   : > { %1032 = vmatmul.mubr.bf16.gmra.mrb[20].mxu0 %v2583_v40  ;;  %1160 = vmatmul.mubr.bf16.gmra.mrb[20].mxu1 %v2622_v41 }
  0x70   : > { %1039 = vmatprep.mubr.bf16.mxu0 %v2584_v42  ;;  %1167 = vmatprep.mubr.bf16.mxu1 %v2626_v43  ;;  %v418_v43 = vld [vmem:[#allocation2 + $0x118] sm:$0xff] }
  0x77   : > { %1040 = vmatmul.mubr.bf16.gmra.mrb[24].mxu0 %v2586_v44  ;;  %1168 = vmatmul.mubr.bf16.gmra.mrb[24].mxu1 %v2628_v45 }
  0x78   : > { %1047 = vmatprep.mubr.bf16.mxu0 %v2587_v46  ;;  %1175 = vmatprep.mubr.bf16.mxu1 %v2632_v47 }
  0x7f   : > { %1048 = vmatmul.mubr.bf16.gmra.mrb[28].mxu0 %v2589_v48  ;;  %1176 = vmatmul.mubr.bf16.gmra.mrb[28].mxu1 %v2634_v49 }
  0x80   : > { %1055 = vmatprep.mubr.bf16.mxu0 %v2593_v50  ;;  %1183 = vmatprep.mubr.bf16.mxu1 %v2638_v51 }
  0x87   : > { %1056 = vmatmul.mubr.bf16.gmra.mrb[32].mxu0 %v2595_v52  ;;  %1184 = vmatmul.mubr.bf16.gmra.mrb[32].mxu1 %v2640_v53 }
  0x88   : > { %1063 = vmatprep.mubr.bf16.mxu0 %v2599_v54  ;;  %1191 = vmatprep.mubr.bf16.mxu1 %v2641_v55 }
  0x8f   : > { %1064 = vmatmul.mubr.bf16.gmra.mrb[36].mxu0 %v2601_v56  ;;  %1192 = vmatmul.mubr.bf16.gmra.mrb[36].mxu1 %v2643_v57  ;;  %v387_v57 = vld [vmem:[#allocation2 + $0x20] sm:$0xff] }
  0x90   : > { %1071 = vmatprep.mubr.bf16.mxu0 %v2605_v58  ;;  %1199 = vmatprep.mubr.bf16.mxu1 %v2644_v59  ;;  %v419_v58 = vld [vmem:[#allocation2 + $0x120] sm:$0xff] }
  0x97   : > { %1072 = vmatmul.mubr.bf16.gmra.mrb[40].mxu0 %v2607_v60  ;;  %1200 = vmatmul.mubr.bf16.gmra.mrb[40].mxu1 %v2646_v61  ;;  %v388_v61 = vld [vmem:[#allocation2 + $0x28] sm:$0xff] }
  0x98   : > { %1079 = vmatprep.mubr.bf16.mxu0 %v2611_v62  ;;  %1207 = vmatprep.mubr.bf16.mxu1 %v2647_v63 }
  0x9f   : > { %1080 = vmatmul.mubr.bf16.gmra.mrb[44].mxu0 %v2613_v0  ;;  %1208 = vmatmul.mubr.bf16.gmra.mrb[44].mxu1 %v2649_v1 }
  0xa0   : > { %1087 = vmatprep.mubr.bf16.mxu0 %v2617_v2  ;;  %1215 = vmatprep.mubr.bf16.mxu1 %v2650_v3 }
  0xa7   : > { %1088 = vmatmul.mubr.bf16.gmra.mrb[48].mxu0 %v2619_v4  ;;  %1216 = vmatmul.mubr.bf16.gmra.mrb[48].mxu1 %v2652_v5 }
  0xa8   : > { %1095 = vmatprep.mubr.bf16.mxu0 %v2623_v6  ;;  %1223 = vmatprep.mubr.bf16.mxu1 %v2653_v7 }
  0xaf   : > { %1096 = vmatmul.mubr.bf16.gmra.mrb[52].mxu0 %v2625_v8  ;;  %1224 = vmatmul.mubr.bf16.gmra.mrb[52].mxu1 %v2655_v9 }
  0xb0   : > { %1103 = vmatprep.mubr.bf16.mxu0 %v2629_v10  ;;  %1231 = vmatprep.mubr.bf16.mxu1 %v2656_v11 }
  0xb7   : > { %1104 = vmatmul.mubr.bf16.gmra.mrb[56].mxu0 %v2631_v12  ;;  %1232 = vmatmul.mubr.bf16.gmra.mrb[56].mxu1 %v2658_v13  ;;  %v420_v13 = vld [vmem:[#allocation2 + $0x128] sm:$0xff] }
  0xb8   : > { %1111 = vmatprep.mubr.bf16.mxu0 %v2635_v14  ;;  %1239 = vmatprep.mubr.bf16.mxu1 %v2659_v15 }
  0xbf   : > { %1112 = vmatmul.mubr.bf16.gmra.mrb[60].mxu0 %v2637_v16  ;;  %1240 = vmatmul.mubr.bf16.gmra.mrb[60].mxu1 %v2661_v17  ;;  %v389_v16 = vld [vmem:[#allocation2 + $0x30] sm:$0xff] }
  0xc0   : > { %v421_v17 = vld [vmem:[#allocation2 + $0x130] sm:$0xff] }
 0x11a   : > { %v993_v20 = vpop.f32.mrb[0].mxu0  ;;  %v1121_v22 = vpop.f32.mrb[0].mxu1 }
 0x11b   : > { %v1248_v24 = vadd.f32 %v993_v20, %v383_v18  ;;  %v995_v25 = vpop.f32.mrb[1].mxu0  ;;  %v1280_v26 = vadd.f32 %v1121_v22, %v415_v19  ;;  %v1123_v27 = vpop.f32.mrb[1].mxu1 }
 0x11c   : > { %v996_v28 = vpop.f32.mrb[2].mxu0  ;;  %v1124_v29 = vpop.f32.mrb[2].mxu1 }
 0x11d   : > { %1313 = vst.msk [vmem:[#allocation2] sm:$0xff] %vm318_vm0, %v1248_v24  ;;  %v1249_v30 = vadd.f32 %v996_v28, %v384_v21  ;;  %v998_v31 = vpop.f32.mrb[3].mxu0  ;;  %1345 = vst.msk [vmem:[#allocation2 + $0x100] sm:$0xff] %vm318_vm0, %v1280_v26  ;;  %v1281_v32 = vadd.f32 %v1124_v29, %v416_v23  ;;  %v1126_v33 = vpop.f32.mrb[3].mxu1  ;;  %v390_v21 = vld [vmem:[#allocation2 + $0x38] sm:$0xff] }
 0x11f   : > { %1314 = vst.msk [vmem:[#allocation2 + $0x8] sm:$0xff] %vm318_vm0, %v1249_v30  ;;  %1346 = vst.msk [vmem:[#allocation2 + $0x108] sm:$0xff] %vm318_vm0, %v1281_v32 }
 0x122   : > { %v1001_v36 = vpop.f32.mrb[4].mxu0  ;;  %v1129_v38 = vpop.f32.mrb[4].mxu1 }
 0x123   : > { %v1250_v39 = vadd.f32 %v1001_v36, %v385_v34  ;;  %v1003_v40 = vpop.f32.mrb[5].mxu0  ;;  %v1282_v41 = vadd.f32 %v1129_v38, %v417_v35  ;;  %v1131_v42 = vpop.f32.mrb[5].mxu1  ;;  %v422_v34 = vld [vmem:[#allocation2 + $0x138] sm:$0xff] }
 0x124   : > { %v3046_v44 = vld [vmem:[#allocation2] sm:$0xff]  ;;  %v1004_v45 = vpop.f32.mrb[6].mxu0  ;;  %v1132_v47 = vpop.f32.mrb[6].mxu1 }
 0x125   : > { %v1412_v46 = vld [vmem:[#allocation2 + $0x100] sm:$0xff]  ;;  %v2428_v48 = vpack.c.bf16 %v3046_v44, %v3046_v44  ;;  %1315 = vst.msk [vmem:[#allocation2 + $0x10] sm:$0xff] %vm318_vm0, %v1250_v39  ;;  %v1251_v49 = vadd.f32 %v1004_v45, %v386_v37  ;;  %v1006_v50 = vpop.f32.mrb[7].mxu0  ;;  %1347 = vst.msk [vmem:[#allocation2 + $0x110] sm:$0xff] %vm318_vm0, %v1282_v41  ;;  %v1134_v51 = vpop.f32.mrb[7].mxu1  ;;  %v1283_v55 = vadd.f32 %v1132_v47, %v418_v43  ;;  %v392_v43 = vld [vmem:[#allocation2 + $0x48] sm:$0xff] }
 0x126   : > { %v3052_v52 = vld [vmem:[#allocation2 + $0x8] sm:$0xff]  ;;  %v2460_v53 = vpack.c.bf16 %v1412_v46, %v1412_v46  ;;  %v391_v39 = vld [vmem:[#allocation2 + $0x40] sm:$0xff] }
 0x127   : > { %v1413_v54 = vld [vmem:[#allocation2 + $0x108] sm:$0xff]  ;;  %2034 = vst.msk [vmem:[%s3044_s12] sm:$0xf] %vm2033_vm1, %v2428_v48  ;;  %v2429_v56 = vpack.c.bf16 %v3052_v52, %v3052_v52  ;;  %v423_v41 = vld [vmem:[#allocation2 + $0x140] sm:$0xff] }
 0x128   : > { %1316 = vst.msk [vmem:[#allocation2 + $0x18] sm:$0xff] %vm318_vm0, %v1251_v49  ;;  %1348 = vst.msk [vmem:[#allocation2 + $0x118] sm:$0xff] %vm318_vm0, %v1283_v55  ;;  %v2461_v59 = vpack.c.bf16 %v1413_v54, %v1413_v54 }
 0x129   : > { %2066 = vst.msk [vmem:[%s3044_s12 + $0x80] sm:$0xf] %vm2033_vm1, %v2460_v53  ;;  %2035 = vst.msk [vmem:[%s3044_s12 + $0x4] sm:$0xf] %vm2033_vm1, %v2429_v56 }
 0x12a   : > { %v1009_v60 = vpop.f32.mrb[8].mxu0  ;;  %v1137_v62 = vpop.f32.mrb[8].mxu1  ;;  %2067 = vst.msk [vmem:[%s3044_s12 + $0x84] sm:$0xf] %vm2033_vm1, %v2461_v59 }
 0x12b   : > { %v1252_v63 = vadd.f32 %v1009_v60, %v387_v57  ;;  %v1011_v0 = vpop.f32.mrb[9].mxu0  ;;  %v1284_v1 = vadd.f32 %v1137_v62, %v419_v58  ;;  %v1139_v2 = vpop.f32.mrb[9].mxu1  ;;  %v424_v62 = vld [vmem:[#allocation2 + $0x148] sm:$0xff] }
 0x12c   : > { %v3066_v3 = vld [vmem:[#allocation2 + $0x10] sm:$0xff]  ;;  %v1012_v4 = vpop.f32.mrb[10].mxu0  ;;  %v1140_v6 = vpop.f32.mrb[10].mxu1 }
 0x12d   : > { %v1414_v5 = vld [vmem:[#allocation2 + $0x110] sm:$0xff]  ;;  %v2430_v7 = vpack.c.bf16 %v3066_v3, %v3066_v3  ;;  %1317 = vst.msk [vmem:[#allocation2 + $0x20] sm:$0xff] %vm318_vm0, %v1252_v63  ;;  %v1253_v8 = vadd.f32 %v1012_v4, %v388_v61  ;;  %v1014_v9 = vpop.f32.mrb[11].mxu0  ;;  %1349 = vst.msk [vmem:[#allocation2 + $0x120] sm:$0xff] %vm318_vm0, %v1284_v1  ;;  %v1142_v10 = vpop.f32.mrb[11].mxu1  ;;  %v1285_v19 = vadd.f32 %v1140_v6, %v420_v13 }
 0x12e   : > { %v2462_v12 = vpack.c.bf16 %v1414_v5, %v1414_v5  ;;  %v393_v0 = vld [vmem:[#allocation2 + $0x50] sm:$0xff]  ;;  %v1580_v10 = vmul.f32 %v3052_v52, %v3052_v52 }
 0x12f   : > { %v3072_v11 = vld [vmem:[#allocation2 + $0x18] sm:$0xff]  ;;  %2036 = vst.msk [vmem:[%s3044_s12 + $0x8] sm:$0xf] %vm2033_vm1, %v2430_v7  ;;  %v425_v2 = vld [vmem:[#allocation2 + $0x150] sm:$0xff] }
 0x130   : > { %v2431_v14 = vpack.c.bf16 %v3072_v11, %v3072_v11  ;;  %1318 = vst.msk [vmem:[#allocation2 + $0x28] sm:$0xff] %vm318_vm0, %v1253_v8  ;;  %v1415_v15 = vld [vmem:[#allocation2 + $0x118] sm:$0xff]  ;;  %1350 = vst.msk [vmem:[#allocation2 + $0x128] sm:$0xff] %vm318_vm0, %v1285_v19 }
 0x131   : > { %2068 = vst.msk [vmem:[%s3044_s12 + $0x88] sm:$0xf] %vm2033_vm1, %v2462_v12  ;;  %v2463_v18 = vpack.c.bf16 %v1415_v15, %v1415_v15  ;;  %v394_v7 = vld [vmem:[#allocation2 + $0x58] sm:$0xff] }
 0x132   : > { %2037 = vst.msk [vmem:[%s3044_s12 + $0xc] sm:$0xf] %vm2033_vm1, %v2431_v14  ;;  %v1017_v20 = vpop.f32.mrb[12].mxu0  ;;  %v1145_v22 = vpop.f32.mrb[12].mxu1 }
 0x133   : > { %v1254_v23 = vadd.f32 %v1017_v20, %v389_v16  ;;  %v1019_v24 = vpop.f32.mrb[13].mxu0  ;;  %2069 = vst.msk [vmem:[%s3044_s12 + $0x8c] sm:$0xf] %vm2033_vm1, %v2463_v18  ;;  %v1286_v25 = vadd.f32 %v1145_v22, %v421_v17  ;;  %v1147_v26 = vpop.f32.mrb[13].mxu1  ;;  %v1579_v16 = vmul.f32 %v3046_v44, %v3046_v44  ;;  %v1445_v20 = vsel %vm318_vm0, %v3052_v52, 0.0 }
 0x134   : > { %v3086_v27 = vld [vmem:[#allocation2 + $0x20] sm:$0xff]  ;;  %v1020_v28 = vpop.f32.mrb[14].mxu0  ;;  %v1148_v30 = vpop.f32.mrb[14].mxu1  ;;  %v426_v26 = vld [vmem:[#allocation2 + $0x158] sm:$0xff] }
 0x135   : > { %v1416_v29 = vld [vmem:[#allocation2 + $0x120] sm:$0xff]  ;;  %v2432_v31 = vpack.c.bf16 %v3086_v27, %v3086_v27  ;;  %1319 = vst.msk [vmem:[#allocation2 + $0x30] sm:$0xff] %vm318_vm0, %v1254_v23  ;;  %v1255_v32 = vadd.f32 %v1020_v28, %v390_v21  ;;  %v1022_v33 = vpop.f32.mrb[15].mxu0  ;;  %1351 = vst.msk [vmem:[#allocation2 + $0x130] sm:$0xff] %vm318_vm0, %v1286_v25  ;;  %v1150_v35 = vpop.f32.mrb[15].mxu1  ;;  %v1287_v40 = vadd.f32 %v1148_v30, %v422_v34  ;;  %v1444_v30 = vsel %vm318_vm0, %v3046_v44, 0.0 }
 0x136   : > { %v2464_v37 = vpack.c.bf16 %v1416_v29, %v1416_v29  ;;  %v1581_v21 = vmul.f32 %v3066_v3, %v3066_v3  ;;  %v1446_v34 = vadd.f32 %v1445_v20, %v1444_v30  ;;  %v395_v35 = vld [vmem:[#allocation2 + $0x60] sm:$0xff] }
 0x137   : > { %v3092_v36 = vld [vmem:[#allocation2 + $0x28] sm:$0xff]  ;;  %2038 = vst.msk [vmem:[%s3044_s12 + $0x10] sm:$0xf] %vm2033_vm1, %v2432_v31  ;;  %v1644_v31 = vsel %vm318_vm0, %v1580_v10, 0.0 }
 0x138   : > { %v2433_v38 = vpack.c.bf16 %v3092_v36, %v3092_v36  ;;  %1320 = vst.msk [vmem:[#allocation2 + $0x38] sm:$0xff] %vm318_vm0, %v1255_v32  ;;  %v1417_v45 = vld [vmem:[#allocation2 + $0x128] sm:$0xff]  ;;  %1352 = vst.msk [vmem:[#allocation2 + $0x138] sm:$0xff] %vm318_vm0, %v1287_v40  ;;  %v1447_v32 = vsel %vm318_vm0, %v3066_v3, 0.0  ;;  %v1646_v44 = vsel %vm318_vm0, %v1581_v21, 0.0  ;;  %v427_v3 = vld [vmem:[#allocation2 + $0x160] sm:$0xff] }
 0x139   : > { %2070 = vst.msk [vmem:[%s3044_s12 + $0x90] sm:$0xf] %vm2033_vm1, %v2464_v37  ;;  %v2465_v49 = vpack.c.bf16 %v1417_v45, %v1417_v45 }
 0x13a   : > { %2039 = vst.msk [vmem:[%s3044_s12 + $0x14] sm:$0xf] %vm2033_vm1, %v2433_v38  ;;  %v1025_v42 = vpop.f32.mrb[16].mxu0  ;;  %v1153_v46 = vpop.f32.mrb[16].mxu1  ;;  %v1643_v38 = vsel %vm318_vm0, %v1579_v16, 0.0 }
 0x13b   : > { %v1256_v47 = vadd.f32 %v1025_v42, %v391_v39  ;;  %v1027_v48 = vpop.f32.mrb[17].mxu0  ;;  %v1155_v50 = vpop.f32.mrb[17].mxu1  ;;  %v1288_v54 = vadd.f32 %v1153_v46, %v423_v41  ;;  %2071 = vst.msk [vmem:[%s3044_s12 + $0x94] sm:$0xf] %vm2033_vm1, %v2465_v49  ;;  %v1582_v39 = vmul.f32 %v3072_v11, %v3072_v11  ;;  %v1645_v40 = vadd.f32 %v1644_v31, %v1643_v38 }
 0x13c   : > { %v3104_v51 = vld [vmem:[#allocation2 + $0x30] sm:$0xff]  ;;  %v1028_v53 = vpop.f32.mrb[18].mxu0  ;;  %v1156_v55 = vpop.f32.mrb[18].mxu1  ;;  %v1448_v41 = vadd.f32 %v1447_v32, %v1446_v34  ;;  %v1583_v48 = vmul.f32 %v3086_v27, %v3086_v27 }
 0x13d   : > { %v2434_v56 = vpack.c.bf16 %v3104_v51, %v3104_v51  ;;  %1321 = vst.msk [vmem:[#allocation2 + $0x40] sm:$0xff] %vm318_vm0, %v1256_v47  ;;  %v1257_v57 = vadd.f32 %v1028_v53, %v392_v43  ;;  %v1030_v58 = vpop.f32.mrb[19].mxu0  ;;  %v1418_v59 = vld [vmem:[#allocation2 + $0x130] sm:$0xff]  ;;  %v1158_v60 = vpop.f32.mrb[19].mxu1  ;;  %1353 = vst.msk [vmem:[#allocation2 + $0x140] sm:$0xff] %vm318_vm0, %v1288_v54  ;;  %v1289_v5 = vadd.f32 %v1156_v55, %v424_v62  ;;  %v396_v43 = vld [vmem:[#allocation2 + $0x68] sm:$0xff] }
 0x13e   : > { %v2466_v1 = vpack.c.bf16 %v1418_v59, %v1418_v59  ;;  %v1449_v47 = vsel %vm318_vm0, %v3072_v11, 0.0  ;;  %v1647_v55 = vadd.f32 %v1646_v44, %v1645_v40  ;;  %v1648_v60 = vsel %vm318_vm0, %v1582_v39, 0.0 }
 0x13f   : > { %v3111_v61 = vld [vmem:[#allocation2 + $0x38] sm:$0xff]  ;;  %2040 = vst.msk [vmem:[%s3044_s12 + $0x18] sm:$0xf] %vm2033_vm1, %v2434_v56  ;;  %v1451_v11 = vsel %vm318_vm0, %v3086_v27, 0.0  ;;  %v1650_v27 = vsel %vm318_vm0, %v1583_v48, 0.0  ;;  %v1585_v16 = vmul.f32 %v3104_v51, %v3104_v51 }
 0x140   : > { %v2435_v63 = vpack.c.bf16 %v3111_v61, %v3111_v61  ;;  %1322 = vst.msk [vmem:[#allocation2 + $0x48] sm:$0xff] %vm318_vm0, %v1257_v57  ;;  %v1419_v4 = vld [vmem:[#allocation2 + $0x138] sm:$0xff]  ;;  %1354 = vst.msk [vmem:[#allocation2 + $0x148] sm:$0xff] %vm318_vm0, %v1289_v5 }
 0x141   : > { %2072 = vst.msk [vmem:[%s3044_s12 + $0x98] sm:$0xf] %vm2033_vm1, %v2466_v1  ;;  %v2467_v8 = vpack.c.bf16 %v1419_v4, %v1419_v4  ;;  %v1450_v4 = vadd.f32 %v1449_v47, %v1448_v41 }
 0x142   : > { %2041 = vst.msk [vmem:[%s3044_s12 + $0x1c] sm:$0xf] %vm2033_vm1, %v2435_v63  ;;  %v1033_v6 = vpop.f32.mrb[20].mxu0  ;;  %v1161_v9 = vpop.f32.mrb[20].mxu1 }
 0x143   : > { %v1258_v12 = vadd.f32 %v1033_v6, %v393_v0  ;;  %v1035_v13 = vpop.f32.mrb[21].mxu0  ;;  %v1290_v14 = vadd.f32 %v1161_v9, %v425_v2  ;;  %v1163_v15 = vpop.f32.mrb[21].mxu1  ;;  %2073 = vst.msk [vmem:[%s3044_s12 + $0x9c] sm:$0xf] %vm2033_vm1, %v2467_v8  ;;  %v428_v6 = vld [vmem:[#allocation2 + $0x168] sm:$0xff]  ;;  %v1649_v9 = vadd.f32 %v1648_v60, %v1647_v55  ;;  %v1452_v10 = vadd.f32 %v1451_v11, %v1450_v4  ;;  %v431_v55 = vld [vmem:[#allocation2 + $0x180] sm:$0xff] }
 0x144   : > { %v3128_v17 = vld [vmem:[#allocation2 + $0x40] sm:$0xff]  ;;  %v1036_v18 = vpop.f32.mrb[22].mxu0  ;;  %v1164_v19 = vpop.f32.mrb[22].mxu1  ;;  %v1453_v15 = vsel %vm318_vm0, %v3092_v36, 0.0 }
 0x145   : > { %v2436_v22 = vpack.c.bf16 %v3128_v17, %v3128_v17  ;;  %1323 = vst.msk [vmem:[#allocation2 + $0x50] sm:$0xff] %vm318_vm0, %v1258_v12  ;;  %v1259_v23 = vadd.f32 %v1036_v18, %v394_v7  ;;  %v1038_v24 = vpop.f32.mrb[23].mxu0  ;;  %v1420_v25 = vld [vmem:[#allocation2 + $0x140] sm:$0xff]  ;;  %1355 = vst.msk [vmem:[#allocation2 + $0x150] sm:$0xff] %vm318_vm0, %v1290_v14  ;;  %v1166_v28 = vpop.f32.mrb[23].mxu1  ;;  %v1291_v37 = vadd.f32 %v1164_v19, %v426_v26  ;;  %v397_v12 = vld [vmem:[#allocation2 + $0x70] sm:$0xff] }
 0x146   : > { %v2468_v52 = vpack.c.bf16 %v1420_v25, %v1420_v25  ;;  %v1584_v7 = vmul.f32 %v3092_v36, %v3092_v36  ;;  %v429_v14 = vld [vmem:[#allocation2 + $0x170] sm:$0xff]  ;;  %v1651_v20 = vadd.f32 %v1650_v27, %v1649_v9  ;;  %v1455_v25 = vsel %vm318_vm0, %v3104_v51, 0.0 }
 0x147   : > { %v3140_v29 = vld [vmem:[#allocation2 + $0x48] sm:$0xff]  ;;  %2042 = vst.msk [vmem:[%s3044_s12 + $0x20] sm:$0xf] %vm2033_vm1, %v2436_v22  ;;  %v398_v22 = vld [vmem:[#allocation2 + $0x78] sm:$0xff]  ;;  %v1454_v31 = vadd.f32 %v1453_v15, %v1452_v10  ;;  %v1587_v47 = vmul.f32 %v3128_v17, %v3128_v17 }
 0x148   : > { %v2437_v33 = vpack.c.bf16 %v3140_v29, %v3140_v29  ;;  %1324 = vst.msk [vmem:[#allocation2 + $0x58] sm:$0xff] %vm318_vm0, %v1259_v23  ;;  %v1421_v45 = vld [vmem:[#allocation2 + $0x148] sm:$0xff]  ;;  %1356 = vst.msk [vmem:[#allocation2 + $0x158] sm:$0xff] %vm318_vm0, %v1291_v37  ;;  %v1652_v36 = vsel %vm318_vm0, %v1584_v7, 0.0  ;;  %v1586_v37 = vmul.f32 %v3111_v61, %v3111_v61 }
 0x149   : > { %2074 = vst.msk [vmem:[%s3044_s12 + $0xa0] sm:$0xf] %vm2033_vm1, %v2468_v52  ;;  %v2469_v53 = vpack.c.bf16 %v1421_v45, %v1421_v45  ;;  %v1653_v41 = vadd.f32 %v1652_v36, %v1651_v20 }
 0x14a   : > { %2043 = vst.msk [vmem:[%s3044_s12 + $0x24] sm:$0xf] %vm2033_vm1, %v2437_v33  ;;  %v1041_v42 = vpop.f32.mrb[24].mxu0  ;;  %v1169_v46 = vpop.f32.mrb[24].mxu1 }
 0x14b   : > { %v1260_v49 = vadd.f32 %v1041_v42, %v395_v35  ;;  %v1043_v50 = vpop.f32.mrb[25].mxu0  ;;  %v1171_v54 = vpop.f32.mrb[25].mxu1  ;;  %v1292_v58 = vadd.f32 %v1169_v46, %v427_v3  ;;  %2075 = vst.msk [vmem:[%s3044_s12 + $0xa4] sm:$0xf] %vm2033_vm1, %v2469_v53  ;;  %v1654_v35 = vsel %vm318_vm0, %v1585_v16, 0.0  ;;  %v430_v3 = vld [vmem:[#allocation2 + $0x178] sm:$0xff]  ;;  %v1456_v42 = vadd.f32 %v1455_v25, %v1454_v31 }
 0x14c   : > { %v3165_v56 = vld [vmem:[#allocation2 + $0x50] sm:$0xff]  ;;  %v1044_v57 = vpop.f32.mrb[26].mxu0  ;;  %v1172_v59 = vpop.f32.mrb[26].mxu1  ;;  %v1457_v46 = vsel %vm318_vm0, %v3111_v61, 0.0  ;;  %v399_v50 = vld [vmem:[#allocation2 + $0x80] sm:$0xff]  ;;  %v1656_v54 = vsel %vm318_vm0, %v1586_v37, 0.0 }
 0x14d   : > { %v2438_v62 = vpack.c.bf16 %v3165_v56, %v3165_v56  ;;  %1325 = vst.msk [vmem:[#allocation2 + $0x60] sm:$0xff] %vm318_vm0, %v1260_v49  ;;  %v1261_v63 = vadd.f32 %v1044_v57, %v396_v43  ;;  %v1046_v0 = vpop.f32.mrb[27].mxu0  ;;  %v3175_v1 = vld [vmem:[#allocation2 + $0x150] sm:$0xff]  ;;  %v1174_v2 = vpop.f32.mrb[27].mxu1  ;;  %1357 = vst.msk [vmem:[#allocation2 + $0x160] sm:$0xff] %vm318_vm0, %v1292_v58  ;;  %v1293_v19 = vadd.f32 %v1172_v59, %v428_v6  ;;  %v1459_v61 = vsel %vm318_vm0, %v3128_v17, 0.0 }
 0x14e   : > { %v2470_v13 = vpack.c.bf16 %v3175_v1, %v3175_v1  ;;  %v1655_v49 = vadd.f32 %v1654_v35, %v1653_v41  ;;  %v1458_v57 = vadd.f32 %v1457_v46, %v1456_v42  ;;  %v400_v59 = vld [vmem:[#allocation2 + $0x88] sm:$0xff] }
 0x14f   : > { %v3177_v5 = vld [vmem:[#allocation2 + $0x58] sm:$0xff]  ;;  %2044 = vst.msk [vmem:[%s3044_s12 + $0x28] sm:$0xf] %vm2033_vm1, %v2438_v62  ;;  %v1658_v62 = vsel %vm318_vm0, %v1587_v47, 0.0 }
 0x150   : > { %v2439_v8 = vpack.c.bf16 %v3177_v5, %v3177_v5  ;;  %1326 = vst.msk [vmem:[#allocation2 + $0x68] sm:$0xff] %vm318_vm0, %v1261_v63  ;;  %v3196_v18 = vld [vmem:[#allocation2 + $0x158] sm:$0xff]  ;;  %1358 = vst.msk [vmem:[#allocation2 + $0x168] sm:$0xff] %vm318_vm0, %v1293_v19  ;;  %v1588_v63 = vmul.f32 %v3140_v29, %v3140_v29  ;;  %v1657_v6 = vadd.f32 %v1656_v54, %v1655_v49 }
 0x151   : > { %2076 = vst.msk [vmem:[%s3044_s12 + $0xa8] sm:$0xf] %vm2033_vm1, %v2470_v13  ;;  %v2471_v23 = vpack.c.bf16 %v3196_v18, %v3196_v18  ;;  %v1460_v27 = vadd.f32 %v1459_v61, %v1458_v57  ;;  %v1589_v13 = vmul.f32 %v3165_v56, %v3165_v56  ;;  %v1590_v31 = vmul.f32 %v3177_v5, %v3177_v5 }
 0x152   : > { %2045 = vst.msk [vmem:[%s3044_s12 + $0x2c] sm:$0xf] %vm2033_vm1, %v2439_v8  ;;  %v1049_v21 = vpop.f32.mrb[28].mxu0  ;;  %v1177_v24 = vpop.f32.mrb[28].mxu1 }
 0x153   : > { %v1262_v26 = vadd.f32 %v1049_v21, %v397_v12  ;;  %v1051_v28 = vpop.f32.mrb[29].mxu0  ;;  %v1294_v52 = vadd.f32 %v1177_v24, %v429_v14  ;;  %v1179_v30 = vpop.f32.mrb[29].mxu1  ;;  %2077 = vst.msk [vmem:[%s3044_s12 + $0xac] sm:$0xf] %vm2033_vm1, %v2471_v23  ;;  %v1461_v12 = vsel %vm318_vm0, %v3140_v29, 0.0  ;;  %v1659_v21 = vadd.f32 %v1658_v62, %v1657_v6  ;;  %v432_v29 = vld [vmem:[#allocation2 + $0x188] sm:$0xff] }
 0x154   : > { %v3206_v32 = vld [vmem:[#allocation2 + $0x60] sm:$0xff]  ;;  %v1052_v33 = vpop.f32.mrb[30].mxu0  ;;  %v1180_v34 = vpop.f32.mrb[30].mxu1  ;;  %v1660_v23 = vsel %vm318_vm0, %v1588_v63, 0.0  ;;  %v1463_v24 = vsel %vm318_vm0, %v3165_v56, 0.0  ;;  %v1462_v25 = vadd.f32 %v1461_v12, %v1460_v27  ;;  %v1662_v30 = vsel %vm318_vm0, %v1589_v13, 0.0 }
 0x155   : > { %v2440_v51 = vpack.c.bf16 %v3206_v32, %v3206_v32  ;;  %1327 = vst.msk [vmem:[#allocation2 + $0x70] sm:$0xff] %vm318_vm0, %v1262_v26  ;;  %v1263_v38 = vadd.f32 %v1052_v33, %v398_v22  ;;  %v1054_v44 = vpop.f32.mrb[31].mxu0  ;;  %v3216_v39 = vld [vmem:[#allocation2 + $0x160] sm:$0xff]  ;;  %1359 = vst.msk [vmem:[#allocation2 + $0x170] sm:$0xff] %vm318_vm0, %v1294_v52  ;;  %v1182_v40 = vpop.f32.mrb[31].mxu1  ;;  %v1295_v53 = vadd.f32 %v1180_v34, %v430_v3  ;;  %v401_v26 = vld [vmem:[#allocation2 + $0x90] sm:$0xff] }
 0x156   : > { %v2472_v45 = vpack.c.bf16 %v3216_v39, %v3216_v39  ;;  %v433_v52 = vld [vmem:[#allocation2 + $0x190] sm:$0xff]  ;;  %v1661_v34 = vadd.f32 %v1660_v23, %v1659_v21  ;;  %v1464_v35 = vadd.f32 %v1463_v24, %v1462_v25  ;;  %v1465_v3 = vsel %vm318_vm0, %v3177_v5, 0.0  ;;  %v403_v6 = vld [vmem:[#allocation2 + $0xa0] sm:$0xff] }
 0x157   : > { %v3219_v43 = vld [vmem:[#allocation2 + $0x68] sm:$0xff]  ;;  %2046 = vst.msk [vmem:[%s3044_s12 + $0x30] sm:$0xf] %vm2033_vm1, %v2440_v51  ;;  %v402_v51 = vld [vmem:[#allocation2 + $0x98] sm:$0xff]  ;;  %v1591_v40 = vmul.f32 %v3206_v32, %v3206_v32  ;;  %v1467_v5 = vsel %vm318_vm0, %v3206_v32, 0.0 }
 0x158   : > { %v2441_v48 = vpack.c.bf16 %v3219_v43, %v3219_v43  ;;  %1328 = vst.msk [vmem:[#allocation2 + $0x78] sm:$0xff] %vm318_vm0, %v1263_v38  ;;  %v3239_v60 = vld [vmem:[#allocation2 + $0x168] sm:$0xff]  ;;  %1360 = vst.msk [vmem:[#allocation2 + $0x178] sm:$0xff] %vm318_vm0, %v1295_v53  ;;  %v1663_v47 = vadd.f32 %v1662_v30, %v1661_v34  ;;  %v1664_v53 = vsel %vm318_vm0, %v1590_v31, 0.0 }
 0x159   : > { %2078 = vst.msk [vmem:[%s3044_s12 + $0xb0] sm:$0xf] %vm2033_vm1, %v2472_v45  ;;  %v2473_v17 = vpack.c.bf16 %v3239_v60, %v3239_v60  ;;  %v1666_v63 = vsel %vm318_vm0, %v1591_v40, 0.0 }
 0x15a   : > { %2047 = vst.msk [vmem:[%s3044_s12 + $0x34] sm:$0xf] %vm2033_vm1, %v2441_v48  ;;  %v1057_v58 = vpop.f32.mrb[32].mxu0  ;;  %v1185_v11 = vpop.f32.mrb[32].mxu1 }
 0x15b   : > { %v1264_v0 = vadd.f32 %v1057_v58, %v399_v50  ;;  %v1059_v2 = vpop.f32.mrb[33].mxu0  ;;  %v1187_v4 = vpop.f32.mrb[33].mxu1  ;;  %v1296_v9 = vadd.f32 %v1185_v11, %v431_v55  ;;  %2079 = vst.msk [vmem:[%s3044_s12 + $0xb4] sm:$0xf] %vm2033_vm1, %v2473_v17  ;;  %v434_v58 = vld [vmem:[#allocation2 + $0x198] sm:$0xff]  ;;  %v1466_v11 = vadd.f32 %v1465_v3, %v1464_v35  ;;  %v1665_v17 = vadd.f32 %v1664_v53, %v1663_v47  ;;  %v436_v3 = vld [vmem:[#allocation2 + $0x1a8] sm:$0xff] }
 0x15c   : > { %v3247_v7 = vld [vmem:[#allocation2 + $0x70] sm:$0xff]  ;;  %v1060_v8 = vpop.f32.mrb[34].mxu0  ;;  %v1188_v10 = vpop.f32.mrb[34].mxu1 }
 0x15d   : > { %v2442_v14 = vpack.c.bf16 %v3247_v7, %v3247_v7  ;;  %1329 = vst.msk [vmem:[#allocation2 + $0x80] sm:$0xff] %vm318_vm0, %v1264_v0  ;;  %v1265_v15 = vadd.f32 %v1060_v8, %v400_v59  ;;  %v1062_v16 = vpop.f32.mrb[35].mxu0  ;;  %v3258_v19 = vld [vmem:[#allocation2 + $0x170] sm:$0xff]  ;;  %v1190_v20 = vpop.f32.mrb[35].mxu1  ;;  %1361 = vst.msk [vmem:[#allocation2 + $0x180] sm:$0xff] %vm318_vm0, %v1296_v9  ;;  %v1297_v33 = vadd.f32 %v1188_v10, %v432_v29  ;;  %v1469_v8 = vsel %vm318_vm0, %v3219_v43, 0.0 }
 0x15e   : > { %v2474_v28 = vpack.c.bf16 %v3258_v19, %v3258_v19  ;;  %v1592_v0 = vmul.f32 %v3219_v43, %v3219_v43  ;;  %v1468_v4 = vadd.f32 %v1467_v5, %v1466_v11  ;;  %v1593_v9 = vmul.f32 %v3247_v7, %v3247_v7  ;;  %v435_v10 = vld [vmem:[#allocation2 + $0x1a0] sm:$0xff] }
 0x15f   : > { %v3260_v22 = vld [vmem:[#allocation2 + $0x78] sm:$0xff]  ;;  %2048 = vst.msk [vmem:[%s3044_s12 + $0x38] sm:$0xf] %vm2033_vm1, %v2442_v14  ;;  %v1667_v12 = vadd.f32 %v1666_v63, %v1665_v17  ;;  %v404_v14 = vld [vmem:[#allocation2 + $0xa8] sm:$0xff]  ;;  %v1471_v21 = vsel %vm318_vm0, %v3247_v7, 0.0 }
 0x160   : > { %v2443_v36 = vpack.c.bf16 %v3260_v22, %v3260_v22  ;;  %1330 = vst.msk [vmem:[#allocation2 + $0x88] sm:$0xff] %vm318_vm0, %v1265_v15  ;;  %v3278_v56 = vld [vmem:[#allocation2 + $0x178] sm:$0xff]  ;;  %1362 = vst.msk [vmem:[#allocation2 + $0x188] sm:$0xff] %vm318_vm0, %v1297_v33  ;;  %v1668_v20 = vsel %vm318_vm0, %v1592_v0, 0.0  ;;  %v1670_v30 = vsel %vm318_vm0, %v1593_v9, 0.0  ;;  %v1594_v31 = vmul.f32 %v3260_v22, %v3260_v22 }
 0x161   : > { %2080 = vst.msk [vmem:[%s3044_s12 + $0xb8] sm:$0xf] %vm2033_vm1, %v2474_v28  ;;  %v2475_v38 = vpack.c.bf16 %v3278_v56, %v3278_v56  ;;  %v1473_v40 = vsel %vm318_vm0, %v3260_v22, 0.0 }
 0x162   : > { %2049 = vst.msk [vmem:[%s3044_s12 + $0x3c] sm:$0xf] %vm2033_vm1, %v2443_v36  ;;  %v1065_v37 = vpop.f32.mrb[36].mxu0  ;;  %v1193_v44 = vpop.f32.mrb[36].mxu1  ;;  %v1470_v36 = vadd.f32 %v1469_v8, %v1468_v4 }
 0x163   : > { %v1266_v41 = vadd.f32 %v1065_v37, %v401_v26  ;;  %v1067_v42 = vpop.f32.mrb[37].mxu0  ;;  %v1298_v45 = vadd.f32 %v1193_v44, %v433_v52  ;;  %v1195_v46 = vpop.f32.mrb[37].mxu1  ;;  %2081 = vst.msk [vmem:[%s3044_s12 + $0xbc] sm:$0xf] %vm2033_vm1, %v2475_v38 }
 0x164   : > { %v3289_v48 = vld [vmem:[#allocation2 + $0x80] sm:$0xff]  ;;  %v1068_v49 = vpop.f32.mrb[38].mxu0  ;;  %v1196_v50 = vpop.f32.mrb[38].mxu1  ;;  %v1472_v38 = vadd.f32 %v1471_v21, %v1470_v36  ;;  %v405_v46 = vld [vmem:[#allocation2 + $0xb0] sm:$0xff] }
 0x165   : > { %v2444_v54 = vpack.c.bf16 %v3289_v48, %v3289_v48  ;;  %1331 = vst.msk [vmem:[#allocation2 + $0x90] sm:$0xff] %vm318_vm0, %v1266_v41  ;;  %v1267_v61 = vadd.f32 %v1068_v49, %v402_v51  ;;  %v1070_v55 = vpop.f32.mrb[39].mxu0  ;;  %v3299_v57 = vld [vmem:[#allocation2 + $0x180] sm:$0xff]  ;;  %1363 = vst.msk [vmem:[#allocation2 + $0x190] sm:$0xff] %vm318_vm0, %v1298_v45  ;;  %v1198_v59 = vpop.f32.mrb[39].mxu1  ;;  %v1299_v27 = vadd.f32 %v1196_v50, %v434_v58  ;;  %v437_v49 = vld [vmem:[#allocation2 + $0x1b0] sm:$0xff] }
 0x166   : > { %v2476_v32 = vpack.c.bf16 %v3299_v57, %v3299_v57  ;;  %v1669_v51 = vadd.f32 %v1668_v20, %v1667_v12  ;;  %v1595_v41 = vmul.f32 %v3289_v48, %v3289_v48  ;;  %v1672_v50 = vsel %vm318_vm0, %v1594_v31, 0.0  ;;  %v406_v55 = vld [vmem:[#allocation2 + $0xb8] sm:$0xff] }
 0x167   : > { %v3302_v62 = vld [vmem:[#allocation2 + $0x88] sm:$0xff]  ;;  %2050 = vst.msk [vmem:[%s3044_s12 + $0x40] sm:$0xf] %vm2033_vm1, %v2444_v54  ;;  %v1475_v22 = vsel %vm318_vm0, %v3289_v48, 0.0  ;;  %v1474_v54 = vadd.f32 %v1473_v40, %v1472_v38  ;;  %v438_v20 = vld [vmem:[#allocation2 + $0x1b8] sm:$0xff] }
 0x168   : > { %v2445_v2 = vpack.c.bf16 %v3302_v62, %v3302_v62  ;;  %1332 = vst.msk [vmem:[#allocation2 + $0x98] sm:$0xff] %vm318_vm0, %v1267_v61  ;;  %v3322_v15 = vld [vmem:[#allocation2 + $0x188] sm:$0xff]  ;;  %1364 = vst.msk [vmem:[#allocation2 + $0x198] sm:$0xff] %vm318_vm0, %v1299_v27  ;;  %v1671_v45 = vadd.f32 %v1670_v30, %v1669_v51  ;;  %v1674_v11 = vsel %vm318_vm0, %v1595_v41, 0.0  ;;  %v1596_v48 = vmul.f32 %v3302_v62, %v3302_v62 }
 0x169   : > { %2082 = vst.msk [vmem:[%s3044_s12 + $0xc0] sm:$0xf] %vm2033_vm1, %v2476_v32  ;;  %v2477_v23 = vpack.c.bf16 %v3322_v15, %v3322_v15  ;;  %v1476_v4 = vadd.f32 %v1475_v22, %v1474_v54  ;;  %v1477_v9 = vsel %vm318_vm0, %v3302_v62, 0.0 }
 0x16a   : > { %2051 = vst.msk [vmem:[%s3044_s12 + $0x44] sm:$0xf] %vm2033_vm1, %v2445_v2  ;;  %v1073_v13 = vpop.f32.mrb[40].mxu0  ;;  %v1201_v16 = vpop.f32.mrb[40].mxu1  ;;  %v1673_v17 = vadd.f32 %v1672_v50, %v1671_v45 }
 0x16b   : > { %v1268_v43 = vadd.f32 %v1073_v13, %v403_v6  ;;  %v1075_v29 = vpop.f32.mrb[41].mxu0  ;;  %v1203_v24 = vpop.f32.mrb[41].mxu1  ;;  %v1300_v28 = vadd.f32 %v1201_v16, %v435_v10  ;;  %2083 = vst.msk [vmem:[%s3044_s12 + $0xc4] sm:$0xf] %vm2033_vm1, %v2477_v23  ;;  %v1676_v23 = vsel %vm318_vm0, %v1596_v48, 0.0 }
 0x16c   : > { %v3330_v25 = vld [vmem:[#allocation2 + $0x90] sm:$0xff]  ;;  %v1076_v26 = vpop.f32.mrb[42].mxu0  ;;  %v1204_v52 = vpop.f32.mrb[42].mxu1 }
 0x16d   : > { %v2446_v7 = vpack.c.bf16 %v3330_v25, %v3330_v25  ;;  %1333 = vst.msk [vmem:[#allocation2 + $0xa0] sm:$0xff] %vm318_vm0, %v1268_v43  ;;  %v1269_v33 = vadd.f32 %v1076_v26, %v404_v14  ;;  %v1078_v34 = vpop.f32.mrb[43].mxu0  ;;  %v3340_v35 = vld [vmem:[#allocation2 + $0x190] sm:$0xff]  ;;  %v1206_v37 = vpop.f32.mrb[43].mxu1  ;;  %1365 = vst.msk [vmem:[#allocation2 + $0x1a0] sm:$0xff] %vm318_vm0, %v1300_v28  ;;  %v1301_v5 = vadd.f32 %v1204_v52, %v436_v3  ;;  %v1479_v24 = vsel %vm318_vm0, %v3330_v25, 0.0 }
 0x16e   : > { %v2478_v47 = vpack.c.bf16 %v3340_v35, %v3340_v35  ;;  %v1597_v10 = vmul.f32 %v3330_v25, %v3330_v25  ;;  %v1675_v43 = vadd.f32 %v1674_v11, %v1673_v17  ;;  %v1478_v26 = vadd.f32 %v1477_v9, %v1476_v4  ;;  %v407_v28 = vld [vmem:[#allocation2 + $0xc0] sm:$0xff]  ;;  %v408_v37 = vld [vmem:[#allocation2 + $0xc8] sm:$0xff]  ;;  %v441_v9 = vld [vmem:[#allocation2 + $0x1d0] sm:$0xff] }
 0x16f   : > { %v3342_v44 = vld [vmem:[#allocation2 + $0x98] sm:$0xff]  ;;  %2052 = vst.msk [vmem:[%s3044_s12 + $0x48] sm:$0xf] %vm2033_vm1, %v2446_v7  ;;  %v439_v7 = vld [vmem:[#allocation2 + $0x1c0] sm:$0xff] }
 0x170   : > { %v2447_v42 = vpack.c.bf16 %v3342_v44, %v3342_v44  ;;  %1334 = vst.msk [vmem:[#allocation2 + $0xa8] sm:$0xff] %vm318_vm0, %v1269_v33  ;;  %v3361_v53 = vld [vmem:[#allocation2 + $0x198] sm:$0xff]  ;;  %1366 = vst.msk [vmem:[#allocation2 + $0x1a8] sm:$0xff] %vm318_vm0, %v1301_v5  ;;  %v1678_v30 = vsel %vm318_vm0, %v1597_v10, 0.0  ;;  %v1598_v31 = vmul.f32 %v3342_v44, %v3342_v44  ;;  %v1677_v33 = vadd.f32 %v1676_v23, %v1675_v43 }
 0x171   : > { %2084 = vst.msk [vmem:[%s3044_s12 + $0xc8] sm:$0xf] %vm2033_vm1, %v2478_v47  ;;  %v2479_v58 = vpack.c.bf16 %v3361_v53, %v3361_v53  ;;  %v1480_v25 = vadd.f32 %v1479_v24, %v1478_v26  ;;  %v1481_v3 = vsel %vm318_vm0, %v3342_v44, 0.0  ;;  %v410_v43 = vld [vmem:[#allocation2 + $0xd8] sm:$0xff] }
 0x172   : > { %2053 = vst.msk [vmem:[%s3044_s12 + $0x4c] sm:$0xf] %vm2033_vm1, %v2447_v42  ;;  %v1081_v61 = vpop.f32.mrb[44].mxu0  ;;  %v1209_v59 = vpop.f32.mrb[44].mxu1  ;;  %v1679_v47 = vadd.f32 %v1678_v30, %v1677_v33  ;;  %v1680_v54 = vsel %vm318_vm0, %v1598_v31, 0.0 }
 0x173   : > { %v1270_v32 = vadd.f32 %v1081_v61, %v405_v46  ;;  %v1083_v63 = vpop.f32.mrb[45].mxu0  ;;  %v1302_v0 = vadd.f32 %v1209_v59, %v437_v49  ;;  %v1211_v2 = vpop.f32.mrb[45].mxu1  ;;  %2085 = vst.msk [vmem:[%s3044_s12 + $0xcc] sm:$0xf] %vm2033_vm1, %v2479_v58  ;;  %v1482_v48 = vadd.f32 %v1481_v3, %v1480_v25 }
 0x174   : > { %v1400_v6 = vld [vmem:[#allocation2 + $0xa0] sm:$0xff]  ;;  %v1084_v27 = vpop.f32.mrb[46].mxu0  ;;  %v1212_v8 = vpop.f32.mrb[46].mxu1  ;;  %v440_v63 = vld [vmem:[#allocation2 + $0x1c8] sm:$0xff]  ;;  %v1681_v4 = vadd.f32 %v1680_v54, %v1679_v47 }
 0x175   : > { %v2448_v12 = vpack.c.bf16 %v1400_v6, %v1400_v6  ;;  %1335 = vst.msk [vmem:[#allocation2 + $0xb0] sm:$0xff] %vm318_vm0, %v1270_v32  ;;  %v1271_v13 = vadd.f32 %v1084_v27, %v406_v55  ;;  %v1086_v14 = vpop.f32.mrb[47].mxu0  ;;  %v3378_v16 = vld [vmem:[#allocation2 + $0x1a0] sm:$0xff]  ;;  %1367 = vst.msk [vmem:[#allocation2 + $0x1b0] sm:$0xff] %vm318_vm0, %v1302_v0  ;;  %v1214_v21 = vpop.f32.mrb[47].mxu1  ;;  %v1303_v52 = vadd.f32 %v1212_v8, %v438_v20  ;;  %v1483_v61 = vsel %vm318_vm0, %v1400_v6, 0.0 }
 0x176   : > { %v2480_v62 = vpack.c.bf16 %v3378_v16, %v3378_v16  ;;  %v1599_v40 = vmul.f32 %v1400_v6, %v1400_v6  ;;  %v1484_v6 = vadd.f32 %v1483_v61, %v1482_v48  ;;  %v409_v27 = vld [vmem:[#allocation2 + $0xd0] sm:$0xff]  ;;  %v411_v61 = vld [vmem:[#allocation2 + $0xe0] sm:$0xff] }
 0x177   : > { %v1401_v29 = vld [vmem:[#allocation2 + $0xa8] sm:$0xff]  ;;  %2054 = vst.msk [vmem:[%s3044_s12 + $0x50] sm:$0xf] %vm2033_vm1, %v2448_v12 }
 0x178   : > { %v2449_v36 = vpack.c.bf16 %v1401_v29, %v1401_v29  ;;  %1336 = vst.msk [vmem:[#allocation2 + $0xb8] sm:$0xff] %vm318_vm0, %v1271_v13  ;;  %v3396_v51 = vld [vmem:[#allocation2 + $0x1a8] sm:$0xff]  ;;  %1368 = vst.msk [vmem:[#allocation2 + $0x1b8] sm:$0xff] %vm318_vm0, %v1303_v52  ;;  %v1682_v0 = vsel %vm318_vm0, %v1599_v40, 0.0  ;;  %v1600_v2 = vmul.f32 %v1401_v29, %v1401_v29  ;;  %v1485_v10 = vsel %vm318_vm0, %v1401_v29, 0.0 }
 0x179   : > { %2086 = vst.msk [vmem:[%s3044_s12 + $0xd0] sm:$0xf] %vm2033_vm1, %v2480_v62  ;;  %v2481_v45 = vpack.c.bf16 %v3396_v51, %v3396_v51  ;;  %v1683_v20 = vadd.f32 %v1682_v0, %v1681_v4  ;;  %v1486_v30 = vadd.f32 %v1485_v10, %v1484_v6 }
 0x17a   : > { %2055 = vst.msk [vmem:[%s3044_s12 + $0x54] sm:$0xf] %vm2033_vm1, %v2449_v36  ;;  %v1089_v34 = vpop.f32.mrb[48].mxu0  ;;  %v1217_v38 = vpop.f32.mrb[48].mxu1  ;;  %v1684_v24 = vsel %vm318_vm0, %v1600_v2, 0.0 }
 0x17b   : > { %v1272_v41 = vadd.f32 %v1089_v34, %v407_v28  ;;  %v1091_v42 = vpop.f32.mrb[49].mxu0  ;;  %v1219_v46 = vpop.f32.mrb[49].mxu1  ;;  %v1304_v22 = vadd.f32 %v1217_v38, %v439_v7  ;;  %2087 = vst.msk [vmem:[%s3044_s12 + $0xd4] sm:$0xf] %vm2033_vm1, %v2481_v45  ;;  %v1685_v45 = vadd.f32 %v1684_v24, %v1683_v20 }
 0x17c   : > { %v1402_v49 = vld [vmem:[#allocation2 + $0xb0] sm:$0xff]  ;;  %v1092_v50 = vpop.f32.mrb[50].mxu0  ;;  %v1220_v5 = vpop.f32.mrb[50].mxu1 }
 0x17d   : > { %v2450_v55 = vpack.c.bf16 %v1402_v49, %v1402_v49  ;;  %1337 = vst.msk [vmem:[#allocation2 + $0xc0] sm:$0xff] %vm318_vm0, %v1272_v41  ;;  %v1273_v44 = vadd.f32 %v1092_v50, %v408_v37  ;;  %v1094_v58 = vpop.f32.mrb[51].mxu0  ;;  %v3408_v59 = vld [vmem:[#allocation2 + $0x1b0] sm:$0xff]  ;;  %v1222_v11 = vpop.f32.mrb[51].mxu1  ;;  %1369 = vst.msk [vmem:[#allocation2 + $0x1c0] sm:$0xff] %vm318_vm0, %v1304_v22  ;;  %v1601_v12 = vmul.f32 %v1402_v49, %v1402_v49  ;;  %v1487_v29 = vsel %vm318_vm0, %v1402_v49, 0.0 }
 0x17e   : > { %v2482_v8 = vpack.c.bf16 %v3408_v59, %v3408_v59  ;;  %v1305_v14 = vadd.f32 %v1220_v5, %v440_v63  ;;  %v442_v41 = vld [vmem:[#allocation2 + $0x1d8] sm:$0xff]  ;;  %v1488_v46 = vadd.f32 %v1487_v29, %v1486_v30  ;;  %v443_v11 = vld [vmem:[#allocation2 + $0x1e0] sm:$0xff]  ;;  %v412_v63 = vld [vmem:[#allocation2 + $0xe8] sm:$0xff] }
 0x17f   : > { %v1403_v32 = vld [vmem:[#allocation2 + $0xb8] sm:$0xff]  ;;  %2056 = vst.msk [vmem:[%s3044_s12 + $0x58] sm:$0xf] %vm2033_vm1, %v2450_v55  ;;  %v1686_v25 = vsel %vm318_vm0, %v1601_v12, 0.0 }
 0x180   : > { %v2451_v17 = vpack.c.bf16 %v1403_v32, %v1403_v32  ;;  %1338 = vst.msk [vmem:[#allocation2 + $0xc8] sm:$0xff] %vm318_vm0, %v1273_v44  ;;  %v3420_v13 = vld [vmem:[#allocation2 + $0x1b8] sm:$0xff]  ;;  %1370 = vst.msk [vmem:[#allocation2 + $0x1c8] sm:$0xff] %vm318_vm0, %v1305_v14  ;;  %v1602_v34 = vmul.f32 %v1403_v32, %v1403_v32  ;;  %v1489_v50 = vsel %vm318_vm0, %v1403_v32, 0.0  ;;  %v1687_v54 = vadd.f32 %v1686_v25, %v1685_v45 }
 0x181   : > { %2088 = vst.msk [vmem:[%s3044_s12 + $0xd8] sm:$0xf] %vm2033_vm1, %v2482_v8  ;;  %v2483_v62 = vpack.c.bf16 %v3420_v13, %v3420_v13  ;;  %v1490_v48 = vadd.f32 %v1489_v50, %v1488_v46 }
 0x182   : > { %2057 = vst.msk [vmem:[%s3044_s12 + $0x5c] sm:$0xf] %vm2033_vm1, %v2451_v17  ;;  %v1097_v21 = vpop.f32.mrb[52].mxu0  ;;  %v1225_v23 = vpop.f32.mrb[52].mxu1  ;;  %v1688_v44 = vsel %vm318_vm0, %v1602_v34, 0.0 }
 0x183   : > { %v1274_v36 = vadd.f32 %v1097_v21, %v409_v27  ;;  %v1099_v26 = vpop.f32.mrb[53].mxu0  ;;  %v1306_v28 = vadd.f32 %v1225_v23, %v441_v9  ;;  %v1227_v52 = vpop.f32.mrb[53].mxu1  ;;  %2089 = vst.msk [vmem:[%s3044_s12 + $0xdc] sm:$0xf] %vm2033_vm1, %v2483_v62  ;;  %v1689_v10 = vadd.f32 %v1688_v44, %v1687_v54 }
 0x184   : > { %v1404_v31 = vld [vmem:[#allocation2 + $0xc0] sm:$0xff]  ;;  %v1100_v7 = vpop.f32.mrb[54].mxu0  ;;  %v1228_v33 = vpop.f32.mrb[54].mxu1 }
 0x185   : > { %v2452_v37 = vpack.c.bf16 %v1404_v31, %v1404_v31  ;;  %1339 = vst.msk [vmem:[#allocation2 + $0xd0] sm:$0xff] %vm318_vm0, %v1274_v36  ;;  %v1275_v38 = vadd.f32 %v1100_v7, %v410_v43  ;;  %v1102_v3 = vpop.f32.mrb[55].mxu0  ;;  %v3433_v40 = vld [vmem:[#allocation2 + $0x1c0] sm:$0xff]  ;;  %1371 = vst.msk [vmem:[#allocation2 + $0x1d0] sm:$0xff] %vm318_vm0, %v1306_v28  ;;  %v1230_v42 = vpop.f32.mrb[55].mxu1  ;;  %v1603_v22 = vmul.f32 %v1404_v31, %v1404_v31  ;;  %v1491_v58 = vsel %vm318_vm0, %v1404_v31, 0.0 }
 0x186   : > { %v2484_v49 = vpack.c.bf16 %v3433_v40, %v3433_v40  ;;  %v1307_v55 = vadd.f32 %v1228_v33, %v442_v41  ;;  %v1492_v12 = vadd.f32 %v1491_v58, %v1490_v48  ;;  %v444_v31 = vld [vmem:[#allocation2 + $0x1e8] sm:$0xff]  ;;  %v445_v41 = vld [vmem:[#allocation2 + $0x1f0] sm:$0xff] }
 0x187   : > { %v1405_v47 = vld [vmem:[#allocation2 + $0xc8] sm:$0xff]  ;;  %2058 = vst.msk [vmem:[%s3044_s12 + $0x60] sm:$0xf] %vm2033_vm1, %v2452_v37  ;;  %v1690_v17 = vsel %vm318_vm0, %v1603_v22, 0.0  ;;  %v414_v22 = vld [vmem:[#allocation2 + $0xf8] sm:$0xff] }
 0x188   : > { %v2453_v5 = vpack.c.bf16 %v1405_v47, %v1405_v47  ;;  %1340 = vst.msk [vmem:[#allocation2 + $0xd8] sm:$0xff] %vm318_vm0, %v1275_v38  ;;  %v3448_v0 = vld [vmem:[#allocation2 + $0x1c8] sm:$0xff]  ;;  %1372 = vst.msk [vmem:[#allocation2 + $0x1d8] sm:$0xff] %vm318_vm0, %v1307_v55  ;;  %v1604_v4 = vmul.f32 %v1405_v47, %v1405_v47  ;;  %v1493_v62 = vsel %vm318_vm0, %v1405_v47, 0.0  ;;  %v1691_v52 = vadd.f32 %v1690_v17, %v1689_v10  ;;  %v413_v38 = vld [vmem:[#allocation2 + $0xf0] sm:$0xff] }
 0x189   : > { %2090 = vst.msk [vmem:[%s3044_s12 + $0xe0] sm:$0xf] %vm2033_vm1, %v2484_v49  ;;  %v2485_v8 = vpack.c.bf16 %v3448_v0, %v3448_v0  ;;  %v1494_v34 = vadd.f32 %v1493_v62, %v1492_v12  ;;  %v446_v12 = vld [vmem:[#allocation2 + $0x1f8] sm:$0xff] }
 0x18a   : > { %2059 = vst.msk [vmem:[%s3044_s12 + $0x64] sm:$0xf] %vm2033_vm1, %v2453_v5  ;;  %v1105_v32 = vpop.f32.mrb[56].mxu0  ;;  %v1233_v2 = vpop.f32.mrb[56].mxu1  ;;  %v1692_v7 = vsel %vm318_vm0, %v1604_v4, 0.0 }
 0x18b   : > { %v1276_v6 = vadd.f32 %v1105_v32, %v411_v61  ;;  %v1107_v27 = vpop.f32.mrb[57].mxu0  ;;  %v1235_v9 = vpop.f32.mrb[57].mxu1  ;;  %v1308_v21 = vadd.f32 %v1233_v2, %v443_v11  ;;  %2091 = vst.msk [vmem:[%s3044_s12 + $0xe4] sm:$0xf] %vm2033_vm1, %v2485_v8  ;;  %v1693_v47 = vadd.f32 %v1692_v7, %v1691_v52 }
 0x18c   : > { %v1406_v14 = vld [vmem:[#allocation2 + $0xd0] sm:$0xff]  ;;  %v1108_v20 = vpop.f32.mrb[58].mxu0  ;;  %v1236_v43 = vpop.f32.mrb[58].mxu1 }
 0x18d   : > { %v1605_v23 = vmul.f32 %v1406_v14, %v1406_v14  ;;  %v2454_v24 = vpack.c.bf16 %v1406_v14, %v1406_v14  ;;  %1341 = vst.msk [vmem:[#allocation2 + $0xe0] sm:$0xff] %vm318_vm0, %v1276_v6  ;;  %v1277_v29 = vadd.f32 %v1108_v20, %v412_v63  ;;  %v1110_v36 = vpop.f32.mrb[59].mxu0  ;;  %v3458_v26 = vld [vmem:[#allocation2 + $0x1d0] sm:$0xff]  ;;  %v1238_v28 = vpop.f32.mrb[59].mxu1  ;;  %1373 = vst.msk [vmem:[#allocation2 + $0x1e0] sm:$0xff] %vm318_vm0, %v1308_v21  ;;  %v1495_v33 = vsel %vm318_vm0, %v1406_v14, 0.0 }
 0x18e   : > { %v2486_v3 = vpack.c.bf16 %v3458_v26, %v3458_v26  ;;  %v1309_v46 = vadd.f32 %v1236_v43, %v444_v31  ;;  %v1496_v49 = vadd.f32 %v1495_v33, %v1494_v34 }
 0x18f   : > { %v1407_v30 = vld [vmem:[#allocation2 + $0xd8] sm:$0xff]  ;;  %2060 = vst.msk [vmem:[%s3044_s12 + $0x68] sm:$0xf] %vm2033_vm1, %v2454_v24  ;;  %v1694_v42 = vsel %vm318_vm0, %v1605_v23, 0.0 }
 0x190   : > { %v2455_v25 = vpack.c.bf16 %v1407_v30, %v1407_v30  ;;  %1342 = vst.msk [vmem:[#allocation2 + $0xe8] sm:$0xff] %vm318_vm0, %v1277_v29  ;;  %v1606_v37 = vmul.f32 %v1407_v30, %v1407_v30  ;;  %v3471_v45 = vld [vmem:[#allocation2 + $0x1d8] sm:$0xff]  ;;  %v1497_v61 = vsel %vm318_vm0, %v1407_v30, 0.0  ;;  %1374 = vst.msk [vmem:[#allocation2 + $0x1e8] sm:$0xff] %vm318_vm0, %v1309_v46  ;;  %v1695_v48 = vadd.f32 %v1694_v42, %v1693_v47  ;;  %v2662_v42 = vld [vmem:[#allocation2 + $0x100] sm:$0xff] }
 0x191   : > { %2092 = vst.msk [vmem:[%s3044_s12 + $0xe8] sm:$0xf] %vm2033_vm1, %v2486_v3  ;;  %v2487_v5 = vpack.c.bf16 %v3471_v45, %v3471_v45  ;;  %v1498_v20 = vadd.f32 %v1497_v61, %v1496_v49  ;;  %v1611_v46 = vmul.f32 %v2662_v42, %v2662_v42 }
 0x192   : > { %2061 = vst.msk [vmem:[%s3044_s12 + $0x6c] sm:$0xf] %vm2033_vm1, %v2455_v25  ;;  %v1113_v50 = vpop.f32.mrb[60].mxu0  ;;  %v1241_v54 = vpop.f32.mrb[60].mxu1  ;;  %v1696_v32 = vsel %vm318_vm0, %v1606_v37, 0.0 }
 0x193   : > { %v1278_v55 = vadd.f32 %v1113_v50, %v413_v38  ;;  %v1115_v44 = vpop.f32.mrb[61].mxu0  ;;  %v1310_v58 = vadd.f32 %v1241_v54, %v445_v41  ;;  %v1243_v11 = vpop.f32.mrb[61].mxu1  ;;  %2093 = vst.msk [vmem:[%s3044_s12 + $0xec] sm:$0xf] %vm2033_vm1, %v2487_v5  ;;  %v1697_v29 = vadd.f32 %v1696_v32, %v1695_v48  ;;  %v2663_v48 = vld [vmem:[#allocation2 + $0x108] sm:$0xff] }
 0x194   : > { %v1408_v63 = vld [vmem:[#allocation2 + $0xe0] sm:$0xff]  ;;  %v1116_v2 = vpop.f32.mrb[62].mxu0  ;;  %v1244_v17 = vpop.f32.mrb[62].mxu1  ;;  %v1507_v11 = vsel %vm318_vm0, %v2662_v42, 0.0  ;;  %v1612_v32 = vmul.f32 %v2663_v48, %v2663_v48 }
 0x195   : > { %v1499_v4 = vsel %vm318_vm0, %v1408_v63, 0.0  ;;  %v1607_v6 = vmul.f32 %v1408_v63, %v1408_v63  ;;  %v2456_v27 = vpack.c.bf16 %v1408_v63, %v1408_v63  ;;  %1343 = vst.msk [vmem:[#allocation2 + $0xf0] sm:$0xff] %vm318_vm0, %v1278_v55  ;;  %v1279_v8 = vadd.f32 %v1116_v2, %v414_v22  ;;  %v1118_v9 = vpop.f32.mrb[63].mxu0  ;;  %v3484_v10 = vld [vmem:[#allocation2 + $0x1e0] sm:$0xff]  ;;  %1375 = vst.msk [vmem:[#allocation2 + $0x1f0] sm:$0xff] %vm318_vm0, %v1310_v58  ;;  %v1246_v14 = vpop.f32.mrb[63].mxu1 }
 0x196   : > { %v2488_v43 = vpack.c.bf16 %v3484_v10, %v3484_v10  ;;  %v1500_v36 = vadd.f32 %v1499_v4, %v1498_v20  ;;  %v1311_v28 = vadd.f32 %v1244_v17, %v446_v12 }
 0x197   : > { %v1409_v21 = vld [vmem:[#allocation2 + $0xe8] sm:$0xff]  ;;  %v1698_v62 = vsel %vm318_vm0, %v1607_v6, 0.0  ;;  %2062 = vst.msk [vmem:[%s3044_s12 + $0x70] sm:$0xf] %vm2033_vm1, %v2456_v27  ;;  %v1706_v6 = vsel %vm318_vm0, %v1611_v46, 0.0  ;;  %v1509_v27 = vsel %vm318_vm0, %v2663_v48, 0.0 }
 0x198   : > { %v1608_v23 = vmul.f32 %v1409_v21, %v1409_v21  ;;  %v2457_v24 = vpack.c.bf16 %v1409_v21, %v1409_v21  ;;  %1344 = vst.msk [vmem:[#allocation2 + $0xf8] sm:$0xff] %vm318_vm0, %v1279_v8  ;;  %v1501_v52 = vsel %vm318_vm0, %v1409_v21, 0.0  ;;  %v1699_v30 = vadd.f32 %v1698_v62, %v1697_v29  ;;  %v3498_v31 = vld [vmem:[#allocation2 + $0x1e8] sm:$0xff]  ;;  %1376 = vst.msk [vmem:[#allocation2 + $0x1f8] sm:$0xff] %vm318_vm0, %v1311_v28  ;;  %v2664_v8 = vld [vmem:[#allocation2 + $0x110] sm:$0xff] }
 0x199   : > { %2094 = vst.msk [vmem:[%s3044_s12 + $0xf0] sm:$0xf] %vm2033_vm1, %v2488_v43  ;;  %v2489_v33 = vpack.c.bf16 %v3498_v31, %v3498_v31  ;;  %v1502_v25 = vadd.f32 %v1501_v52, %v1500_v36  ;;  %v1613_v9 = vmul.f32 %v2664_v8, %v2664_v8  ;;  %v1708_v21 = vsel %vm318_vm0, %v1612_v32, 0.0  ;;  %v2665_v62 = vld [vmem:[#allocation2 + $0x118] sm:$0xff]  ;;  %v2666_v52 = vld [vmem:[#allocation2 + $0x120] sm:$0xff] }
 0x19a   : > { %2063 = vst.msk [vmem:[%s3044_s12 + $0x74] sm:$0xf] %vm2033_vm1, %v2457_v24  ;;  %v1700_v7 = vsel %vm318_vm0, %v1608_v23, 0.0  ;;  %v1511_v43 = vsel %vm318_vm0, %v2664_v8, 0.0  ;;  %v1614_v23 = vmul.f32 %v2665_v62, %v2665_v62  ;;  %v1513_v28 = vsel %vm318_vm0, %v2665_v62, 0.0 }
 0x19b   : > { %2095 = vst.msk [vmem:[%s3044_s12 + $0xf4] sm:$0xf] %vm2033_vm1, %v2489_v33  ;;  %v1701_v47 = vadd.f32 %v1700_v7, %v1699_v30  ;;  %v1710_v36 = vsel %vm318_vm0, %v1613_v9, 0.0  ;;  %v1615_v30 = vmul.f32 %v2666_v52, %v2666_v52  ;;  %v2671_v9 = vld [vmem:[#allocation2 + $0x148] sm:$0xff]  ;;  %v1621_v62 = vmul.f32 %v3175_v1, %v3175_v1 }
 0x19c   : > { %v1410_v34 = vld [vmem:[#allocation2 + $0xf0] sm:$0xff] }
 0x19d   : > { %v3504_v37 = vld [vmem:[#allocation2 + $0x1f0] sm:$0xff]  ;;  %v1503_v38 = vsel %vm318_vm0, %v1410_v34, 0.0  ;;  %v1609_v3 = vmul.f32 %v1410_v34, %v1410_v34  ;;  %v2458_v41 = vpack.c.bf16 %v1410_v34, %v1410_v34  ;;  %v1515_v34 = vsel %vm318_vm0, %v2666_v52, 0.0 }
 0x19e   : > { %v1504_v49 = vadd.f32 %v1503_v38, %v1502_v25  ;;  %v2490_v22 = vpack.c.bf16 %v3504_v37, %v3504_v37  ;;  %v1712_v25 = vsel %vm318_vm0, %v1614_v23, 0.0  ;;  %v2667_v38 = vld [vmem:[#allocation2 + $0x128] sm:$0xff]  ;;  %v1714_v46 = vsel %vm318_vm0, %v1615_v30, 0.0 }
 0x19f   : > { %v1411_v50 = vld [vmem:[#allocation2 + $0xf8] sm:$0xff]  ;;  %v1702_v5 = vsel %vm318_vm0, %v1609_v3, 0.0  ;;  %2064 = vst.msk [vmem:[%s3044_s12 + $0x78] sm:$0xf] %vm2033_vm1, %v2458_v41  ;;  %v1616_v3 = vmul.f32 %v2667_v38, %v2667_v38 }
 0x1a0   : > { %v1505_v54 = vsel %vm318_vm0, %v1411_v50, 0.0  ;;  %v1610_v61 = vmul.f32 %v1411_v50, %v1411_v50  ;;  %v2459_v55 = vpack.c.bf16 %v1411_v50, %v1411_v50  ;;  %v1703_v44 = vadd.f32 %v1702_v5, %v1701_v47  ;;  %2096 = vst.msk [vmem:[%s3044_s12 + $0xf8] sm:$0xf] %vm2033_vm1, %v2490_v22  ;;  %v3521_v2 = vld [vmem:[#allocation2 + $0x1f8] sm:$0xff] }
 0x1a1   : > { %v1506_v58 = vadd.f32 %v1505_v54, %v1504_v49  ;;  %v2491_v12 = vpack.c.bf16 %v3521_v2, %v3521_v2  ;;  %v1517_v47 = vsel %vm318_vm0, %v2667_v38, 0.0  ;;  %v2668_v49 = vld [vmem:[#allocation2 + $0x130] sm:$0xff]  ;;  %v1716_v54 = vsel %vm318_vm0, %v1616_v3, 0.0 }
 0x1a2   : > { %v1704_v63 = vsel %vm318_vm0, %v1610_v61, 0.0  ;;  %2065 = vst.msk [vmem:[%s3044_s12 + $0x7c] sm:$0xf] %vm2033_vm1, %v2459_v55  ;;  %v1617_v50 = vmul.f32 %v2668_v49, %v2668_v49  ;;  %v1519_v61 = vsel %vm318_vm0, %v2668_v49, 0.0  ;;  %v2669_v55 = vld [vmem:[#allocation2 + $0x138] sm:$0xff]  ;;  %v1625_v49 = vmul.f32 %v3258_v19, %v3258_v19 }
 0x1a3   : > { %v1508_v17 = vadd.f32 %v1507_v11, %v1506_v58  ;;  %v1705_v4 = vadd.f32 %v1704_v63, %v1703_v44  ;;  %2097 = vst.msk [vmem:[%s3044_s12 + $0xfc] sm:$0xf] %vm2033_vm1, %v2491_v12  ;;  %v1618_v44 = vmul.f32 %v2669_v55, %v2669_v55  ;;  %v1521_v32 = vsel %vm318_vm0, %v2669_v55, 0.0  ;;  %v2670_v63 = vld [vmem:[#allocation2 + $0x140] sm:$0xff] }
 0x1a4   : > { %v1718_v48 = vsel %vm318_vm0, %v1617_v50, 0.0  ;;  %v1523_v8 = vsel %vm318_vm0, %v2670_v63, 0.0  ;;  %v1620_v12 = vmul.f32 %v2671_v9, %v2671_v9 }
 0x1a5   : > { %v1510_v14 = vadd.f32 %v1509_v27, %v1508_v17  ;;  %v1707_v20 = vadd.f32 %v1706_v6, %v1705_v4  ;;  %v1619_v17 = vmul.f32 %v2670_v63, %v2670_v63  ;;  %v1720_v27 = vsel %vm318_vm0, %v1618_v44, 0.0 }
 0x1a6   : > { %v1734_v44 = vsel %vm318_vm0, %v1625_v49, 0.0  ;;  %v1628_v63 = vmul.f32 %v3322_v15, %v3322_v15  ;;  %v1636_v49 = vmul.f32 %v3448_v0, %v3448_v0 }
 0x1a7   : > { %v1512_v24 = vadd.f32 %v1511_v43, %v1510_v14  ;;  %v1709_v29 = vadd.f32 %v1708_v21, %v1707_v20  ;;  %v1722_v21 = vsel %vm318_vm0, %v1619_v17, 0.0  ;;  %v1525_v43 = vsel %vm318_vm0, %v2671_v9, 0.0 }
 0x1a9   : > { %v1514_v7 = vadd.f32 %v1513_v28, %v1512_v24  ;;  %v1711_v33 = vadd.f32 %v1710_v36, %v1709_v29  ;;  %v1724_v29 = vsel %vm318_vm0, %v1620_v12, 0.0  ;;  %v1527_v36 = vsel %vm318_vm0, %v3175_v1, 0.0 }
 0x1aa   : > { %v1622_v28 = vmul.f32 %v3196_v18, %v3196_v18  ;;  %v1531_v1 = vsel %vm318_vm0, %v3216_v39, 0.0  ;;  %v1740_v12 = vsel %vm318_vm0, %v1628_v63, 0.0 }
 0x1ab   : > { %v1516_v41 = vadd.f32 %v1515_v34, %v1514_v7  ;;  %v1713_v42 = vadd.f32 %v1712_v25, %v1711_v33  ;;  %v1726_v7 = vsel %vm318_vm0, %v1621_v62, 0.0  ;;  %v1529_v33 = vsel %vm318_vm0, %v3196_v18, 0.0 }
 0x1ac   : > { %v1623_v25 = vmul.f32 %v3216_v39, %v3216_v39  ;;  %v1728_v3 = vsel %vm318_vm0, %v1622_v28, 0.0  ;;  %v1533_v18 = vsel %vm318_vm0, %v3239_v60, 0.0  ;;  %v1535_v39 = vsel %vm318_vm0, %v3258_v19, 0.0 }
 0x1ad   : > { %v1518_v22 = vadd.f32 %v1517_v47, %v1516_v41  ;;  %v1715_v5 = vadd.f32 %v1714_v46, %v1713_v42  ;;  %v1624_v41 = vmul.f32 %v3239_v60, %v3239_v60  ;;  %v1537_v60 = vsel %vm318_vm0, %v3278_v56, 0.0 }
 0x1ae   : > { %v1730_v47 = vsel %vm318_vm0, %v1623_v25, 0.0  ;;  %v1539_v19 = vsel %vm318_vm0, %v3299_v57, 0.0  ;;  %v1631_v62 = vmul.f32 %v3378_v16, %v3378_v16 }
 0x1af   : > { %v1520_v58 = vadd.f32 %v1519_v61, %v1518_v22  ;;  %v1717_v11 = vadd.f32 %v1716_v54, %v1715_v5  ;;  %v1732_v5 = vsel %vm318_vm0, %v1624_v41, 0.0  ;;  %v1626_v54 = vmul.f32 %v3278_v56, %v3278_v56 }
 0x1b0   : > { %v1541_v56 = vsel %vm318_vm0, %v3322_v15, 0.0  ;;  %v1545_v15 = vsel %vm318_vm0, %v3361_v53, 0.0 }
 0x1b1   : > { %v1522_v4 = vadd.f32 %v1521_v32, %v1520_v58  ;;  %v1719_v6 = vadd.f32 %v1718_v48, %v1717_v11  ;;  %v1627_v58 = vmul.f32 %v3299_v57, %v3299_v57  ;;  %v1736_v32 = vsel %vm318_vm0, %v1626_v54, 0.0 }
 0x1b2   : > { %v1543_v57 = vsel %vm318_vm0, %v3340_v35, 0.0 }
 0x1b3   : > { %v1721_v14 = vadd.f32 %v1720_v27, %v1719_v6  ;;  %v1524_v20 = vadd.f32 %v1523_v8, %v1522_v4  ;;  %v1738_v6 = vsel %vm318_vm0, %v1627_v58, 0.0  ;;  %v1629_v27 = vmul.f32 %v3340_v35, %v3340_v35 }
 0x1b4   : > { %v1547_v35 = vsel %vm318_vm0, %v3378_v16, 0.0  ;;  %v1551_v16 = vsel %vm318_vm0, %v3408_v59, 0.0 }
 0x1b5   : > { %v1526_v23 = vadd.f32 %v1525_v43, %v1524_v20  ;;  %v1723_v24 = vadd.f32 %v1722_v21, %v1721_v14  ;;  %v1630_v14 = vmul.f32 %v3361_v53, %v3361_v53  ;;  %v1742_v43 = vsel %vm318_vm0, %v1629_v27, 0.0 }
 0x1b6   : > { %v1549_v53 = vsel %vm318_vm0, %v3396_v51, 0.0  ;;  %v1565_v27 = vsel %vm318_vm0, %v3498_v31, 0.0 }
 0x1b7   : > { %v1528_v52 = vadd.f32 %v1527_v36, %v1526_v23  ;;  %v1725_v30 = vadd.f32 %v1724_v29, %v1723_v24  ;;  %v1744_v29 = vsel %vm318_vm0, %v1630_v14, 0.0  ;;  %v1632_v36 = vmul.f32 %v3396_v51, %v3396_v51 }
 0x1b8   : > { %v1553_v51 = vsel %vm318_vm0, %v3420_v13, 0.0  ;;  %v1642_v14 = vmul.f32 %v3521_v2, %v3521_v2 }
 0x1b9   : > { %v1530_v34 = vadd.f32 %v1529_v33, %v1528_v52  ;;  %v1727_v38 = vadd.f32 %v1726_v7, %v1725_v30  ;;  %v1746_v30 = vsel %vm318_vm0, %v1631_v62, 0.0  ;;  %v1633_v7 = vmul.f32 %v3408_v59, %v3408_v59 }
 0x1ba   : > { %v1555_v59 = vsel %vm318_vm0, %v3433_v40, 0.0  ;;  %v1768_v62 = vsel %vm318_vm0, %v1642_v14, 0.0 }
 0x1bb   : > { %v1532_v42 = vadd.f32 %v1531_v1, %v1530_v34  ;;  %v1729_v46 = vadd.f32 %v1728_v3, %v1727_v38  ;;  %v1748_v34 = vsel %vm318_vm0, %v1632_v36, 0.0  ;;  %v1634_v38 = vmul.f32 %v3420_v13, %v3420_v13 }
 0x1bc   : > { %v1750_v41 = vsel %vm318_vm0, %v1633_v7, 0.0  ;;  %v1557_v13 = vsel %vm318_vm0, %v3448_v0, 0.0  ;;  %v1561_v0 = vsel %vm318_vm0, %v3471_v45, 0.0 }
 0x1bd   : > { %v1534_v50 = vadd.f32 %v1533_v18, %v1532_v42  ;;  %v1731_v22 = vadd.f32 %v1730_v47, %v1729_v46  ;;  %v1635_v42 = vmul.f32 %v3433_v40, %v3433_v40  ;;  %v1752_v18 = vsel %vm318_vm0, %v1634_v38, 0.0 }
 0x1be   : > { %v1559_v40 = vsel %vm318_vm0, %v3458_v26, 0.0 }
 0x1bf   : > { %v1536_v61 = vadd.f32 %v1535_v39, %v1534_v50  ;;  %v1733_v55 = vadd.f32 %v1732_v5, %v1731_v22  ;;  %v1754_v5 = vsel %vm318_vm0, %v1635_v42, 0.0  ;;  %v1637_v39 = vmul.f32 %v3458_v26, %v3458_v26 }
 0x1c0   : > { %v1563_v26 = vsel %vm318_vm0, %v3484_v10, 0.0 }
 0x1c1   : > { %v1538_v11 = vadd.f32 %v1537_v60, %v1536_v61  ;;  %v1735_v48 = vadd.f32 %v1734_v44, %v1733_v55  ;;  %v1756_v55 = vsel %vm318_vm0, %v1636_v49, 0.0  ;;  %v1638_v44 = vmul.f32 %v3471_v45, %v3471_v45 }
 0x1c3   : > { %v1540_v17 = vadd.f32 %v1539_v19, %v1538_v11  ;;  %v1737_v4 = vadd.f32 %v1736_v32, %v1735_v48  ;;  %v1758_v11 = vsel %vm318_vm0, %v1637_v39, 0.0  ;;  %v1639_v48 = vmul.f32 %v3484_v10, %v3484_v10 }
 0x1c4   : > { %v1760_v63 = vsel %vm318_vm0, %v1638_v44, 0.0 }
 0x1c5   : > { %v1739_v8 = vadd.f32 %v1738_v6, %v1737_v4  ;;  %v1542_v9 = vadd.f32 %v1541_v56, %v1540_v17  ;;  %v1640_v17 = vmul.f32 %v3498_v31, %v3498_v31  ;;  %v1641_v4 = vmul.f32 %v3504_v37, %v3504_v37 }
 0x1c6   : > { %v1762_v45 = vsel %vm318_vm0, %v1639_v48, 0.0 }
 0x1c7   : > { %v1741_v20 = vadd.f32 %v1740_v12, %v1739_v8  ;;  %v1544_v21 = vadd.f32 %v1543_v57, %v1542_v9  ;;  %v1567_v8 = vsel %vm318_vm0, %v3504_v37, 0.0  ;;  %v1764_v10 = vsel %vm318_vm0, %v1640_v17, 0.0 }
 0x1c8   : > { %v1766_v57 = vsel %vm318_vm0, %v1641_v4, 0.0 }
 0x1c9   : > { %v1743_v23 = vadd.f32 %v1742_v43, %v1741_v20  ;;  %v1546_v24 = vadd.f32 %v1545_v15, %v1544_v21  ;;  %v1569_v43 = vsel %vm318_vm0, %v3521_v2, 0.0 }
 0x1cb   : > { %v1745_v28 = vadd.f32 %v1744_v29, %v1743_v23  ;;  %v1548_v52 = vadd.f32 %v1547_v35, %v1546_v24 }
 0x1cd   : > { %v1747_v33 = vadd.f32 %v1746_v30, %v1745_v28  ;;  %v1550_v25 = vadd.f32 %v1549_v53, %v1548_v52 }
 0x1cf   : > { %v1749_v3 = vadd.f32 %v1748_v34, %v1747_v33  ;;  %v1552_v1 = vadd.f32 %v1551_v16, %v1550_v25 }
 0x1d1   : > { %v1751_v46 = vadd.f32 %v1750_v41, %v1749_v3  ;;  %v1554_v47 = vadd.f32 %v1553_v51, %v1552_v1 }
 0x1d3   : > { %v1753_v50 = vadd.f32 %v1752_v18, %v1751_v46  ;;  %v1556_v22 = vadd.f32 %v1555_v59, %v1554_v47 }
 0x1d5   : > { %v1755_v54 = vadd.f32 %v1754_v5, %v1753_v50  ;;  %v1558_v61 = vadd.f32 %v1557_v13, %v1556_v22 }
 0x1d7   : > { %v1757_v60 = vadd.f32 %v1756_v55, %v1755_v54  ;;  %v1560_v58 = vadd.f32 %v1559_v40, %v1558_v61 }
 0x1d9   : > { %v1759_v32 = vadd.f32 %v1758_v11, %v1757_v60  ;;  %v1562_v19 = vadd.f32 %v1561_v0, %v1560_v58 }
 0x1db   : > { %v1761_v6 = vadd.f32 %v1760_v63, %v1759_v32  ;;  %v1564_v56 = vadd.f32 %v1563_v26, %v1562_v19 }
 0x1dd   : > { %v1763_v9 = vadd.f32 %v1762_v45, %v1761_v6  ;;  %v1566_v12 = vadd.f32 %v1565_v27, %v1564_v56 }
 0x1df   : > { %v1765_v20 = vadd.f32 %v1764_v10, %v1763_v9  ;;  %v1568_v21 = vadd.f32 %v1567_v8, %v1566_v12 }
 0x1e1   : > { %v1767_v15 = vadd.f32 %v1766_v57, %v1765_v20  ;;  %v1570_v31 = vadd.f32 %v1569_v43, %v1568_v21 }
 0x1e3   : > { %v1571_v37 = vrot.slane %v1570_v31, 4  ;;  %v1769_v23 = vadd.f32 %v1768_v62, %v1767_v15 }
 0x1e5   : > { %v1572_v24 = vadd.f32 %v1571_v37, %v1570_v31  ;;  %v1770_v29 = vrot.slane %v1769_v23, 4 }
 0x1e7   : > { %v1573_v35 = vrot.slane %v1572_v24, 2  ;;  %v1771_v36 = vadd.f32 %v1770_v29, %v1769_v23 }
 0x1e9   : > { %v1574_v28 = vadd.f32 %v1573_v35, %v1572_v24  ;;  %v1772_v52 = vrot.slane %v1771_v36, 2 }
 0x1eb   : > { %v1575_v30 = vrot.slane %v1574_v28, 1  ;;  %v1773_v53 = vadd.f32 %v1772_v52, %v1771_v36 }
 0x1ed   : > { %v1576_v2 = vadd.f32 %v1575_v30, %v1574_v28  ;;  %v1774_v7 = vrot.slane %v1773_v53, 1 }
 0x1ef   : > { %1578 = vst.msk [vmem:[%s306_s14] sm:$0x1] %vm1577_vm2, %v1576_v2  ;;  %v1775_v33 = vadd.f32 %v1774_v7, %v1773_v53 }
 0x1f1   : > { %1776 = vst.msk [vmem:[%s312_s22] sm:$0x1] %vm1577_vm2, %v1775_v33 }
 0x1f2 PF: > { %s15_s17 = sadd.s32 1, %s2694_s17   ;;  %s3678_s15 = smov %s2690_s16 }
 0x1f3   : > { %p12_p6 = scmp.ge.s32.totalorder %s15_s17, 6   ;;  %s3679_s16 = smov %s3681_s18 }
 0x1f5   :  { %14 = sbr.rel (!%p12_p6) target bundleno = 2 (0x2), region = 93 }

</bundles_post_ra>
